<compile_context>
chip_gen: v5e
topology: v5e:2x2
jax: 0.10.0
libtpu: 0.0.40
codegen_flags: <defaults>
</compile_context>

<pallas_src>
import numpy as np

import jax
import jax.numpy as jnp
from jax import lax
from jax.experimental import pallas as pl
from jax.experimental.pallas import tpu as pltpu

BN_EPS = 1e-5

# Channel counts padded to f32 sublane (8) alignment per stage.
C0P, C1P, C2P, C3P, C4P = 8, 8, 16, 24, 48

_BIAS_COL = dict(stem=0, l1_b1=1, l1_b2=2, l2_b1=3, l2_b2=4, l2_bd=5,
                 l3_b1=6, l3_b2=7, l3_bd=8, l4_b1=9, l4_b2=10, l4_bd=11)


# --------------------------- layout bookkeeping -----------------------------
# Every activation is stored as (C_p, N*Hp*Wp) where (Hp, Wp) = (H+2, W+2) is
# the spatial size padded by one zero ring, flattened row-major (n, row, col).
# "span" is the contiguous lane window [f0, f0+span) covering all valid
# positions; all 3x3 tap reads of the span stay in-bounds.

def _layout(n, h, w):
    hp, wp = h + 2, w + 2
    size = hp * wp
    f0 = wp + 1
    last = (n - 1) * size + h * wp + w
    return dict(n=n, h=h, w=w, hp=hp, wp=wp, size=size, nf=n * size,
                f0=f0, span=last - f0 + 1)


def _is_valid(lay, f):
    r = (f % lay["size"]) // lay["wp"]
    c = f % lay["wp"]
    return (1 <= r <= lay["h"]) and (1 <= c <= lay["w"])


def _full_mask(lay):
    m = np.zeros((lay["nf"],), np.float32)
    for f in range(lay["nf"]):
        if _is_valid(lay, f):
            m[f] = 1.0
    return m


def _span_mask(lay):
    m = np.zeros((lay["span"],), np.float32)
    for p in range(lay["span"]):
        if _is_valid(lay, lay["f0"] + p):
            m[p] = 1.0
    return m


def _gather_s2_span(lay_in, lay_out):
    # One-hot (span_in, span_out): picks the stride-2 window centers of the
    # stride-1 result and re-lays them into lay_out's span (padding columns
    # are all-zero, so destination padding positions come out as 0).
    g = np.zeros((lay_in["span"], lay_out["span"]), np.float32)
    for n in range(lay_out["n"]):
        for oh in range(lay_out["h"]):
            for ow in range(lay_out["w"]):
                src = (n * lay_in["size"] + (2 * oh + 1) * lay_in["wp"]
                       + (2 * ow + 1) - lay_in["f0"])
                dst = (n * lay_out["size"] + (oh + 1) * lay_out["wp"]
                       + (ow + 1) - lay_out["f0"])
                g[src, dst] = 1.0
    return g


def _gather_avg_t(lay):
    # (N, span): row n averages the valid positions of sample n.
    g = np.zeros((lay["n"], lay["span"]), np.float32)
    inv = 1.0 / float(lay["h"] * lay["w"])
    for n in range(lay["n"]):
        for r in range(1, lay["h"] + 1):
            for c in range(1, lay["w"] + 1):
                g[n, n * lay["size"] + r * lay["wp"] + c - lay["f0"]] = inv
    return g


def _wpack_layout(num_classes):
    # All LHS weight matrices live in one (48, WCOLS) bf16 array; each block
    # occupies rows [0:cout_p) of its own 128-aligned column window.
    blocks = [
        ("stem", C0P, 3 * 49),
        ("l1_w1", C1P, 9 * C1P), ("l1_w2", C1P, 9 * C1P),
        ("l2_w1", C2P, 9 * C1P), ("l2_w2", C2P, 9 * C2P), ("l2_wd", C2P, C1P),
        ("l3_w1", C3P, 9 * C2P), ("l3_w2", C3P, 9 * C3P), ("l3_wd", C3P, C2P),
        ("l4_w1", C4P, 9 * C3P), ("l4_w2", C4P, 9 * C4P), ("l4_wd", C4P, C3P),
        ("fc", C4P, num_classes),     # stored transposed: (48, num_classes)
    ]
    lay, off = {}, 0
    for name, r, c in blocks:
        lay[name] = (r, c, off)
        off += ((c + 127) // 128) * 128
    return lay, off


# ------------------------------ fused kernel --------------------------------

def _make_kernel(cfg):
    f32, bf16 = jnp.float32, jnp.bfloat16
    L0, L1, L2, L3, L4 = cfg["layouts"]
    WL = cfg["wlay"]
    GOFF = cfg["goff"]
    MROW = cfg["mrow"]
    N = cfg["n"]

    def kernel(stem_p, wpack, bpack, gpool, gpack, maskpack, fcb, out_ref,
               s0, s1a, s1b, s2a, s2b, s3a, s3b, s4a, xstk):

        def relu(v):
            return jnp.maximum(v, 0.0)

        def wslice(name):
            r, c, off = WL[name]
            return wpack[0:r, off:off + c]                      # (r, c) bf16

        def bias(name, rows):
            j = _BIAS_COL[name]
            return bpack[0:rows, j:j + 1]                       # (rows, 1) f32

        def mask(i, width):
            r = MROW[i]
            return maskpack[r:r + 1, 0:width]                   # (1, width) f32

        def conv3x3(src_ref, lay, cin_p, wname, bname, cout_p):
            # Full stride-1 3x3 conv over lay's span as ONE GEMM:
            # stack the 9 lane-shifted tap slices (K = 9*cin_p) then dot.
            f0, span, wp = lay["f0"], lay["span"], lay["wp"]
            for t in range(9):
                dh, dw = divmod(t, 3)
                s = (dh - 1) * wp + (dw - 1)
                xstk[t * cin_p:(t + 1) * cin_p, 0:span] = \
                    src_ref[:, f0 + s:f0 + s + span]
            k = 9 * cin_p
            acc = jnp.dot(wslice(wname), xstk[0:k, 0:span].astype(bf16),
                          preferred_element_type=f32)
            return acc + bias(bname, cout_p)                    # (cout_p, span)

        # ---- zero the never-written pad lanes of span-addressed scratches once
        def zero_pads(ref, lay):
            rows = ref.shape[0]
            f0, span, nf = lay["f0"], lay["span"], lay["nf"]
            ref[:, 0:f0] = jnp.zeros((rows, f0), f32)
            ref[:, f0 + span:nf] = jnp.zeros((rows, nf - f0 - span), f32)

        zero_pads(s1a, L1); zero_pads(s1b, L1)
        zero_pads(s2a, L2); zero_pads(s2b, L2)
        zero_pads(s3a, L3); zero_pads(s3b, L3)
        zero_pads(s4a, L4)

        # ---- stem: 7x7/s2 conv (one GEMM on host-built patches) + BN + ReLU
        z = jnp.dot(wslice("stem"), stem_p[...], preferred_element_type=f32)
        s0[...] = relu(z + bias("stem", C0P)) * mask(0, L0["nf"])

        # ---- maxpool 3x3/s2/p1: stride-1 window max over the span (zero
        #      padding is equivalent to -inf padding because input is post-ReLU)
        #      then one merged stride-2 one-hot gather into the l1 span.
        f0, span, wp = L0["f0"], L0["span"], L0["wp"]
        m = None
        for t in range(9):
            dh, dw = divmod(t, 3)
            s = (dh - 1) * wp + (dw - 1)
            xt = s0[:, f0 + s:f0 + s + span]
            m = xt if m is None else jnp.maximum(m, xt)
        s1a[:, L1["f0"]:L1["f0"] + L1["span"]] = jnp.dot(
            m.astype(bf16), gpool[...], preferred_element_type=f32)

        # ---- layer1 (stride 1, identity residual) ----
        f1, sp1 = L1["f0"], L1["span"]
        h = relu(conv3x3(s1a, L1, C1P, "l1_w1", "l1_b1", C1P)) * mask(1, sp1)
        s1b[:, f1:f1 + sp1] = h
        y = conv3x3(s1b, L1, C1P, "l1_w2", "l1_b2", C1P)
        y = relu(y + s1a[:, f1:f1 + sp1]) * mask(1, sp1)
        s1a[:, f1:f1 + sp1] = y          # reuse s1a as the layer1 output buffer

        # ---- stride-2 residual blocks (layers 2-4) ----
        def down_block(src_ref, lay_in, lay_out, cin_p, cout_p, pfx,
                       g_roff, mask_i, c1_scr):
            f_in, sp_in = lay_in["f0"], lay_in["span"]
            f_out, sp_out = lay_out["f0"], lay_out["span"]
            # conv1 + bn1 + relu (stride-1 over the input span)
            h = relu(conv3x3(src_ref, lay_in, cin_p, pfx + "_w1",
                             pfx + "_b1", cout_p))
            # downsample identity: 1x1 conv + bn (no relu)
            idt = jnp.dot(wslice(pfx + "_wd"),
                          src_ref[:, f_in:f_in + sp_in].astype(bf16),
                          preferred_element_type=f32) + bias(pfx + "_bd", cout_p)
            # merged stride-2 one-hot gather of [h ; idt] -> one GEMM
            both = jnp.concatenate([h, idt], axis=0).astype(bf16)
            g = gpack[g_roff:g_roff + sp_in, 0:sp_out]
            gathered = jnp.dot(both, g, preferred_element_type=f32)
            c1_scr[:, f_out:f_out + sp_out] = gathered[0:cout_p, :]
            # conv2 + bn2 + residual add + relu
            y = conv3x3(c1_scr, lay_out, cout_p, pfx + "_w2", pfx + "_b2",
                        cout_p)
            y = relu(y + gathered[cout_p:2 * cout_p, :]) * mask(mask_i, sp_out)
            return y

        y2 = down_block(s1a, L1, L2, C1P, C2P, "l2", GOFF["g2"], 2, s2a)
        s2b[:, L2["f0"]:L2["f0"] + L2["span"]] = y2
        # TODO(synk): dropout1/2/3 (p=0.3) are identity in eval mode; train-mode
        # dropout and batch-stat BatchNorm are not reproduced.
        y3 = down_block(s2b, L2, L3, C2P, C3P, "l3", GOFF["g3"], 3, s3a)
        s3b[:, L3["f0"]:L3["f0"] + L3["span"]] = y3
        y4 = down_block(s3b, L3, L4, C3P, C4P, "l4", GOFF["g4"], 4, s4a)

        # ---- adaptive avgpool (1,1) + FC, emitted directly as (N, classes) ----
        gavgT = gpack[GOFF["gavg"]:GOFF["gavg"] + N, 0:L4["span"]]   # (N, span4)
        pooledT = lax.dot_general(gavgT, y4.astype(bf16),
                                  (((1,), (1,)), ((), ())),
                                  preferred_element_type=f32)        # (N, 48)
        out_ref[...] = (jnp.dot(pooledT.astype(bf16), wslice("fc"),
                                preferred_element_type=f32) + fcb[...])

    return kernel


# ------------------------------ forward pass --------------------------------

def forward(x, params):
    n, cin, h, w = x.shape
    nc = params["fcb"].shape[1]

    # Spatial sizes along the network (stem k7/s2/p3, pool k3/s2/p1, 3x s2).
    h0, w0 = (h - 1) // 2 + 1, (w - 1) // 2 + 1
    h1, w1 = (h0 - 1) // 2 + 1, (w0 - 1) // 2 + 1
    h2, w2 = (h1 - 1) // 2 + 1, (w1 - 1) // 2 + 1
    h3, w3 = (h2 - 1) // 2 + 1, (w2 - 1) // 2 + 1
    h4, w4 = (h3 - 1) // 2 + 1, (w3 - 1) // 2 + 1
    l0, l1, l2, l3, l4 = (_layout(n, h0, w0), _layout(n, h1, w1),
                          _layout(n, h2, w2), _layout(n, h3, w3),
                          _layout(n, h4, w4))

    # ---- trace-time numpy constants (embedded once) ----
    gpool = jnp.asarray(_gather_s2_span(l0, l1), dtype=jnp.bfloat16)

    def r16(v):
        return ((v + 15) // 16) * 16

    goff = dict(g2=0,
                g3=r16(l1["span"]),
                g4=r16(l1["span"]) + r16(l2["span"]),
                gavg=r16(l1["span"]) + r16(l2["span"]) + r16(l3["span"]))
    grows = goff["gavg"] + r16(n)
    gw = max(l2["span"], l3["span"], l4["span"])
    gpack_np = np.zeros((grows, gw), np.float32)
    gpack_np[goff["g2"]:goff["g2"] + l1["span"], :l2["span"]] = _gather_s2_span(l1, l2)
    gpack_np[goff["g3"]:goff["g3"] + l2["span"], :l3["span"]] = _gather_s2_span(l2, l3)
    gpack_np[goff["g4"]:goff["g4"] + l3["span"], :l4["span"]] = _gather_s2_span(l3, l4)
    gpack_np[goff["gavg"]:goff["gavg"] + n, :l4["span"]] = _gather_avg_t(l4)
    gpack = jnp.asarray(gpack_np, dtype=jnp.bfloat16)

    mrow = {0: 0, 1: 8, 2: 16, 3: 24, 4: 32}
    maskpack_np = np.zeros((40, l0["nf"]), np.float32)
    maskpack_np[0, :l0["nf"]] = _full_mask(l0)
    maskpack_np[8, :l1["span"]] = _span_mask(l1)
    maskpack_np[16, :l2["span"]] = _span_mask(l2)
    maskpack_np[24, :l3["span"]] = _span_mask(l3)
    maskpack_np[32, :l4["span"]] = _span_mask(l4)
    maskpack = jnp.asarray(maskpack_np)

    # ---- stem patches: one fused op + pad/transpose/reshape, bf16 ----
    patches = lax.conv_general_dilated_patches(
        x, filter_shape=(7, 7), window_strides=(2, 2),
        padding=((3, 3), (3, 3)))                           # (N, 147, h0, w0)
    patches = jnp.pad(patches, ((0, 0), (0, 0), (1, 1), (1, 1)))
    stem_p = jnp.transpose(patches, (1, 0, 2, 3)).reshape(cin * 49, l0["nf"])
    stem_p = stem_p.astype(jnp.bfloat16)

    cfg = dict(layouts=(l0, l1, l2, l3, l4), wlay=_wpack_layout(nc)[0],
               goff=goff, mrow=mrow, n=n)

    scratch = [
        pltpu.VMEM((C0P, l0["nf"]), jnp.float32),          # s0  stem out / pool in
        pltpu.VMEM((C1P, l1["nf"]), jnp.float32),          # s1a pool out / layer1 out
        pltpu.VMEM((C1P, l1["nf"]), jnp.float32),          # s1b layer1 conv1 out
        pltpu.VMEM((C2P, l2["nf"]), jnp.float32),          # s2a
        pltpu.VMEM((C2P, l2["nf"]), jnp.float32),          # s2b
        pltpu.VMEM((C3P, l3["nf"]), jnp.float32),          # s3a
        pltpu.VMEM((C3P, l3["nf"]), jnp.float32),          # s3b
        pltpu.VMEM((C4P, l4["nf"]), jnp.float32),          # s4a
        pltpu.VMEM((9 * C4P, l1["span"]), jnp.float32),    # xstk tap-stacked operand
    ]

    vmem = pltpu.MemorySpace.VMEM
    # TODO(synk): on v7x (2 TCs/chip) a leading parallel grid axis over batch
    # could use the second core; at N=2 the fixed per-core overhead dominates.
    out = pl.pallas_call(
        _make_kernel(cfg),
        out_shape=jax.ShapeDtypeStruct((n, nc), jnp.float32),
        in_specs=[pl.BlockSpec(memory_space=vmem)] * 7,
        out_specs=pl.BlockSpec(memory_space=vmem),
        scratch_shapes=scratch,
    )(stem_p, params["wpack"], params["bpack"], gpool, gpack, maskpack,
      params["fcb"])
    return out                                              # (N, num_classes)


# ---------------------------- parameter creation ----------------------------

def init_params(key, num_classes):
    keys = jax.random.split(key, 16)
    kit = iter(keys)

    def bn_fold(k, c):
        k1, k2, k3, k4 = jax.random.split(k, 4)
        gamma = 1.0 + 0.1 * jax.random.normal(k1, (c,), jnp.float32)
        beta = 0.1 * jax.random.normal(k2, (c,), jnp.float32)
        mean = 0.1 * jax.random.normal(k3, (c,), jnp.float32)
        var = 1.0 + 0.1 * jnp.abs(jax.random.normal(k4, (c,), jnp.float32))
        scale = gamma / jnp.sqrt(var + BN_EPS)
        shift = beta - mean * scale
        return np.asarray(scale), np.asarray(shift)

    def conv_bn(k, cout, cin, ksz):
        kw, kb = jax.random.split(k)
        fan_in = cin * ksz * ksz
        wt = jax.random.normal(kw, (cout, cin, ksz, ksz), jnp.float32) \
            * (2.0 / fan_in) ** 0.5
        scale, shift = bn_fold(kb, cout)
        return np.asarray(wt) * scale[:, None, None, None], shift

    wlay, wcols = _wpack_layout(num_classes)
    wpack = np.zeros((48, wcols), np.float32)
    bpack = np.zeros((48, 16), np.float32)

    def put_w(name, mat):
        _, _, off = wlay[name]
        wpack[:mat.shape[0], off:off + mat.shape[1]] = mat

    def pack3(wt, cin_p, cout_p):
        # (cout, cin, 3, 3) -> (cout_p, 9*cin_p), column = tap*cin_p + cin.
        cout, cin = wt.shape[:2]
        wp_ = np.zeros((cout_p, cin_p, 3, 3), np.float32)
        wp_[:cout, :cin] = wt
        return np.transpose(wp_, (0, 2, 3, 1)).reshape(cout_p, 9 * cin_p)

    # stem 7x7 (fold BN scale, flatten channel-major to match patch ordering)
    wt, sh = conv_bn(next(kit), 6, 3, 7)
    put_w("stem", wt.reshape(6, 3 * 49))
    bpack[:6, _BIAS_COL["stem"]] = sh

    cfgs = [("l1", 6, 6, C1P, C1P, False),
            ("l2", 6, 12, C1P, C2P, True),
            ("l3", 12, 24, C2P, C3P, True),
            ("l4", 24, 48, C3P, C4P, True)]
    for pfx, cin, cout, cin_p, cout_p, down in cfgs:
        wt, sh = conv_bn(next(kit), cout, cin, 3)
        put_w(pfx + "_w1", pack3(wt, cin_p, cout_p))
        bpack[:cout, _BIAS_COL[pfx + "_b1"]] = sh
        wt, sh = conv_bn(next(kit), cout, cout, 3)
        put_w(pfx + "_w2", pack3(wt, cout_p, cout_p))
        bpack[:cout, _BIAS_COL[pfx + "_b2"]] = sh
        if down:
            wt, sh = conv_bn(next(kit), cout, cin, 1)
            wd = np.zeros((cout_p, cin_p), np.float32)
            wd[:cout, :cin] = wt[:, :, 0, 0]
            put_w(pfx + "_wd", wd)
            bpack[:cout, _BIAS_COL[pfx + "_bd"]] = sh

    # fc (stored transposed so the kernel emits (N, num_classes) directly)
    kf1, kf2 = jax.random.split(next(kit))
    fc_w = np.asarray(jax.random.normal(kf1, (num_classes, 48), jnp.float32)) \
        * (1.0 / 48) ** 0.5
    fc_b = np.asarray(0.01 * jax.random.normal(kf2, (num_classes,), jnp.float32))
    put_w("fc", fc_w.T)

    return dict(wpack=jnp.asarray(wpack, dtype=jnp.bfloat16),
                bpack=jnp.asarray(bpack),
                fcb=jnp.asarray(fc_b.reshape(1, num_classes)))


if __name__ == "__main__":
    num_classes = 10
    key = jax.random.PRNGKey(0)
    pkey, xkey = jax.random.split(key)
    params = init_params(pkey, num_classes)
    x = jax.random.normal(xkey, (2, 3, 32, 32), jnp.float32)   # PyTorch-style NCHW
    logits = jax.jit(forward)(x, params)
    jax.block_until_ready(logits)
    assert logits.shape == (2, num_classes)
    assert bool(jnp.all(jnp.isfinite(logits)))
    print("KERNEL_OK")
</pallas_src>

<mosaic_0001>
module attributes {stable_mosaic.version = 11 : i64} {
  func.func @kernel(%arg0: memref<147x648xbf16, #tpu.memory_space<vmem>>, %arg1: memref<48x2688xbf16, #tpu.memory_space<vmem>>, %arg2: memref<48x16xf32, #tpu.memory_space<vmem>>, %arg3: memref<610x178xbf16, #tpu.memory_space<vmem>>, %arg4: memref<304x58xbf16, #tpu.memory_space<vmem>>, %arg5: memref<40x648xf32, #tpu.memory_space<vmem>>, %arg6: memref<1x10xf32, #tpu.memory_space<vmem>>, %arg7: memref<2x10xf32, #tpu.memory_space<vmem>>, %arg8: memref<8x648xf32, #tpu.memory_space<vmem>>, %arg9: memref<8x200xf32, #tpu.memory_space<vmem>>, %arg10: memref<8x200xf32, #tpu.memory_space<vmem>>, %arg11: memref<16x72xf32, #tpu.memory_space<vmem>>, %arg12: memref<16x72xf32, #tpu.memory_space<vmem>>, %arg13: memref<24x32xf32, #tpu.memory_space<vmem>>, %arg14: memref<24x32xf32, #tpu.memory_space<vmem>>, %arg15: memref<48x18xf32, #tpu.memory_space<vmem>>, %arg16: memref<432x178xf32, #tpu.memory_space<vmem>>) attributes {dimension_semantics = [], scalar_prefetch = 0 : i64, scratch_operands = 9 : i64, tpu.core_type = #tpu.core_type<tc>} {
    %cst = arith.constant 0.000000e+00 : f32
    %0 = vector.broadcast %cst : f32 to vector<8x11xf32>
    %c0 = arith.constant 0 : index
    %c0_0 = arith.constant 0 : index
    %1 = vector.load %arg9[%c0, %c0_0] : memref<8x200xf32, #tpu.memory_space<vmem>>, vector<8x11xf32>
    tpu.vector_store %arg9[%c0, %c0_0], %0 {strides = array<i32>} : memref<8x200xf32, #tpu.memory_space<vmem>>, vector<8x11xf32>,
    %cst_1 = arith.constant 0.000000e+00 : f32
    %2 = vector.broadcast %cst_1 : f32 to vector<8x11xf32>
    %c0_2 = arith.constant 0 : index
    %c189 = arith.constant 189 : index
    %3 = vector.load %arg9[%c0_2, %c189] : memref<8x200xf32, #tpu.memory_space<vmem>>, vector<8x11xf32>
    tpu.vector_store %arg9[%c0_2, %c189], %2 {strides = array<i32>} : memref<8x200xf32, #tpu.memory_space<vmem>>, vector<8x11xf32>,
    %cst_3 = arith.constant 0.000000e+00 : f32
    %4 = vector.broadcast %cst_3 : f32 to vector<8x11xf32>
    %c0_4 = arith.constant 0 : index
    %c0_5 = arith.constant 0 : index
    %5 = vector.load %arg10[%c0_4, %c0_5] : memref<8x200xf32, #tpu.memory_space<vmem>>, vector<8x11xf32>
    tpu.vector_store %arg10[%c0_4, %c0_5], %4 {strides = array<i32>} : memref<8x200xf32, #tpu.memory_space<vmem>>, vector<8x11xf32>,
    %cst_6 = arith.constant 0.000000e+00 : f32
    %6 = vector.broadcast %cst_6 : f32 to vector<8x11xf32>
    %c0_7 = arith.constant 0 : index
    %c189_8 = arith.constant 189 : index
    %7 = vector.load %arg10[%c0_7, %c189_8] : memref<8x200xf32, #tpu.memory_space<vmem>>, vector<8x11xf32>
    tpu.vector_store %arg10[%c0_7, %c189_8], %6 {strides = array<i32>} : memref<8x200xf32, #tpu.memory_space<vmem>>, vector<8x11xf32>,
    %cst_9 = arith.constant 0.000000e+00 : f32
    %8 = vector.broadcast %cst_9 : f32 to vector<16x7xf32>
    %c0_10 = arith.constant 0 : index
    %c0_11 = arith.constant 0 : index
    %9 = vector.load %arg11[%c0_10, %c0_11] : memref<16x72xf32, #tpu.memory_space<vmem>>, vector<16x7xf32>
    tpu.vector_store %arg11[%c0_10, %c0_11], %8 {strides = array<i32>} : memref<16x72xf32, #tpu.memory_space<vmem>>, vector<16x7xf32>,
    %cst_12 = arith.constant 0.000000e+00 : f32
    %10 = vector.broadcast %cst_12 : f32 to vector<16x7xf32>
    %c0_13 = arith.constant 0 : index
    %c65 = arith.constant 65 : index
    %11 = vector.load %arg11[%c0_13, %c65] : memref<16x72xf32, #tpu.memory_space<vmem>>, vector<16x7xf32>
    tpu.vector_store %arg11[%c0_13, %c65], %10 {strides = array<i32>} : memref<16x72xf32, #tpu.memory_space<vmem>>, vector<16x7xf32>,
    %cst_14 = arith.constant 0.000000e+00 : f32
    %12 = vector.broadcast %cst_14 : f32 to vector<16x7xf32>
    %c0_15 = arith.constant 0 : index
    %c0_16 = arith.constant 0 : index
    %13 = vector.load %arg12[%c0_15, %c0_16] : memref<16x72xf32, #tpu.memory_space<vmem>>, vector<16x7xf32>
    tpu.vector_store %arg12[%c0_15, %c0_16], %12 {strides = array<i32>} : memref<16x72xf32, #tpu.memory_space<vmem>>, vector<16x7xf32>,
    %cst_17 = arith.constant 0.000000e+00 : f32
    %14 = vector.broadcast %cst_17 : f32 to vector<16x7xf32>
    %c0_18 = arith.constant 0 : index
    %c65_19 = arith.constant 65 : index
    %15 = vector.load %arg12[%c0_18, %c65_19] : memref<16x72xf32, #tpu.memory_space<vmem>>, vector<16x7xf32>
    tpu.vector_store %arg12[%c0_18, %c65_19], %14 {strides = array<i32>} : memref<16x72xf32, #tpu.memory_space<vmem>>, vector<16x7xf32>,
    %cst_20 = arith.constant 0.000000e+00 : f32
    %16 = vector.broadcast %cst_20 : f32 to vector<24x5xf32>
    %c0_21 = arith.constant 0 : index
    %c0_22 = arith.constant 0 : index
    %17 = vector.load %arg13[%c0_21, %c0_22] : memref<24x32xf32, #tpu.memory_space<vmem>>, vector<24x5xf32>
    tpu.vector_store %arg13[%c0_21, %c0_22], %16 {strides = array<i32>} : memref<24x32xf32, #tpu.memory_space<vmem>>, vector<24x5xf32>,
    %cst_23 = arith.constant 0.000000e+00 : f32
    %18 = vector.broadcast %cst_23 : f32 to vector<24x5xf32>
    %c0_24 = arith.constant 0 : index
    %c27 = arith.constant 27 : index
    %19 = vector.load %arg13[%c0_24, %c27] : memref<24x32xf32, #tpu.memory_space<vmem>>, vector<24x5xf32>
    tpu.vector_store %arg13[%c0_24, %c27], %18 {strides = array<i32>} : memref<24x32xf32, #tpu.memory_space<vmem>>, vector<24x5xf32>,
    %cst_25 = arith.constant 0.000000e+00 : f32
    %20 = vector.broadcast %cst_25 : f32 to vector<24x5xf32>
    %c0_26 = arith.constant 0 : index
    %c0_27 = arith.constant 0 : index
    %21 = vector.load %arg14[%c0_26, %c0_27] : memref<24x32xf32, #tpu.memory_space<vmem>>, vector<24x5xf32>
    tpu.vector_store %arg14[%c0_26, %c0_27], %20 {strides = array<i32>} : memref<24x32xf32, #tpu.memory_space<vmem>>, vector<24x5xf32>,
    %cst_28 = arith.constant 0.000000e+00 : f32
    %22 = vector.broadcast %cst_28 : f32 to vector<24x5xf32>
    %c0_29 = arith.constant 0 : index
    %c27_30 = arith.constant 27 : index
    %23 = vector.load %arg14[%c0_29, %c27_30] : memref<24x32xf32, #tpu.memory_space<vmem>>, vector<24x5xf32>
    tpu.vector_store %arg14[%c0_29, %c27_30], %22 {strides = array<i32>} : memref<24x32xf32, #tpu.memory_space<vmem>>, vector<24x5xf32>,
    %cst_31 = arith.constant 0.000000e+00 : f32
    %24 = vector.broadcast %cst_31 : f32 to vector<48x4xf32>
    %c0_32 = arith.constant 0 : index
    %c0_33 = arith.constant 0 : index
    %25 = vector.load %arg15[%c0_32, %c0_33] : memref<48x18xf32, #tpu.memory_space<vmem>>, vector<48x4xf32>
    tpu.vector_store %arg15[%c0_32, %c0_33], %24 {strides = array<i32>} : memref<48x18xf32, #tpu.memory_space<vmem>>, vector<48x4xf32>,
    %cst_34 = arith.constant 0.000000e+00 : f32
    %26 = vector.broadcast %cst_34 : f32 to vector<48x4xf32>
    %c0_35 = arith.constant 0 : index
    %c14 = arith.constant 14 : index
    %27 = vector.load %arg15[%c0_35, %c14] : memref<48x18xf32, #tpu.memory_space<vmem>>, vector<48x4xf32>
    tpu.vector_store %arg15[%c0_35, %c14], %26 {strides = array<i32>} : memref<48x18xf32, #tpu.memory_space<vmem>>, vector<48x4xf32>,
    %c0_36 = arith.constant 0 : index
    %c0_37 = arith.constant 0 : index
    %28 = vector.load %arg1[%c0_36, %c0_37] : memref<48x2688xbf16, #tpu.memory_space<vmem>>, vector<8x147xbf16>
    %c0_38 = arith.constant 0 : index
    %c0_39 = arith.constant 0 : index
    %29 = vector.load %arg0[%c0_38, %c0_39] : memref<147x648xbf16, #tpu.memory_space<vmem>>, vector<147x648xbf16>
    %cst_40 = arith.constant dense<0.000000e+00> : vector<8x648xf32>
    %30 = tpu.matmul %28, %29, %cst_40 {dimension_numbers = #tpu.dot_dimension_numbers<[1], [0], [0], [1], [0, 0, 1, 1], [], []>} : vector<8x147xbf16>, vector<147x648xbf16>, vector<8x648xf32> -> vector<8x648xf32>
    %c0_41 = arith.constant 0 : index
    %c0_42 = arith.constant 0 : index
    %31 = vector.load %arg2[%c0_41, %c0_42] : memref<48x16xf32, #tpu.memory_space<vmem>>, vector<8x1xf32>
    %32 = vector.broadcast %31 : vector<8x1xf32> to vector<8x648xf32>
    %33 = arith.addf %30, %32 : vector<8x648xf32>
    %cst_43 = arith.constant 0.000000e+00 : f32
    %34 = vector.broadcast %cst_43 : f32 to vector<8x648xf32>
    %35 = arith.maximumf %33, %34 : vector<8x648xf32>
    %c0_44 = arith.constant 0 : index
    %c0_45 = arith.constant 0 : index
    %36 = vector.load %arg5[%c0_44, %c0_45] : memref<40x648xf32, #tpu.memory_space<vmem>>, vector<1x648xf32>
    %37 = vector.broadcast %36 : vector<1x648xf32> to vector<8x648xf32>
    %38 = arith.mulf %35, %37 : vector<8x648xf32>
    %c0_46 = arith.constant 0 : index
    %c0_47 = arith.constant 0 : index
    %39 = vector.load %arg8[%c0_46, %c0_47] : memref<8x648xf32, #tpu.memory_space<vmem>>, vector<8x648xf32>
    tpu.vector_store %arg8[%c0_46, %c0_47], %38 {strides = array<i32>} : memref<8x648xf32, #tpu.memory_space<vmem>>, vector<8x648xf32>,
    %c0_48 = arith.constant 0 : index
    %c0_49 = arith.constant 0 : index
    %40 = vector.load %arg8[%c0_48, %c0_49] : memref<8x648xf32, #tpu.memory_space<vmem>>, vector<8x610xf32>
    %c0_50 = arith.constant 0 : index
    %c1 = arith.constant 1 : index
    %41 = vector.load %arg8[%c0_50, %c1] : memref<8x648xf32, #tpu.memory_space<vmem>>, vector<8x610xf32>
    %42 = arith.maximumf %40, %41 : vector<8x610xf32>
    %c0_51 = arith.constant 0 : index
    %c2 = arith.constant 2 : index
    %43 = vector.load %arg8[%c0_51, %c2] : memref<8x648xf32, #tpu.memory_space<vmem>>, vector<8x610xf32>
    %44 = arith.maximumf %42, %43 : vector<8x610xf32>
    %c0_52 = arith.constant 0 : index
    %c18 = arith.constant 18 : index
    %45 = vector.load %arg8[%c0_52, %c18] : memref<8x648xf32, #tpu.memory_space<vmem>>, vector<8x610xf32>
    %46 = arith.maximumf %44, %45 : vector<8x610xf32>
    %c0_53 = arith.constant 0 : index
    %c19 = arith.constant 19 : index
    %47 = vector.load %arg8[%c0_53, %c19] : memref<8x648xf32, #tpu.memory_space<vmem>>, vector<8x610xf32>
    %48 = arith.maximumf %46, %47 : vector<8x610xf32>
    %c0_54 = arith.constant 0 : index
    %c20 = arith.constant 20 : index
    %49 = vector.load %arg8[%c0_54, %c20] : memref<8x648xf32, #tpu.memory_space<vmem>>, vector<8x610xf32>
    %50 = arith.maximumf %48, %49 : vector<8x610xf32>
    %c0_55 = arith.constant 0 : index
    %c36 = arith.constant 36 : index
    %51 = vector.load %arg8[%c0_55, %c36] : memref<8x648xf32, #tpu.memory_space<vmem>>, vector<8x610xf32>
    %52 = arith.maximumf %50, %51 : vector<8x610xf32>
    %c0_56 = arith.constant 0 : index
    %c37 = arith.constant 37 : index
    %53 = vector.load %arg8[%c0_56, %c37] : memref<8x648xf32, #tpu.memory_space<vmem>>, vector<8x610xf32>
    %54 = arith.maximumf %52, %53 : vector<8x610xf32>
    %c0_57 = arith.constant 0 : index
    %c38 = arith.constant 38 : index
    %55 = vector.load %arg8[%c0_57, %c38] : memref<8x648xf32, #tpu.memory_space<vmem>>, vector<8x610xf32>
    %56 = arith.maximumf %54, %55 : vector<8x610xf32>
    %57 = arith.truncf %56 : vector<8x610xf32> to vector<8x610xbf16>
    %c0_58 = arith.constant 0 : index
    %c0_59 = arith.constant 0 : index
    %58 = vector.load %arg3[%c0_58, %c0_59] : memref<610x178xbf16, #tpu.memory_space<vmem>>, vector<610x178xbf16>
    %cst_60 = arith.constant dense<0.000000e+00> : vector<8x178xf32>
    %59 = tpu.matmul %57, %58, %cst_60 {dimension_numbers = #tpu.dot_dimension_numbers<[1], [0], [0], [1], [0, 0, 1, 1], [], []>} : vector<8x610xbf16>, vector<610x178xbf16>, vector<8x178xf32> -> vector<8x178xf32>
    %c0_61 = arith.constant 0 : index
    %c11 = arith.constant 11 : index
    %60 = vector.load %arg9[%c0_61, %c11] : memref<8x200xf32, #tpu.memory_space<vmem>>, vector<8x178xf32>
    tpu.vector_store %arg9[%c0_61, %c11], %59 {strides = array<i32>} : memref<8x200xf32, #tpu.memory_space<vmem>>, vector<8x178xf32>,
    %c0_62 = arith.constant 0 : index
    %c0_63 = arith.constant 0 : index
    %61 = vector.load %arg9[%c0_62, %c0_63] : memref<8x200xf32, #tpu.memory_space<vmem>>, vector<8x178xf32>
    %c0_64 = arith.constant 0 : index
    %c0_65 = arith.constant 0 : index
    %62 = vector.load %arg16[%c0_64, %c0_65] : memref<432x178xf32, #tpu.memory_space<vmem>>, vector<8x178xf32>
    tpu.vector_store %arg16[%c0_64, %c0_65], %61 {strides = array<i32>} : memref<432x178xf32, #tpu.memory_space<vmem>>, vector<8x178xf32>,
    %c0_66 = arith.constant 0 : index
    %c1_67 = arith.constant 1 : index
    %63 = vector.load %arg9[%c0_66, %c1_67] : memref<8x200xf32, #tpu.memory_space<vmem>>, vector<8x178xf32>
    %c8 = arith.constant 8 : index
    %c0_68 = arith.constant 0 : index
    %64 = vector.load %arg16[%c8, %c0_68] : memref<432x178xf32, #tpu.memory_space<vmem>>, vector<8x178xf32>
    tpu.vector_store %arg16[%c8, %c0_68], %63 {strides = array<i32>} : memref<432x178xf32, #tpu.memory_space<vmem>>, vector<8x178xf32>,
    %c0_69 = arith.constant 0 : index
    %c2_70 = arith.constant 2 : index
    %65 = vector.load %arg9[%c0_69, %c2_70] : memref<8x200xf32, #tpu.memory_space<vmem>>, vector<8x178xf32>
    %c16 = arith.constant 16 : index
    %c0_71 = arith.constant 0 : index
    %66 = vector.load %arg16[%c16, %c0_71] : memref<432x178xf32, #tpu.memory_space<vmem>>, vector<8x178xf32>
    tpu.vector_store %arg16[%c16, %c0_71], %65 {strides = array<i32>} : memref<432x178xf32, #tpu.memory_space<vmem>>, vector<8x178xf32>,
    %c0_72 = arith.constant 0 : index
    %c10 = arith.constant 10 : index
    %67 = vector.load %arg9[%c0_72, %c10] : memref<8x200xf32, #tpu.memory_space<vmem>>, vector<8x178xf32>
    %c24 = arith.constant 24 : index
    %c0_73 = arith.constant 0 : index
    %68 = vector.load %arg16[%c24, %c0_73] : memref<432x178xf32, #tpu.memory_space<vmem>>, vector<8x178xf32>
    tpu.vector_store %arg16[%c24, %c0_73], %67 {strides = array<i32>} : memref<432x178xf32, #tpu.memory_space<vmem>>, vector<8x178xf32>,
    %c0_74 = arith.constant 0 : index
    %c11_75 = arith.constant 11 : index
    %69 = vector.load %arg9[%c0_74, %c11_75] : memref<8x200xf32, #tpu.memory_space<vmem>>, vector<8x178xf32>
    %c32 = arith.constant 32 : index
    %c0_76 = arith.constant 0 : index
    %70 = vector.load %arg16[%c32, %c0_76] : memref<432x178xf32, #tpu.memory_space<vmem>>, vector<8x178xf32>
    tpu.vector_store %arg16[%c32, %c0_76], %69 {strides = array<i32>} : memref<432x178xf32, #tpu.memory_space<vmem>>, vector<8x178xf32>,
    %c0_77 = arith.constant 0 : index
    %c12 = arith.constant 12 : index
    %71 = vector.load %arg9[%c0_77, %c12] : memref<8x200xf32, #tpu.memory_space<vmem>>, vector<8x178xf32>
    %c40 = arith.constant 40 : index
    %c0_78 = arith.constant 0 : index
    %72 = vector.load %arg16[%c40, %c0_78] : memref<432x178xf32, #tpu.memory_space<vmem>>, vector<8x178xf32>
    tpu.vector_store %arg16[%c40, %c0_78], %71 {strides = array<i32>} : memref<432x178xf32, #tpu.memory_space<vmem>>, vector<8x178xf32>,
    %c0_79 = arith.constant 0 : index
    %c20_80 = arith.constant 20 : index
    %73 = vector.load %arg9[%c0_79, %c20_80] : memref<8x200xf32, #tpu.memory_space<vmem>>, vector<8x178xf32>
    %c48 = arith.constant 48 : index
    %c0_81 = arith.constant 0 : index
    %74 = vector.load %arg16[%c48, %c0_81] : memref<432x178xf32, #tpu.memory_space<vmem>>, vector<8x178xf32>
    tpu.vector_store %arg16[%c48, %c0_81], %73 {strides = array<i32>} : memref<432x178xf32, #tpu.memory_space<vmem>>, vector<8x178xf32>,
    %c0_82 = arith.constant 0 : index
    %c21 = arith.constant 21 : index
    %75 = vector.load %arg9[%c0_82, %c21] : memref<8x200xf32, #tpu.memory_space<vmem>>, vector<8x178xf32>
    %c56 = arith.constant 56 : index
    %c0_83 = arith.constant 0 : index
    %76 = vector.load %arg16[%c56, %c0_83] : memref<432x178xf32, #tpu.memory_space<vmem>>, vector<8x178xf32>
    tpu.vector_store %arg16[%c56, %c0_83], %75 {strides = array<i32>} : memref<432x178xf32, #tpu.memory_space<vmem>>, vector<8x178xf32>,
    %c0_84 = arith.constant 0 : index
    %c22 = arith.constant 22 : index
    %77 = vector.load %arg9[%c0_84, %c22] : memref<8x200xf32, #tpu.memory_space<vmem>>, vector<8x178xf32>
    %c64 = arith.constant 64 : index
    %c0_85 = arith.constant 0 : index
    %78 = vector.load %arg16[%c64, %c0_85] : memref<432x178xf32, #tpu.memory_space<vmem>>, vector<8x178xf32>
    tpu.vector_store %arg16[%c64, %c0_85], %77 {strides = array<i32>} : memref<432x178xf32, #tpu.memory_space<vmem>>, vector<8x178xf32>,
    %c0_86 = arith.constant 0 : index
    %c256 = arith.constant 256 : index
    %79 = vector.load %arg1[%c0_86, %c256] : memref<48x2688xbf16, #tpu.memory_space<vmem>>, vector<8x72xbf16>
    %c0_87 = arith.constant 0 : index
    %c0_88 = arith.constant 0 : index
    %80 = vector.load %arg16[%c0_87, %c0_88] : memref<432x178xf32, #tpu.memory_space<vmem>>, vector<72x178xf32>
    %81 = arith.truncf %80 : vector<72x178xf32> to vector<72x178xbf16>
    %cst_89 = arith.constant dense<0.000000e+00> : vector<8x178xf32>
    %82 = tpu.matmul %79, %81, %cst_89 {dimension_numbers = #tpu.dot_dimension_numbers<[1], [0], [0], [1], [0, 0, 1, 1], [], []>} : vector<8x72xbf16>, vector<72x178xbf16>, vector<8x178xf32> -> vector<8x178xf32>
    %c0_90 = arith.constant 0 : index
    %c1_91 = arith.constant 1 : index
    %83 = vector.load %arg2[%c0_90, %c1_91] : memref<48x16xf32, #tpu.memory_space<vmem>>, vector<8x1xf32>
    %84 = vector.broadcast %83 : vector<8x1xf32> to vector<8x178xf32>
    %85 = arith.addf %82, %84 : vector<8x178xf32>
    %cst_92 = arith.constant 0.000000e+00 : f32
    %86 = vector.broadcast %cst_92 : f32 to vector<8x178xf32>
    %87 = arith.maximumf %85, %86 : vector<8x178xf32>
    %c8_93 = arith.constant 8 : index
    %c0_94 = arith.constant 0 : index
    %88 = vector.load %arg5[%c8_93, %c0_94] : memref<40x648xf32, #tpu.memory_space<vmem>>, vector<1x178xf32>
    %89 = vector.broadcast %88 : vector<1x178xf32> to vector<8x178xf32>
    %90 = arith.mulf %87, %89 : vector<8x178xf32>
    %c0_95 = arith.constant 0 : index
    %c11_96 = arith.constant 11 : index
    %91 = vector.load %arg10[%c0_95, %c11_96] : memref<8x200xf32, #tpu.memory_space<vmem>>, vector<8x178xf32>
    tpu.vector_store %arg10[%c0_95, %c11_96], %90 {strides = array<i32>} : memref<8x200xf32, #tpu.memory_space<vmem>>, vector<8x178xf32>,
    %c0_97 = arith.constant 0 : index
    %c0_98 = arith.constant 0 : index
    %92 = vector.load %arg10[%c0_97, %c0_98] : memref<8x200xf32, #tpu.memory_space<vmem>>, vector<8x178xf32>
    %c0_99 = arith.constant 0 : index
    %c0_100 = arith.constant 0 : index
    %93 = vector.load %arg16[%c0_99, %c0_100] : memref<432x178xf32, #tpu.memory_space<vmem>>, vector<8x178xf32>
    tpu.vector_store %arg16[%c0_99, %c0_100], %92 {strides = array<i32>} : memref<432x178xf32, #tpu.memory_space<vmem>>, vector<8x178xf32>,
    %c0_101 = arith.constant 0 : index
    %c1_102 = arith.constant 1 : index
    %94 = vector.load %arg10[%c0_101, %c1_102] : memref<8x200xf32, #tpu.memory_space<vmem>>, vector<8x178xf32>
    %c8_103 = arith.constant 8 : index
    %c0_104 = arith.constant 0 : index
    %95 = vector.load %arg16[%c8_103, %c0_104] : memref<432x178xf32, #tpu.memory_space<vmem>>, vector<8x178xf32>
    tpu.vector_store %arg16[%c8_103, %c0_104], %94 {strides = array<i32>} : memref<432x178xf32, #tpu.memory_space<vmem>>, vector<8x178xf32>,
    %c0_105 = arith.constant 0 : index
    %c2_106 = arith.constant 2 : index
    %96 = vector.load %arg10[%c0_105, %c2_106] : memref<8x200xf32, #tpu.memory_space<vmem>>, vector<8x178xf32>
    %c16_107 = arith.constant 16 : index
    %c0_108 = arith.constant 0 : index
    %97 = vector.load %arg16[%c16_107, %c0_108] : memref<432x178xf32, #tpu.memory_space<vmem>>, vector<8x178xf32>
    tpu.vector_store %arg16[%c16_107, %c0_108], %96 {strides = array<i32>} : memref<432x178xf32, #tpu.memory_space<vmem>>, vector<8x178xf32>,
    %c0_109 = arith.constant 0 : index
    %c10_110 = arith.constant 10 : index
    %98 = vector.load %arg10[%c0_109, %c10_110] : memref<8x200xf32, #tpu.memory_space<vmem>>, vector<8x178xf32>
    %c24_111 = arith.constant 24 : index
    %c0_112 = arith.constant 0 : index
    %99 = vector.load %arg16[%c24_111, %c0_112] : memref<432x178xf32, #tpu.memory_space<vmem>>, vector<8x178xf32>
    tpu.vector_store %arg16[%c24_111, %c0_112], %98 {strides = array<i32>} : memref<432x178xf32, #tpu.memory_space<vmem>>, vector<8x178xf32>,
    %c0_113 = arith.constant 0 : index
    %c11_114 = arith.constant 11 : index
    %100 = vector.load %arg10[%c0_113, %c11_114] : memref<8x200xf32, #tpu.memory_space<vmem>>, vector<8x178xf32>
    %c32_115 = arith.constant 32 : index
    %c0_116 = arith.constant 0 : index
    %101 = vector.load %arg16[%c32_115, %c0_116] : memref<432x178xf32, #tpu.memory_space<vmem>>, vector<8x178xf32>
    tpu.vector_store %arg16[%c32_115, %c0_116], %100 {strides = array<i32>} : memref<432x178xf32, #tpu.memory_space<vmem>>, vector<8x178xf32>,
    %c0_117 = arith.constant 0 : index
    %c12_118 = arith.constant 12 : index
    %102 = vector.load %arg10[%c0_117, %c12_118] : memref<8x200xf32, #tpu.memory_space<vmem>>, vector<8x178xf32>
    %c40_119 = arith.constant 40 : index
    %c0_120 = arith.constant 0 : index
    %103 = vector.load %arg16[%c40_119, %c0_120] : memref<432x178xf32, #tpu.memory_space<vmem>>, vector<8x178xf32>
    tpu.vector_store %arg16[%c40_119, %c0_120], %102 {strides = array<i32>} : memref<432x178xf32, #tpu.memory_space<vmem>>, vector<8x178xf32>,
    %c0_121 = arith.constant 0 : index
    %c20_122 = arith.constant 20 : index
    %104 = vector.load %arg10[%c0_121, %c20_122] : memref<8x200xf32, #tpu.memory_space<vmem>>, vector<8x178xf32>
    %c48_123 = arith.constant 48 : index
    %c0_124 = arith.constant 0 : index
    %105 = vector.load %arg16[%c48_123, %c0_124] : memref<432x178xf32, #tpu.memory_space<vmem>>, vector<8x178xf32>
    tpu.vector_store %arg16[%c48_123, %c0_124], %104 {strides = array<i32>} : memref<432x178xf32, #tpu.memory_space<vmem>>, vector<8x178xf32>,
    %c0_125 = arith.constant 0 : index
    %c21_126 = arith.constant 21 : index
    %106 = vector.load %arg10[%c0_125, %c21_126] : memref<8x200xf32, #tpu.memory_space<vmem>>, vector<8x178xf32>
    %c56_127 = arith.constant 56 : index
    %c0_128 = arith.constant 0 : index
    %107 = vector.load %arg16[%c56_127, %c0_128] : memref<432x178xf32, #tpu.memory_space<vmem>>, vector<8x178xf32>
    tpu.vector_store %arg16[%c56_127, %c0_128], %106 {strides = array<i32>} : memref<432x178xf32, #tpu.memory_space<vmem>>, vector<8x178xf32>,
    %c0_129 = arith.constant 0 : index
    %c22_130 = arith.constant 22 : index
    %108 = vector.load %arg10[%c0_129, %c22_130] : memref<8x200xf32, #tpu.memory_space<vmem>>, vector<8x178xf32>
    %c64_131 = arith.constant 64 : index
    %c0_132 = arith.constant 0 : index
    %109 = vector.load %arg16[%c64_131, %c0_132] : memref<432x178xf32, #tpu.memory_space<vmem>>, vector<8x178xf32>
    tpu.vector_store %arg16[%c64_131, %c0_132], %108 {strides = array<i32>} : memref<432x178xf32, #tpu.memory_space<vmem>>, vector<8x178xf32>,
    %c0_133 = arith.constant 0 : index
    %c384 = arith.constant 384 : index
    %110 = vector.load %arg1[%c0_133, %c384] : memref<48x2688xbf16, #tpu.memory_space<vmem>>, vector<8x72xbf16>
    %c0_134 = arith.constant 0 : index
    %c0_135 = arith.constant 0 : index
    %111 = vector.load %arg16[%c0_134, %c0_135] : memref<432x178xf32, #tpu.memory_space<vmem>>, vector<72x178xf32>
    %112 = arith.truncf %111 : vector<72x178xf32> to vector<72x178xbf16>
    %cst_136 = arith.constant dense<0.000000e+00> : vector<8x178xf32>
    %113 = tpu.matmul %110, %112, %cst_136 {dimension_numbers = #tpu.dot_dimension_numbers<[1], [0], [0], [1], [0, 0, 1, 1], [], []>} : vector<8x72xbf16>, vector<72x178xbf16>, vector<8x178xf32> -> vector<8x178xf32>
    %c0_137 = arith.constant 0 : index
    %c2_138 = arith.constant 2 : index
    %114 = vector.load %arg2[%c0_137, %c2_138] : memref<48x16xf32, #tpu.memory_space<vmem>>, vector<8x1xf32>
    %115 = vector.broadcast %114 : vector<8x1xf32> to vector<8x178xf32>
    %116 = arith.addf %113, %115 : vector<8x178xf32>
    %c0_139 = arith.constant 0 : index
    %c11_140 = arith.constant 11 : index
    %117 = vector.load %arg9[%c0_139, %c11_140] : memref<8x200xf32, #tpu.memory_space<vmem>>, vector<8x178xf32>
    %118 = arith.addf %116, %117 : vector<8x178xf32>
    %cst_141 = arith.constant 0.000000e+00 : f32
    %119 = vector.broadcast %cst_141 : f32 to vector<8x178xf32>
    %120 = arith.maximumf %118, %119 : vector<8x178xf32>
    %c8_142 = arith.constant 8 : index
    %c0_143 = arith.constant 0 : index
    %121 = vector.load %arg5[%c8_142, %c0_143] : memref<40x648xf32, #tpu.memory_space<vmem>>, vector<1x178xf32>
    %122 = vector.broadcast %121 : vector<1x178xf32> to vector<8x178xf32>
    %123 = arith.mulf %120, %122 : vector<8x178xf32>
    %c0_144 = arith.constant 0 : index
    %c11_145 = arith.constant 11 : index
    %124 = vector.load %arg9[%c0_144, %c11_145] : memref<8x200xf32, #tpu.memory_space<vmem>>, vector<8x178xf32>
    tpu.vector_store %arg9[%c0_144, %c11_145], %123 {strides = array<i32>} : memref<8x200xf32, #tpu.memory_space<vmem>>, vector<8x178xf32>,
    %c0_146 = arith.constant 0 : index
    %c0_147 = arith.constant 0 : index
    %125 = vector.load %arg9[%c0_146, %c0_147] : memref<8x200xf32, #tpu.memory_space<vmem>>, vector<8x178xf32>
    %c0_148 = arith.constant 0 : index
    %c0_149 = arith.constant 0 : index
    %126 = vector.load %arg16[%c0_148, %c0_149] : memref<432x178xf32, #tpu.memory_space<vmem>>, vector<8x178xf32>
    tpu.vector_store %arg16[%c0_148, %c0_149], %125 {strides = array<i32>} : memref<432x178xf32, #tpu.memory_space<vmem>>, vector<8x178xf32>,
    %c0_150 = arith.constant 0 : index
    %c1_151 = arith.constant 1 : index
    %127 = vector.load %arg9[%c0_150, %c1_151] : memref<8x200xf32, #tpu.memory_space<vmem>>, vector<8x178xf32>
    %c8_152 = arith.constant 8 : index
    %c0_153 = arith.constant 0 : index
    %128 = vector.load %arg16[%c8_152, %c0_153] : memref<432x178xf32, #tpu.memory_space<vmem>>, vector<8x178xf32>
    tpu.vector_store %arg16[%c8_152, %c0_153], %127 {strides = array<i32>} : memref<432x178xf32, #tpu.memory_space<vmem>>, vector<8x178xf32>,
    %c0_154 = arith.constant 0 : index
    %c2_155 = arith.constant 2 : index
    %129 = vector.load %arg9[%c0_154, %c2_155] : memref<8x200xf32, #tpu.memory_space<vmem>>, vector<8x178xf32>
    %c16_156 = arith.constant 16 : index
    %c0_157 = arith.constant 0 : index
    %130 = vector.load %arg16[%c16_156, %c0_157] : memref<432x178xf32, #tpu.memory_space<vmem>>, vector<8x178xf32>
    tpu.vector_store %arg16[%c16_156, %c0_157], %129 {strides = array<i32>} : memref<432x178xf32, #tpu.memory_space<vmem>>, vector<8x178xf32>,
    %c0_158 = arith.constant 0 : index
    %c10_159 = arith.constant 10 : index
    %131 = vector.load %arg9[%c0_158, %c10_159] : memref<8x200xf32, #tpu.memory_space<vmem>>, vector<8x178xf32>
    %c24_160 = arith.constant 24 : index
    %c0_161 = arith.constant 0 : index
    %132 = vector.load %arg16[%c24_160, %c0_161] : memref<432x178xf32, #tpu.memory_space<vmem>>, vector<8x178xf32>
    tpu.vector_store %arg16[%c24_160, %c0_161], %131 {strides = array<i32>} : memref<432x178xf32, #tpu.memory_space<vmem>>, vector<8x178xf32>,
    %c0_162 = arith.constant 0 : index
    %c11_163 = arith.constant 11 : index
    %133 = vector.load %arg9[%c0_162, %c11_163] : memref<8x200xf32, #tpu.memory_space<vmem>>, vector<8x178xf32>
    %c32_164 = arith.constant 32 : index
    %c0_165 = arith.constant 0 : index
    %134 = vector.load %arg16[%c32_164, %c0_165] : memref<432x178xf32, #tpu.memory_space<vmem>>, vector<8x178xf32>
    tpu.vector_store %arg16[%c32_164, %c0_165], %133 {strides = array<i32>} : memref<432x178xf32, #tpu.memory_space<vmem>>, vector<8x178xf32>,
    %c0_166 = arith.constant 0 : index
    %c12_167 = arith.constant 12 : index
    %135 = vector.load %arg9[%c0_166, %c12_167] : memref<8x200xf32, #tpu.memory_space<vmem>>, vector<8x178xf32>
    %c40_168 = arith.constant 40 : index
    %c0_169 = arith.constant 0 : index
    %136 = vector.load %arg16[%c40_168, %c0_169] : memref<432x178xf32, #tpu.memory_space<vmem>>, vector<8x178xf32>
    tpu.vector_store %arg16[%c40_168, %c0_169], %135 {strides = array<i32>} : memref<432x178xf32, #tpu.memory_space<vmem>>, vector<8x178xf32>,
    %c0_170 = arith.constant 0 : index
    %c20_171 = arith.constant 20 : index
    %137 = vector.load %arg9[%c0_170, %c20_171] : memref<8x200xf32, #tpu.memory_space<vmem>>, vector<8x178xf32>
    %c48_172 = arith.constant 48 : index
    %c0_173 = arith.constant 0 : index
    %138 = vector.load %arg16[%c48_172, %c0_173] : memref<432x178xf32, #tpu.memory_space<vmem>>, vector<8x178xf32>
    tpu.vector_store %arg16[%c48_172, %c0_173], %137 {strides = array<i32>} : memref<432x178xf32, #tpu.memory_space<vmem>>, vector<8x178xf32>,
    %c0_174 = arith.constant 0 : index
    %c21_175 = arith.constant 21 : index
    %139 = vector.load %arg9[%c0_174, %c21_175] : memref<8x200xf32, #tpu.memory_space<vmem>>, vector<8x178xf32>
    %c56_176 = arith.constant 56 : index
    %c0_177 = arith.constant 0 : index
    %140 = vector.load %arg16[%c56_176, %c0_177] : memref<432x178xf32, #tpu.memory_space<vmem>>, vector<8x178xf32>
    tpu.vector_store %arg16[%c56_176, %c0_177], %139 {strides = array<i32>} : memref<432x178xf32, #tpu.memory_space<vmem>>, vector<8x178xf32>,
    %c0_178 = arith.constant 0 : index
    %c22_179 = arith.constant 22 : index
    %141 = vector.load %arg9[%c0_178, %c22_179] : memref<8x200xf32, #tpu.memory_space<vmem>>, vector<8x178xf32>
    %c64_180 = arith.constant 64 : index
    %c0_181 = arith.constant 0 : index
    %142 = vector.load %arg16[%c64_180, %c0_181] : memref<432x178xf32, #tpu.memory_space<vmem>>, vector<8x178xf32>
    tpu.vector_store %arg16[%c64_180, %c0_181], %141 {strides = array<i32>} : memref<432x178xf32, #tpu.memory_space<vmem>>, vector<8x178xf32>,
    %c0_182 = arith.constant 0 : index
    %c512 = arith.constant 512 : index
    %143 = vector.load %arg1[%c0_182, %c512] : memref<48x2688xbf16, #tpu.memory_space<vmem>>, vector<16x72xbf16>
    %c0_183 = arith.constant 0 : index
    %c0_184 = arith.constant 0 : index
    %144 = vector.load %arg16[%c0_183, %c0_184] : memref<432x178xf32, #tpu.memory_space<vmem>>, vector<72x178xf32>
    %145 = arith.truncf %144 : vector<72x178xf32> to vector<72x178xbf16>
    %cst_185 = arith.constant dense<0.000000e+00> : vector<16x178xf32>
    %146 = tpu.matmul %143, %145, %cst_185 {dimension_numbers = #tpu.dot_dimension_numbers<[1], [0], [0], [1], [0, 0, 1, 1], [], []>} : vector<16x72xbf16>, vector<72x178xbf16>, vector<16x178xf32> -> vector<16x178xf32>
    %c0_186 = arith.constant 0 : index
    %c3 = arith.constant 3 : index
    %147 = vector.load %arg2[%c0_186, %c3] : memref<48x16xf32, #tpu.memory_space<vmem>>, vector<16x1xf32>
    %148 = vector.broadcast %147 : vector<16x1xf32> to vector<16x178xf32>
    %149 = arith.addf %146, %148 : vector<16x178xf32>
    %cst_187 = arith.constant 0.000000e+00 : f32
    %150 = vector.broadcast %cst_187 : f32 to vector<16x178xf32>
    %151 = arith.maximumf %149, %150 : vector<16x178xf32>
    %c0_188 = arith.constant 0 : index
    %c896 = arith.constant 896 : index
    %152 = vector.load %arg1[%c0_188, %c896] : memref<48x2688xbf16, #tpu.memory_space<vmem>>, vector<16x8xbf16>
    %c0_189 = arith.constant 0 : index
    %c11_190 = arith.constant 11 : index
    %153 = vector.load %arg9[%c0_189, %c11_190] : memref<8x200xf32, #tpu.memory_space<vmem>>, vector<8x178xf32>
    %154 = arith.truncf %153 : vector<8x178xf32> to vector<8x178xbf16>
    %cst_191 = arith.constant dense<0.000000e+00> : vector<16x178xf32>
    %155 = tpu.matmul %152, %154, %cst_191 {dimension_numbers = #tpu.dot_dimension_numbers<[1], [0], [0], [1], [0, 0, 1, 1], [], []>} : vector<16x8xbf16>, vector<8x178xbf16>, vector<16x178xf32> -> vector<16x178xf32>
    %c0_192 = arith.constant 0 : index
    %c5 = arith.constant 5 : index
    %156 = vector.load %arg2[%c0_192, %c5] : memref<48x16xf32, #tpu.memory_space<vmem>>, vector<16x1xf32>
    %157 = vector.broadcast %156 : vector<16x1xf32> to vector<16x178xf32>
    %158 = arith.addf %155, %157 : vector<16x178xf32>
    %159 = tpu.concatenate %151, %158 in 0 : vector<16x178xf32>, vector<16x178xf32> -> vector<32x178xf32>
    %160 = arith.truncf %159 : vector<32x178xf32> to vector<32x178xbf16>
    %c0_193 = arith.constant 0 : index
    %c0_194 = arith.constant 0 : index
    %161 = vector.load %arg4[%c0_193, %c0_194] : memref<304x58xbf16, #tpu.memory_space<vmem>>, vector<178x58xbf16>
    %cst_195 = arith.constant dense<0.000000e+00> : vector<32x58xf32>
    %162 = tpu.matmul %160, %161, %cst_195 {dimension_numbers = #tpu.dot_dimension_numbers<[1], [0], [0], [1], [0, 0, 1, 1], [], []>} : vector<32x178xbf16>, vector<178x58xbf16>, vector<32x58xf32> -> vector<32x58xf32>
    %163 = vector.extract_strided_slice %162 {offsets = [0, 0], sizes = [16, 58], strides = [1, 1]} : vector<32x58xf32> to vector<16x58xf32>
    %c0_196 = arith.constant 0 : index
    %c7 = arith.constant 7 : index
    %164 = vector.load %arg11[%c0_196, %c7] : memref<16x72xf32, #tpu.memory_space<vmem>>, vector<16x58xf32>
    tpu.vector_store %arg11[%c0_196, %c7], %163 {strides = array<i32>} : memref<16x72xf32, #tpu.memory_space<vmem>>, vector<16x58xf32>,
    %c0_197 = arith.constant 0 : index
    %c0_198 = arith.constant 0 : index
    %165 = vector.load %arg11[%c0_197, %c0_198] : memref<16x72xf32, #tpu.memory_space<vmem>>, vector<16x58xf32>
    %c0_199 = arith.constant 0 : index
    %c0_200 = arith.constant 0 : index
    %166 = vector.load %arg16[%c0_199, %c0_200] : memref<432x178xf32, #tpu.memory_space<vmem>>, vector<16x58xf32>
    tpu.vector_store %arg16[%c0_199, %c0_200], %165 {strides = array<i32>} : memref<432x178xf32, #tpu.memory_space<vmem>>, vector<16x58xf32>,
    %c0_201 = arith.constant 0 : index
    %c1_202 = arith.constant 1 : index
    %167 = vector.load %arg11[%c0_201, %c1_202] : memref<16x72xf32, #tpu.memory_space<vmem>>, vector<16x58xf32>
    %c16_203 = arith.constant 16 : index
    %c0_204 = arith.constant 0 : index
    %168 = vector.load %arg16[%c16_203, %c0_204] : memref<432x178xf32, #tpu.memory_space<vmem>>, vector<16x58xf32>
    tpu.vector_store %arg16[%c16_203, %c0_204], %167 {strides = array<i32>} : memref<432x178xf32, #tpu.memory_space<vmem>>, vector<16x58xf32>,
    %c0_205 = arith.constant 0 : index
    %c2_206 = arith.constant 2 : index
    %169 = vector.load %arg11[%c0_205, %c2_206] : memref<16x72xf32, #tpu.memory_space<vmem>>, vector<16x58xf32>
    %c32_207 = arith.constant 32 : index
    %c0_208 = arith.constant 0 : index
    %170 = vector.load %arg16[%c32_207, %c0_208] : memref<432x178xf32, #tpu.memory_space<vmem>>, vector<16x58xf32>
    tpu.vector_store %arg16[%c32_207, %c0_208], %169 {strides = array<i32>} : memref<432x178xf32, #tpu.memory_space<vmem>>, vector<16x58xf32>,
    %c0_209 = arith.constant 0 : index
    %c6 = arith.constant 6 : index
    %171 = vector.load %arg11[%c0_209, %c6] : memref<16x72xf32, #tpu.memory_space<vmem>>, vector<16x58xf32>
    %c48_210 = arith.constant 48 : index
    %c0_211 = arith.constant 0 : index
    %172 = vector.load %arg16[%c48_210, %c0_211] : memref<432x178xf32, #tpu.memory_space<vmem>>, vector<16x58xf32>
    tpu.vector_store %arg16[%c48_210, %c0_211], %171 {strides = array<i32>} : memref<432x178xf32, #tpu.memory_space<vmem>>, vector<16x58xf32>,
    %c0_212 = arith.constant 0 : index
    %c7_213 = arith.constant 7 : index
    %173 = vector.load %arg11[%c0_212, %c7_213] : memref<16x72xf32, #tpu.memory_space<vmem>>, vector<16x58xf32>
    %c64_214 = arith.constant 64 : index
    %c0_215 = arith.constant 0 : index
    %174 = vector.load %arg16[%c64_214, %c0_215] : memref<432x178xf32, #tpu.memory_space<vmem>>, vector<16x58xf32>
    tpu.vector_store %arg16[%c64_214, %c0_215], %173 {strides = array<i32>} : memref<432x178xf32, #tpu.memory_space<vmem>>, vector<16x58xf32>,
    %c0_216 = arith.constant 0 : index
    %c8_217 = arith.constant 8 : index
    %175 = vector.load %arg11[%c0_216, %c8_217] : memref<16x72xf32, #tpu.memory_space<vmem>>, vector<16x58xf32>
    %c80 = arith.constant 80 : index
    %c0_218 = arith.constant 0 : index
    %176 = vector.load %arg16[%c80, %c0_218] : memref<432x178xf32, #tpu.memory_space<vmem>>, vector<16x58xf32>
    tpu.vector_store %arg16[%c80, %c0_218], %175 {strides = array<i32>} : memref<432x178xf32, #tpu.memory_space<vmem>>, vector<16x58xf32>,
    %c0_219 = arith.constant 0 : index
    %c12_220 = arith.constant 12 : index
    %177 = vector.load %arg11[%c0_219, %c12_220] : memref<16x72xf32, #tpu.memory_space<vmem>>, vector<16x58xf32>
    %c96 = arith.constant 96 : index
    %c0_221 = arith.constant 0 : index
    %178 = vector.load %arg16[%c96, %c0_221] : memref<432x178xf32, #tpu.memory_space<vmem>>, vector<16x58xf32>
    tpu.vector_store %arg16[%c96, %c0_221], %177 {strides = array<i32>} : memref<432x178xf32, #tpu.memory_space<vmem>>, vector<16x58xf32>,
    %c0_222 = arith.constant 0 : index
    %c13 = arith.constant 13 : index
    %179 = vector.load %arg11[%c0_222, %c13] : memref<16x72xf32, #tpu.memory_space<vmem>>, vector<16x58xf32>
    %c112 = arith.constant 112 : index
    %c0_223 = arith.constant 0 : index
    %180 = vector.load %arg16[%c112, %c0_223] : memref<432x178xf32, #tpu.memory_space<vmem>>, vector<16x58xf32>
    tpu.vector_store %arg16[%c112, %c0_223], %179 {strides = array<i32>} : memref<432x178xf32, #tpu.memory_space<vmem>>, vector<16x58xf32>,
    %c0_224 = arith.constant 0 : index
    %c14_225 = arith.constant 14 : index
    %181 = vector.load %arg11[%c0_224, %c14_225] : memref<16x72xf32, #tpu.memory_space<vmem>>, vector<16x58xf32>
    %c128 = arith.constant 128 : index
    %c0_226 = arith.constant 0 : index
    %182 = vector.load %arg16[%c128, %c0_226] : memref<432x178xf32, #tpu.memory_space<vmem>>, vector<16x58xf32>
    tpu.vector_store %arg16[%c128, %c0_226], %181 {strides = array<i32>} : memref<432x178xf32, #tpu.memory_space<vmem>>, vector<16x58xf32>,
    %c0_227 = arith.constant 0 : index
    %c640 = arith.constant 640 : index
    %183 = vector.load %arg1[%c0_227, %c640] : memref<48x2688xbf16, #tpu.memory_space<vmem>>, vector<16x144xbf16>
    %c0_228 = arith.constant 0 : index
    %c0_229 = arith.constant 0 : index
    %184 = vector.load %arg16[%c0_228, %c0_229] : memref<432x178xf32, #tpu.memory_space<vmem>>, vector<144x58xf32>
    %185 = arith.truncf %184 : vector<144x58xf32> to vector<144x58xbf16>
    %cst_230 = arith.constant dense<0.000000e+00> : vector<16x58xf32>
    %186 = tpu.matmul %183, %185, %cst_230 {dimension_numbers = #tpu.dot_dimension_numbers<[1], [0], [0], [1], [0, 0, 1, 1], [], []>} : vector<16x144xbf16>, vector<144x58xbf16>, vector<16x58xf32> -> vector<16x58xf32>
    %c0_231 = arith.constant 0 : index
    %c4 = arith.constant 4 : index
    %187 = vector.load %arg2[%c0_231, %c4] : memref<48x16xf32, #tpu.memory_space<vmem>>, vector<16x1xf32>
    %188 = vector.broadcast %187 : vector<16x1xf32> to vector<16x58xf32>
    %189 = arith.addf %186, %188 : vector<16x58xf32>
    %190 = vector.extract_strided_slice %162 {offsets = [16, 0], sizes = [16, 58], strides = [1, 1]} : vector<32x58xf32> to vector<16x58xf32>
    %191 = arith.addf %189, %190 : vector<16x58xf32>
    %cst_232 = arith.constant 0.000000e+00 : f32
    %192 = vector.broadcast %cst_232 : f32 to vector<16x58xf32>
    %193 = arith.maximumf %191, %192 : vector<16x58xf32>
    %c16_233 = arith.constant 16 : index
    %c0_234 = arith.constant 0 : index
    %194 = vector.load %arg5[%c16_233, %c0_234] : memref<40x648xf32, #tpu.memory_space<vmem>>, vector<1x58xf32>
    %195 = vector.broadcast %194 : vector<1x58xf32> to vector<16x58xf32>
    %196 = arith.mulf %193, %195 : vector<16x58xf32>
    %c0_235 = arith.constant 0 : index
    %c7_236 = arith.constant 7 : index
    %197 = vector.load %arg12[%c0_235, %c7_236] : memref<16x72xf32, #tpu.memory_space<vmem>>, vector<16x58xf32>
    tpu.vector_store %arg12[%c0_235, %c7_236], %196 {strides = array<i32>} : memref<16x72xf32, #tpu.memory_space<vmem>>, vector<16x58xf32>,
    %c0_237 = arith.constant 0 : index
    %c0_238 = arith.constant 0 : index
    %198 = vector.load %arg12[%c0_237, %c0_238] : memref<16x72xf32, #tpu.memory_space<vmem>>, vector<16x58xf32>
    %c0_239 = arith.constant 0 : index
    %c0_240 = arith.constant 0 : index
    %199 = vector.load %arg16[%c0_239, %c0_240] : memref<432x178xf32, #tpu.memory_space<vmem>>, vector<16x58xf32>
    tpu.vector_store %arg16[%c0_239, %c0_240], %198 {strides = array<i32>} : memref<432x178xf32, #tpu.memory_space<vmem>>, vector<16x58xf32>,
    %c0_241 = arith.constant 0 : index
    %c1_242 = arith.constant 1 : index
    %200 = vector.load %arg12[%c0_241, %c1_242] : memref<16x72xf32, #tpu.memory_space<vmem>>, vector<16x58xf32>
    %c16_243 = arith.constant 16 : index
    %c0_244 = arith.constant 0 : index
    %201 = vector.load %arg16[%c16_243, %c0_244] : memref<432x178xf32, #tpu.memory_space<vmem>>, vector<16x58xf32>
    tpu.vector_store %arg16[%c16_243, %c0_244], %200 {strides = array<i32>} : memref<432x178xf32, #tpu.memory_space<vmem>>, vector<16x58xf32>,
    %c0_245 = arith.constant 0 : index
    %c2_246 = arith.constant 2 : index
    %202 = vector.load %arg12[%c0_245, %c2_246] : memref<16x72xf32, #tpu.memory_space<vmem>>, vector<16x58xf32>
    %c32_247 = arith.constant 32 : index
    %c0_248 = arith.constant 0 : index
    %203 = vector.load %arg16[%c32_247, %c0_248] : memref<432x178xf32, #tpu.memory_space<vmem>>, vector<16x58xf32>
    tpu.vector_store %arg16[%c32_247, %c0_248], %202 {strides = array<i32>} : memref<432x178xf32, #tpu.memory_space<vmem>>, vector<16x58xf32>,
    %c0_249 = arith.constant 0 : index
    %c6_250 = arith.constant 6 : index
    %204 = vector.load %arg12[%c0_249, %c6_250] : memref<16x72xf32, #tpu.memory_space<vmem>>, vector<16x58xf32>
    %c48_251 = arith.constant 48 : index
    %c0_252 = arith.constant 0 : index
    %205 = vector.load %arg16[%c48_251, %c0_252] : memref<432x178xf32, #tpu.memory_space<vmem>>, vector<16x58xf32>
    tpu.vector_store %arg16[%c48_251, %c0_252], %204 {strides = array<i32>} : memref<432x178xf32, #tpu.memory_space<vmem>>, vector<16x58xf32>,
    %c0_253 = arith.constant 0 : index
    %c7_254 = arith.constant 7 : index
    %206 = vector.load %arg12[%c0_253, %c7_254] : memref<16x72xf32, #tpu.memory_space<vmem>>, vector<16x58xf32>
    %c64_255 = arith.constant 64 : index
    %c0_256 = arith.constant 0 : index
    %207 = vector.load %arg16[%c64_255, %c0_256] : memref<432x178xf32, #tpu.memory_space<vmem>>, vector<16x58xf32>
    tpu.vector_store %arg16[%c64_255, %c0_256], %206 {strides = array<i32>} : memref<432x178xf32, #tpu.memory_space<vmem>>, vector<16x58xf32>,
    %c0_257 = arith.constant 0 : index
    %c8_258 = arith.constant 8 : index
    %208 = vector.load %arg12[%c0_257, %c8_258] : memref<16x72xf32, #tpu.memory_space<vmem>>, vector<16x58xf32>
    %c80_259 = arith.constant 80 : index
    %c0_260 = arith.constant 0 : index
    %209 = vector.load %arg16[%c80_259, %c0_260] : memref<432x178xf32, #tpu.memory_space<vmem>>, vector<16x58xf32>
    tpu.vector_store %arg16[%c80_259, %c0_260], %208 {strides = array<i32>} : memref<432x178xf32, #tpu.memory_space<vmem>>, vector<16x58xf32>,
    %c0_261 = arith.constant 0 : index
    %c12_262 = arith.constant 12 : index
    %210 = vector.load %arg12[%c0_261, %c12_262] : memref<16x72xf32, #tpu.memory_space<vmem>>, vector<16x58xf32>
    %c96_263 = arith.constant 96 : index
    %c0_264 = arith.constant 0 : index
    %211 = vector.load %arg16[%c96_263, %c0_264] : memref<432x178xf32, #tpu.memory_space<vmem>>, vector<16x58xf32>
    tpu.vector_store %arg16[%c96_263, %c0_264], %210 {strides = array<i32>} : memref<432x178xf32, #tpu.memory_space<vmem>>, vector<16x58xf32>,
    %c0_265 = arith.constant 0 : index
    %c13_266 = arith.constant 13 : index
    %212 = vector.load %arg12[%c0_265, %c13_266] : memref<16x72xf32, #tpu.memory_space<vmem>>, vector<16x58xf32>
    %c112_267 = arith.constant 112 : index
    %c0_268 = arith.constant 0 : index
    %213 = vector.load %arg16[%c112_267, %c0_268] : memref<432x178xf32, #tpu.memory_space<vmem>>, vector<16x58xf32>
    tpu.vector_store %arg16[%c112_267, %c0_268], %212 {strides = array<i32>} : memref<432x178xf32, #tpu.memory_space<vmem>>, vector<16x58xf32>,
    %c0_269 = arith.constant 0 : index
    %c14_270 = arith.constant 14 : index
    %214 = vector.load %arg12[%c0_269, %c14_270] : memref<16x72xf32, #tpu.memory_space<vmem>>, vector<16x58xf32>
    %c128_271 = arith.constant 128 : index
    %c0_272 = arith.constant 0 : index
    %215 = vector.load %arg16[%c128_271, %c0_272] : memref<432x178xf32, #tpu.memory_space<vmem>>, vector<16x58xf32>
    tpu.vector_store %arg16[%c128_271, %c0_272], %214 {strides = array<i32>} : memref<432x178xf32, #tpu.memory_space<vmem>>, vector<16x58xf32>,
    %c0_273 = arith.constant 0 : index
    %c1024 = arith.constant 1024 : index
    %216 = vector.load %arg1[%c0_273, %c1024] : memref<48x2688xbf16, #tpu.memory_space<vmem>>, vector<24x144xbf16>
    %c0_274 = arith.constant 0 : index
    %c0_275 = arith.constant 0 : index
    %217 = vector.load %arg16[%c0_274, %c0_275] : memref<432x178xf32, #tpu.memory_space<vmem>>, vector<144x58xf32>
    %218 = arith.truncf %217 : vector<144x58xf32> to vector<144x58xbf16>
    %cst_276 = arith.constant dense<0.000000e+00> : vector<24x58xf32>
    %219 = tpu.matmul %216, %218, %cst_276 {dimension_numbers = #tpu.dot_dimension_numbers<[1], [0], [0], [1], [0, 0, 1, 1], [], []>} : vector<24x144xbf16>, vector<144x58xbf16>, vector<24x58xf32> -> vector<24x58xf32>
    %c0_277 = arith.constant 0 : index
    %c6_278 = arith.constant 6 : index
    %220 = vector.load %arg2[%c0_277, %c6_278] : memref<48x16xf32, #tpu.memory_space<vmem>>, vector<24x1xf32>
    %221 = vector.broadcast %220 : vector<24x1xf32> to vector<24x58xf32>
    %222 = arith.addf %219, %221 : vector<24x58xf32>
    %cst_279 = arith.constant 0.000000e+00 : f32
    %223 = vector.broadcast %cst_279 : f32 to vector<24x58xf32>
    %224 = arith.maximumf %222, %223 : vector<24x58xf32>
    %c0_280 = arith.constant 0 : index
    %c1536 = arith.constant 1536 : index
    %225 = vector.load %arg1[%c0_280, %c1536] : memref<48x2688xbf16, #tpu.memory_space<vmem>>, vector<24x16xbf16>
    %c0_281 = arith.constant 0 : index
    %c7_282 = arith.constant 7 : index
    %226 = vector.load %arg12[%c0_281, %c7_282] : memref<16x72xf32, #tpu.memory_space<vmem>>, vector<16x58xf32>
    %227 = arith.truncf %226 : vector<16x58xf32> to vector<16x58xbf16>
    %cst_283 = arith.constant dense<0.000000e+00> : vector<24x58xf32>
    %228 = tpu.matmul %225, %227, %cst_283 {dimension_numbers = #tpu.dot_dimension_numbers<[1], [0], [0], [1], [0, 0, 1, 1], [], []>} : vector<24x16xbf16>, vector<16x58xbf16>, vector<24x58xf32> -> vector<24x58xf32>
    %c0_284 = arith.constant 0 : index
    %c8_285 = arith.constant 8 : index
    %229 = vector.load %arg2[%c0_284, %c8_285] : memref<48x16xf32, #tpu.memory_space<vmem>>, vector<24x1xf32>
    %230 = vector.broadcast %229 : vector<24x1xf32> to vector<24x58xf32>
    %231 = arith.addf %228, %230 : vector<24x58xf32>
    %232 = tpu.concatenate %224, %231 in 0 : vector<24x58xf32>, vector<24x58xf32> -> vector<48x58xf32>
    %233 = arith.truncf %232 : vector<48x58xf32> to vector<48x58xbf16>
    %c192 = arith.constant 192 : index
    %c0_286 = arith.constant 0 : index
    %234 = vector.load %arg4[%c192, %c0_286] : memref<304x58xbf16, #tpu.memory_space<vmem>>, vector<58x22xbf16>
    %cst_287 = arith.constant dense<0.000000e+00> : vector<48x22xf32>
    %235 = tpu.matmul %233, %234, %cst_287 {dimension_numbers = #tpu.dot_dimension_numbers<[1], [0], [0], [1], [0, 0, 1, 1], [], []>} : vector<48x58xbf16>, vector<58x22xbf16>, vector<48x22xf32> -> vector<48x22xf32>
    %236 = vector.extract_strided_slice %235 {offsets = [0, 0], sizes = [24, 22], strides = [1, 1]} : vector<48x22xf32> to vector<24x22xf32>
    %c0_288 = arith.constant 0 : index
    %c5_289 = arith.constant 5 : index
    %237 = vector.load %arg13[%c0_288, %c5_289] : memref<24x32xf32, #tpu.memory_space<vmem>>, vector<24x22xf32>
    tpu.vector_store %arg13[%c0_288, %c5_289], %236 {strides = array<i32>} : memref<24x32xf32, #tpu.memory_space<vmem>>, vector<24x22xf32>,
    %c0_290 = arith.constant 0 : index
    %c0_291 = arith.constant 0 : index
    %238 = vector.load %arg13[%c0_290, %c0_291] : memref<24x32xf32, #tpu.memory_space<vmem>>, vector<24x22xf32>
    %c0_292 = arith.constant 0 : index
    %c0_293 = arith.constant 0 : index
    %239 = vector.load %arg16[%c0_292, %c0_293] : memref<432x178xf32, #tpu.memory_space<vmem>>, vector<24x22xf32>
    tpu.vector_store %arg16[%c0_292, %c0_293], %238 {strides = array<i32>} : memref<432x178xf32, #tpu.memory_space<vmem>>, vector<24x22xf32>,
    %c0_294 = arith.constant 0 : index
    %c1_295 = arith.constant 1 : index
    %240 = vector.load %arg13[%c0_294, %c1_295] : memref<24x32xf32, #tpu.memory_space<vmem>>, vector<24x22xf32>
    %c24_296 = arith.constant 24 : index
    %c0_297 = arith.constant 0 : index
    %241 = vector.load %arg16[%c24_296, %c0_297] : memref<432x178xf32, #tpu.memory_space<vmem>>, vector<24x22xf32>
    tpu.vector_store %arg16[%c24_296, %c0_297], %240 {strides = array<i32>} : memref<432x178xf32, #tpu.memory_space<vmem>>, vector<24x22xf32>,
    %c0_298 = arith.constant 0 : index
    %c2_299 = arith.constant 2 : index
    %242 = vector.load %arg13[%c0_298, %c2_299] : memref<24x32xf32, #tpu.memory_space<vmem>>, vector<24x22xf32>
    %c48_300 = arith.constant 48 : index
    %c0_301 = arith.constant 0 : index
    %243 = vector.load %arg16[%c48_300, %c0_301] : memref<432x178xf32, #tpu.memory_space<vmem>>, vector<24x22xf32>
    tpu.vector_store %arg16[%c48_300, %c0_301], %242 {strides = array<i32>} : memref<432x178xf32, #tpu.memory_space<vmem>>, vector<24x22xf32>,
    %c0_302 = arith.constant 0 : index
    %c4_303 = arith.constant 4 : index
    %244 = vector.load %arg13[%c0_302, %c4_303] : memref<24x32xf32, #tpu.memory_space<vmem>>, vector<24x22xf32>
    %c72 = arith.constant 72 : index
    %c0_304 = arith.constant 0 : index
    %245 = vector.load %arg16[%c72, %c0_304] : memref<432x178xf32, #tpu.memory_space<vmem>>, vector<24x22xf32>
    tpu.vector_store %arg16[%c72, %c0_304], %244 {strides = array<i32>} : memref<432x178xf32, #tpu.memory_space<vmem>>, vector<24x22xf32>,
    %c0_305 = arith.constant 0 : index
    %c5_306 = arith.constant 5 : index
    %246 = vector.load %arg13[%c0_305, %c5_306] : memref<24x32xf32, #tpu.memory_space<vmem>>, vector<24x22xf32>
    %c96_307 = arith.constant 96 : index
    %c0_308 = arith.constant 0 : index
    %247 = vector.load %arg16[%c96_307, %c0_308] : memref<432x178xf32, #tpu.memory_space<vmem>>, vector<24x22xf32>
    tpu.vector_store %arg16[%c96_307, %c0_308], %246 {strides = array<i32>} : memref<432x178xf32, #tpu.memory_space<vmem>>, vector<24x22xf32>,
    %c0_309 = arith.constant 0 : index
    %c6_310 = arith.constant 6 : index
    %248 = vector.load %arg13[%c0_309, %c6_310] : memref<24x32xf32, #tpu.memory_space<vmem>>, vector<24x22xf32>
    %c120 = arith.constant 120 : index
    %c0_311 = arith.constant 0 : index
    %249 = vector.load %arg16[%c120, %c0_311] : memref<432x178xf32, #tpu.memory_space<vmem>>, vector<24x22xf32>
    tpu.vector_store %arg16[%c120, %c0_311], %248 {strides = array<i32>} : memref<432x178xf32, #tpu.memory_space<vmem>>, vector<24x22xf32>,
    %c0_312 = arith.constant 0 : index
    %c8_313 = arith.constant 8 : index
    %250 = vector.load %arg13[%c0_312, %c8_313] : memref<24x32xf32, #tpu.memory_space<vmem>>, vector<24x22xf32>
    %c144 = arith.constant 144 : index
    %c0_314 = arith.constant 0 : index
    %251 = vector.load %arg16[%c144, %c0_314] : memref<432x178xf32, #tpu.memory_space<vmem>>, vector<24x22xf32>
    tpu.vector_store %arg16[%c144, %c0_314], %250 {strides = array<i32>} : memref<432x178xf32, #tpu.memory_space<vmem>>, vector<24x22xf32>,
    %c0_315 = arith.constant 0 : index
    %c9 = arith.constant 9 : index
    %252 = vector.load %arg13[%c0_315, %c9] : memref<24x32xf32, #tpu.memory_space<vmem>>, vector<24x22xf32>
    %c168 = arith.constant 168 : index
    %c0_316 = arith.constant 0 : index
    %253 = vector.load %arg16[%c168, %c0_316] : memref<432x178xf32, #tpu.memory_space<vmem>>, vector<24x22xf32>
    tpu.vector_store %arg16[%c168, %c0_316], %252 {strides = array<i32>} : memref<432x178xf32, #tpu.memory_space<vmem>>, vector<24x22xf32>,
    %c0_317 = arith.constant 0 : index
    %c10_318 = arith.constant 10 : index
    %254 = vector.load %arg13[%c0_317, %c10_318] : memref<24x32xf32, #tpu.memory_space<vmem>>, vector<24x22xf32>
    %c192_319 = arith.constant 192 : index
    %c0_320 = arith.constant 0 : index
    %255 = vector.load %arg16[%c192_319, %c0_320] : memref<432x178xf32, #tpu.memory_space<vmem>>, vector<24x22xf32>
    tpu.vector_store %arg16[%c192_319, %c0_320], %254 {strides = array<i32>} : memref<432x178xf32, #tpu.memory_space<vmem>>, vector<24x22xf32>,
    %c0_321 = arith.constant 0 : index
    %c1280 = arith.constant 1280 : index
    %256 = vector.load %arg1[%c0_321, %c1280] : memref<48x2688xbf16, #tpu.memory_space<vmem>>, vector<24x216xbf16>
    %c0_322 = arith.constant 0 : index
    %c0_323 = arith.constant 0 : index
    %257 = vector.load %arg16[%c0_322, %c0_323] : memref<432x178xf32, #tpu.memory_space<vmem>>, vector<216x22xf32>
    %258 = arith.truncf %257 : vector<216x22xf32> to vector<216x22xbf16>
    %cst_324 = arith.constant dense<0.000000e+00> : vector<24x22xf32>
    %259 = tpu.matmul %256, %258, %cst_324 {dimension_numbers = #tpu.dot_dimension_numbers<[1], [0], [0], [1], [0, 0, 1, 1], [], []>} : vector<24x216xbf16>, vector<216x22xbf16>, vector<24x22xf32> -> vector<24x22xf32>
    %c0_325 = arith.constant 0 : index
    %c7_326 = arith.constant 7 : index
    %260 = vector.load %arg2[%c0_325, %c7_326] : memref<48x16xf32, #tpu.memory_space<vmem>>, vector<24x1xf32>
    %261 = vector.broadcast %260 : vector<24x1xf32> to vector<24x22xf32>
    %262 = arith.addf %259, %261 : vector<24x22xf32>
    %263 = vector.extract_strided_slice %235 {offsets = [24, 0], sizes = [24, 22], strides = [1, 1]} : vector<48x22xf32> to vector<24x22xf32>
    %264 = arith.addf %262, %263 : vector<24x22xf32>
    %cst_327 = arith.constant 0.000000e+00 : f32
    %265 = vector.broadcast %cst_327 : f32 to vector<24x22xf32>
    %266 = arith.maximumf %264, %265 : vector<24x22xf32>
    %c24_328 = arith.constant 24 : index
    %c0_329 = arith.constant 0 : index
    %267 = vector.load %arg5[%c24_328, %c0_329] : memref<40x648xf32, #tpu.memory_space<vmem>>, vector<1x22xf32>
    %268 = vector.broadcast %267 : vector<1x22xf32> to vector<24x22xf32>
    %269 = arith.mulf %266, %268 : vector<24x22xf32>
    %c0_330 = arith.constant 0 : index
    %c5_331 = arith.constant 5 : index
    %270 = vector.load %arg14[%c0_330, %c5_331] : memref<24x32xf32, #tpu.memory_space<vmem>>, vector<24x22xf32>
    tpu.vector_store %arg14[%c0_330, %c5_331], %269 {strides = array<i32>} : memref<24x32xf32, #tpu.memory_space<vmem>>, vector<24x22xf32>,
    %c0_332 = arith.constant 0 : index
    %c0_333 = arith.constant 0 : index
    %271 = vector.load %arg14[%c0_332, %c0_333] : memref<24x32xf32, #tpu.memory_space<vmem>>, vector<24x22xf32>
    %c0_334 = arith.constant 0 : index
    %c0_335 = arith.constant 0 : index
    %272 = vector.load %arg16[%c0_334, %c0_335] : memref<432x178xf32, #tpu.memory_space<vmem>>, vector<24x22xf32>
    tpu.vector_store %arg16[%c0_334, %c0_335], %271 {strides = array<i32>} : memref<432x178xf32, #tpu.memory_space<vmem>>, vector<24x22xf32>,
    %c0_336 = arith.constant 0 : index
    %c1_337 = arith.constant 1 : index
    %273 = vector.load %arg14[%c0_336, %c1_337] : memref<24x32xf32, #tpu.memory_space<vmem>>, vector<24x22xf32>
    %c24_338 = arith.constant 24 : index
    %c0_339 = arith.constant 0 : index
    %274 = vector.load %arg16[%c24_338, %c0_339] : memref<432x178xf32, #tpu.memory_space<vmem>>, vector<24x22xf32>
    tpu.vector_store %arg16[%c24_338, %c0_339], %273 {strides = array<i32>} : memref<432x178xf32, #tpu.memory_space<vmem>>, vector<24x22xf32>,
    %c0_340 = arith.constant 0 : index
    %c2_341 = arith.constant 2 : index
    %275 = vector.load %arg14[%c0_340, %c2_341] : memref<24x32xf32, #tpu.memory_space<vmem>>, vector<24x22xf32>
    %c48_342 = arith.constant 48 : index
    %c0_343 = arith.constant 0 : index
    %276 = vector.load %arg16[%c48_342, %c0_343] : memref<432x178xf32, #tpu.memory_space<vmem>>, vector<24x22xf32>
    tpu.vector_store %arg16[%c48_342, %c0_343], %275 {strides = array<i32>} : memref<432x178xf32, #tpu.memory_space<vmem>>, vector<24x22xf32>,
    %c0_344 = arith.constant 0 : index
    %c4_345 = arith.constant 4 : index
    %277 = vector.load %arg14[%c0_344, %c4_345] : memref<24x32xf32, #tpu.memory_space<vmem>>, vector<24x22xf32>
    %c72_346 = arith.constant 72 : index
    %c0_347 = arith.constant 0 : index
    %278 = vector.load %arg16[%c72_346, %c0_347] : memref<432x178xf32, #tpu.memory_space<vmem>>, vector<24x22xf32>
    tpu.vector_store %arg16[%c72_346, %c0_347], %277 {strides = array<i32>} : memref<432x178xf32, #tpu.memory_space<vmem>>, vector<24x22xf32>,
    %c0_348 = arith.constant 0 : index
    %c5_349 = arith.constant 5 : index
    %279 = vector.load %arg14[%c0_348, %c5_349] : memref<24x32xf32, #tpu.memory_space<vmem>>, vector<24x22xf32>
    %c96_350 = arith.constant 96 : index
    %c0_351 = arith.constant 0 : index
    %280 = vector.load %arg16[%c96_350, %c0_351] : memref<432x178xf32, #tpu.memory_space<vmem>>, vector<24x22xf32>
    tpu.vector_store %arg16[%c96_350, %c0_351], %279 {strides = array<i32>} : memref<432x178xf32, #tpu.memory_space<vmem>>, vector<24x22xf32>,
    %c0_352 = arith.constant 0 : index
    %c6_353 = arith.constant 6 : index
    %281 = vector.load %arg14[%c0_352, %c6_353] : memref<24x32xf32, #tpu.memory_space<vmem>>, vector<24x22xf32>
    %c120_354 = arith.constant 120 : index
    %c0_355 = arith.constant 0 : index
    %282 = vector.load %arg16[%c120_354, %c0_355] : memref<432x178xf32, #tpu.memory_space<vmem>>, vector<24x22xf32>
    tpu.vector_store %arg16[%c120_354, %c0_355], %281 {strides = array<i32>} : memref<432x178xf32, #tpu.memory_space<vmem>>, vector<24x22xf32>,
    %c0_356 = arith.constant 0 : index
    %c8_357 = arith.constant 8 : index
    %283 = vector.load %arg14[%c0_356, %c8_357] : memref<24x32xf32, #tpu.memory_space<vmem>>, vector<24x22xf32>
    %c144_358 = arith.constant 144 : index
    %c0_359 = arith.constant 0 : index
    %284 = vector.load %arg16[%c144_358, %c0_359] : memref<432x178xf32, #tpu.memory_space<vmem>>, vector<24x22xf32>
    tpu.vector_store %arg16[%c144_358, %c0_359], %283 {strides = array<i32>} : memref<432x178xf32, #tpu.memory_space<vmem>>, vector<24x22xf32>,
    %c0_360 = arith.constant 0 : index
    %c9_361 = arith.constant 9 : index
    %285 = vector.load %arg14[%c0_360, %c9_361] : memref<24x32xf32, #tpu.memory_space<vmem>>, vector<24x22xf32>
    %c168_362 = arith.constant 168 : index
    %c0_363 = arith.constant 0 : index
    %286 = vector.load %arg16[%c168_362, %c0_363] : memref<432x178xf32, #tpu.memory_space<vmem>>, vector<24x22xf32>
    tpu.vector_store %arg16[%c168_362, %c0_363], %285 {strides = array<i32>} : memref<432x178xf32, #tpu.memory_space<vmem>>, vector<24x22xf32>,
    %c0_364 = arith.constant 0 : index
    %c10_365 = arith.constant 10 : index
    %287 = vector.load %arg14[%c0_364, %c10_365] : memref<24x32xf32, #tpu.memory_space<vmem>>, vector<24x22xf32>
    %c192_366 = arith.constant 192 : index
    %c0_367 = arith.constant 0 : index
    %288 = vector.load %arg16[%c192_366, %c0_367] : memref<432x178xf32, #tpu.memory_space<vmem>>, vector<24x22xf32>
    tpu.vector_store %arg16[%c192_366, %c0_367], %287 {strides = array<i32>} : memref<432x178xf32, #tpu.memory_space<vmem>>, vector<24x22xf32>,
    %c0_368 = arith.constant 0 : index
    %c1664 = arith.constant 1664 : index
    %289 = vector.load %arg1[%c0_368, %c1664] : memref<48x2688xbf16, #tpu.memory_space<vmem>>, vector<48x216xbf16>
    %c0_369 = arith.constant 0 : index
    %c0_370 = arith.constant 0 : index
    %290 = vector.load %arg16[%c0_369, %c0_370] : memref<432x178xf32, #tpu.memory_space<vmem>>, vector<216x22xf32>
    %291 = arith.truncf %290 : vector<216x22xf32> to vector<216x22xbf16>
    %cst_371 = arith.constant dense<0.000000e+00> : vector<48x22xf32>
    %292 = tpu.matmul %289, %291, %cst_371 {dimension_numbers = #tpu.dot_dimension_numbers<[1], [0], [0], [1], [0, 0, 1, 1], [], []>} : vector<48x216xbf16>, vector<216x22xbf16>, vector<48x22xf32> -> vector<48x22xf32>
    %c0_372 = arith.constant 0 : index
    %c9_373 = arith.constant 9 : index
    %293 = vector.load %arg2[%c0_372, %c9_373] : memref<48x16xf32, #tpu.memory_space<vmem>>, vector<48x1xf32>
    %294 = vector.broadcast %293 : vector<48x1xf32> to vector<48x22xf32>
    %295 = arith.addf %292, %294 : vector<48x22xf32>
    %cst_374 = arith.constant 0.000000e+00 : f32
    %296 = vector.broadcast %cst_374 : f32 to vector<48x22xf32>
    %297 = arith.maximumf %295, %296 : vector<48x22xf32>
    %c0_375 = arith.constant 0 : index
    %c2432 = arith.constant 2432 : index
    %298 = vector.load %arg1[%c0_375, %c2432] : memref<48x2688xbf16, #tpu.memory_space<vmem>>, vector<48x24xbf16>
    %c0_376 = arith.constant 0 : index
    %c5_377 = arith.constant 5 : index
    %299 = vector.load %arg14[%c0_376, %c5_377] : memref<24x32xf32, #tpu.memory_space<vmem>>, vector<24x22xf32>
    %300 = arith.truncf %299 : vector<24x22xf32> to vector<24x22xbf16>
    %cst_378 = arith.constant dense<0.000000e+00> : vector<48x22xf32>
    %301 = tpu.matmul %298, %300, %cst_378 {dimension_numbers = #tpu.dot_dimension_numbers<[1], [0], [0], [1], [0, 0, 1, 1], [], []>} : vector<48x24xbf16>, vector<24x22xbf16>, vector<48x22xf32> -> vector<48x22xf32>
    %c0_379 = arith.constant 0 : index
    %c11_380 = arith.constant 11 : index
    %302 = vector.load %arg2[%c0_379, %c11_380] : memref<48x16xf32, #tpu.memory_space<vmem>>, vector<48x1xf32>
    %303 = vector.broadcast %302 : vector<48x1xf32> to vector<48x22xf32>
    %304 = arith.addf %301, %303 : vector<48x22xf32>
    %305 = tpu.concatenate %297, %304 in 0 : vector<48x22xf32>, vector<48x22xf32> -> vector<96x22xf32>
    %306 = arith.truncf %305 : vector<96x22xf32> to vector<96x22xbf16>
    %c256_381 = arith.constant 256 : index
    %c0_382 = arith.constant 0 : index
    %307 = vector.load %arg4[%c256_381, %c0_382] : memref<304x58xbf16, #tpu.memory_space<vmem>>, vector<22x10xbf16>
    %cst_383 = arith.constant dense<0.000000e+00> : vector<96x10xf32>
    %308 = tpu.matmul %306, %307, %cst_383 {dimension_numbers = #tpu.dot_dimension_numbers<[1], [0], [0], [1], [0, 0, 1, 1], [], []>} : vector<96x22xbf16>, vector<22x10xbf16>, vector<96x10xf32> -> vector<96x10xf32>
    %309 = vector.extract_strided_slice %308 {offsets = [0, 0], sizes = [48, 10], strides = [1, 1]} : vector<96x10xf32> to vector<48x10xf32>
    %c0_384 = arith.constant 0 : index
    %c4_385 = arith.constant 4 : index
    %310 = vector.load %arg15[%c0_384, %c4_385] : memref<48x18xf32, #tpu.memory_space<vmem>>, vector<48x10xf32>
    tpu.vector_store %arg15[%c0_384, %c4_385], %309 {strides = array<i32>} : memref<48x18xf32, #tpu.memory_space<vmem>>, vector<48x10xf32>,
    %c0_386 = arith.constant 0 : index
    %c0_387 = arith.constant 0 : index
    %311 = vector.load %arg15[%c0_386, %c0_387] : memref<48x18xf32, #tpu.memory_space<vmem>>, vector<48x10xf32>
    %c0_388 = arith.constant 0 : index
    %c0_389 = arith.constant 0 : index
    %312 = vector.load %arg16[%c0_388, %c0_389] : memref<432x178xf32, #tpu.memory_space<vmem>>, vector<48x10xf32>
    tpu.vector_store %arg16[%c0_388, %c0_389], %311 {strides = array<i32>} : memref<432x178xf32, #tpu.memory_space<vmem>>, vector<48x10xf32>,
    %c0_390 = arith.constant 0 : index
    %c1_391 = arith.constant 1 : index
    %313 = vector.load %arg15[%c0_390, %c1_391] : memref<48x18xf32, #tpu.memory_space<vmem>>, vector<48x10xf32>
    %c48_392 = arith.constant 48 : index
    %c0_393 = arith.constant 0 : index
    %314 = vector.load %arg16[%c48_392, %c0_393] : memref<432x178xf32, #tpu.memory_space<vmem>>, vector<48x10xf32>
    tpu.vector_store %arg16[%c48_392, %c0_393], %313 {strides = array<i32>} : memref<432x178xf32, #tpu.memory_space<vmem>>, vector<48x10xf32>,
    %c0_394 = arith.constant 0 : index
    %c2_395 = arith.constant 2 : index
    %315 = vector.load %arg15[%c0_394, %c2_395] : memref<48x18xf32, #tpu.memory_space<vmem>>, vector<48x10xf32>
    %c96_396 = arith.constant 96 : index
    %c0_397 = arith.constant 0 : index
    %316 = vector.load %arg16[%c96_396, %c0_397] : memref<432x178xf32, #tpu.memory_space<vmem>>, vector<48x10xf32>
    tpu.vector_store %arg16[%c96_396, %c0_397], %315 {strides = array<i32>} : memref<432x178xf32, #tpu.memory_space<vmem>>, vector<48x10xf32>,
    %c0_398 = arith.constant 0 : index
    %c3_399 = arith.constant 3 : index
    %317 = vector.load %arg15[%c0_398, %c3_399] : memref<48x18xf32, #tpu.memory_space<vmem>>, vector<48x10xf32>
    %c144_400 = arith.constant 144 : index
    %c0_401 = arith.constant 0 : index
    %318 = vector.load %arg16[%c144_400, %c0_401] : memref<432x178xf32, #tpu.memory_space<vmem>>, vector<48x10xf32>
    tpu.vector_store %arg16[%c144_400, %c0_401], %317 {strides = array<i32>} : memref<432x178xf32, #tpu.memory_space<vmem>>, vector<48x10xf32>,
    %c0_402 = arith.constant 0 : index
    %c4_403 = arith.constant 4 : index
    %319 = vector.load %arg15[%c0_402, %c4_403] : memref<48x18xf32, #tpu.memory_space<vmem>>, vector<48x10xf32>
    %c192_404 = arith.constant 192 : index
    %c0_405 = arith.constant 0 : index
    %320 = vector.load %arg16[%c192_404, %c0_405] : memref<432x178xf32, #tpu.memory_space<vmem>>, vector<48x10xf32>
    tpu.vector_store %arg16[%c192_404, %c0_405], %319 {strides = array<i32>} : memref<432x178xf32, #tpu.memory_space<vmem>>, vector<48x10xf32>,
    %c0_406 = arith.constant 0 : index
    %c5_407 = arith.constant 5 : index
    %321 = vector.load %arg15[%c0_406, %c5_407] : memref<48x18xf32, #tpu.memory_space<vmem>>, vector<48x10xf32>
    %c240 = arith.constant 240 : index
    %c0_408 = arith.constant 0 : index
    %322 = vector.load %arg16[%c240, %c0_408] : memref<432x178xf32, #tpu.memory_space<vmem>>, vector<48x10xf32>
    tpu.vector_store %arg16[%c240, %c0_408], %321 {strides = array<i32>} : memref<432x178xf32, #tpu.memory_space<vmem>>, vector<48x10xf32>,
    %c0_409 = arith.constant 0 : index
    %c6_410 = arith.constant 6 : index
    %323 = vector.load %arg15[%c0_409, %c6_410] : memref<48x18xf32, #tpu.memory_space<vmem>>, vector<48x10xf32>
    %c288 = arith.constant 288 : index
    %c0_411 = arith.constant 0 : index
    %324 = vector.load %arg16[%c288, %c0_411] : memref<432x178xf32, #tpu.memory_space<vmem>>, vector<48x10xf32>
    tpu.vector_store %arg16[%c288, %c0_411], %323 {strides = array<i32>} : memref<432x178xf32, #tpu.memory_space<vmem>>, vector<48x10xf32>,
    %c0_412 = arith.constant 0 : index
    %c7_413 = arith.constant 7 : index
    %325 = vector.load %arg15[%c0_412, %c7_413] : memref<48x18xf32, #tpu.memory_space<vmem>>, vector<48x10xf32>
    %c336 = arith.constant 336 : index
    %c0_414 = arith.constant 0 : index
    %326 = vector.load %arg16[%c336, %c0_414] : memref<432x178xf32, #tpu.memory_space<vmem>>, vector<48x10xf32>
    tpu.vector_store %arg16[%c336, %c0_414], %325 {strides = array<i32>} : memref<432x178xf32, #tpu.memory_space<vmem>>, vector<48x10xf32>,
    %c0_415 = arith.constant 0 : index
    %c8_416 = arith.constant 8 : index
    %327 = vector.load %arg15[%c0_415, %c8_416] : memref<48x18xf32, #tpu.memory_space<vmem>>, vector<48x10xf32>
    %c384_417 = arith.constant 384 : index
    %c0_418 = arith.constant 0 : index
    %328 = vector.load %arg16[%c384_417, %c0_418] : memref<432x178xf32, #tpu.memory_space<vmem>>, vector<48x10xf32>
    tpu.vector_store %arg16[%c384_417, %c0_418], %327 {strides = array<i32>} : memref<432x178xf32, #tpu.memory_space<vmem>>, vector<48x10xf32>,
    %c0_419 = arith.constant 0 : index
    %c1920 = arith.constant 1920 : index
    %329 = vector.load %arg1[%c0_419, %c1920] : memref<48x2688xbf16, #tpu.memory_space<vmem>>, vector<48x432xbf16>
    %c0_420 = arith.constant 0 : index
    %c0_421 = arith.constant 0 : index
    %330 = vector.load %arg16[%c0_420, %c0_421] : memref<432x178xf32, #tpu.memory_space<vmem>>, vector<432x10xf32>
    %331 = arith.truncf %330 : vector<432x10xf32> to vector<432x10xbf16>
    %cst_422 = arith.constant dense<0.000000e+00> : vector<48x10xf32>
    %332 = tpu.matmul %329, %331, %cst_422 {dimension_numbers = #tpu.dot_dimension_numbers<[1], [0], [0], [1], [0, 0, 1, 1], [], []>} : vector<48x432xbf16>, vector<432x10xbf16>, vector<48x10xf32> -> vector<48x10xf32>
    %c0_423 = arith.constant 0 : index
    %c10_424 = arith.constant 10 : index
    %333 = vector.load %arg2[%c0_423, %c10_424] : memref<48x16xf32, #tpu.memory_space<vmem>>, vector<48x1xf32>
    %334 = vector.broadcast %333 : vector<48x1xf32> to vector<48x10xf32>
    %335 = arith.addf %332, %334 : vector<48x10xf32>
    %336 = vector.extract_strided_slice %308 {offsets = [48, 0], sizes = [48, 10], strides = [1, 1]} : vector<96x10xf32> to vector<48x10xf32>
    %337 = arith.addf %335, %336 : vector<48x10xf32>
    %cst_425 = arith.constant 0.000000e+00 : f32
    %338 = vector.broadcast %cst_425 : f32 to vector<48x10xf32>
    %339 = arith.maximumf %337, %338 : vector<48x10xf32>
    %c32_426 = arith.constant 32 : index
    %c0_427 = arith.constant 0 : index
    %340 = vector.load %arg5[%c32_426, %c0_427] : memref<40x648xf32, #tpu.memory_space<vmem>>, vector<1x10xf32>
    %341 = vector.broadcast %340 : vector<1x10xf32> to vector<48x10xf32>
    %342 = arith.mulf %339, %341 : vector<48x10xf32>
    %c288_428 = arith.constant 288 : index
    %c0_429 = arith.constant 0 : index
    %343 = vector.load %arg4[%c288_428, %c0_429] : memref<304x58xbf16, #tpu.memory_space<vmem>>, vector<2x10xbf16>
    %344 = arith.truncf %342 : vector<48x10xf32> to vector<48x10xbf16>
    %cst_430 = arith.constant dense<0.000000e+00> : vector<2x48xf32>
    %345 = tpu.matmul %343, %344, %cst_430 {dimension_numbers = #tpu.dot_dimension_numbers<[1], [1], [0], [0], [0, 0, 1, 0], [], []>} : vector<2x10xbf16>, vector<48x10xbf16>, vector<2x48xf32> -> vector<2x48xf32>
    %346 = arith.truncf %345 : vector<2x48xf32> to vector<2x48xbf16>
    %c0_431 = arith.constant 0 : index
    %c2560 = arith.constant 2560 : index
    %347 = vector.load %arg1[%c0_431, %c2560] : memref<48x2688xbf16, #tpu.memory_space<vmem>>, vector<48x10xbf16>
    %cst_432 = arith.constant dense<0.000000e+00> : vector<2x10xf32>
    %348 = tpu.matmul %346, %347, %cst_432 {dimension_numbers = #tpu.dot_dimension_numbers<[1], [0], [0], [1], [0, 0, 1, 1], [], []>} : vector<2x48xbf16>, vector<48x10xbf16>, vector<2x10xf32> -> vector<2x10xf32>
    %c0_433 = arith.constant 0 : index
    %c0_434 = arith.constant 0 : index
    %349 = vector.load %arg6[%c0_433, %c0_434] : memref<1x10xf32, #tpu.memory_space<vmem>>, vector<1x10xf32>
    %350 = vector.broadcast %349 : vector<1x10xf32> to vector<2x10xf32>
    %351 = arith.addf %348, %350 : vector<2x10xf32>
    %c0_435 = arith.constant 0 : index
    %c0_436 = arith.constant 0 : index
    %352 = vector.load %arg7[%c0_435, %c0_436] : memref<2x10xf32, #tpu.memory_space<vmem>>, vector<2x10xf32>
    tpu.vector_store %arg7[%c0_435, %c0_436], %351 {strides = array<i32>} : memref<2x10xf32, #tpu.memory_space<vmem>>, vector<2x10xf32>,
    return
  }
}

</mosaic_0001>

<bundles_post_ra>
// kernel: forward.1
= control target key start
LH: loop header
LB: loop body
LE: loop exit
PB: predicated region body
PF: predicated region fallthrough
CT: control target
= control target key end

     0   :  { %vm431_vm0 = vcmask 1040384   ;;  %vm432_vm1 = vcmask 1041408   ;;  %v5523_v15 = vmov 65535   ;;  %vm427_vm2 = vcmask 154624   ;;  %s7699_s0 = inlined_call_operand.vmem [shape: bf16[147,648], index: 0, kind: input, shape index: {}]   ;;  %s7700_s1 = inlined_call_operand.vmem [shape: bf16[48,2688], index: 1, kind: input, shape index: {}]   ;;  %s7701_s2 = inlined_call_operand.vmem [shape: f32[48,16], index: 2, kind: input, shape index: {}]   ;;  %s7702_s3 = inlined_call_operand.vmem [shape: bf16[610,178], index: 3, kind: input, shape index: {}]   ;;  %s7703_s4 = inlined_call_operand.vmem [shape: bf16[304,58], index: 4, kind: input, shape index: {}]   ;;  %s7704_s5 = inlined_call_operand.vmem [shape: f32[40,648], index: 5, kind: input, shape index: {}]   ;;  %s7705_s6 = inlined_call_operand.vmem [shape: f32[1,10], index: 6, kind: input, shape index: {}]   ;;  %s7706_s7 = inlined_call_operand.hbm [shape: f32[2,10], index: 7, kind: output, shape index: {}]  }
   0x1   :  { %v4571_v0 = vld [vmem:[%s7699_s0 + $0x150] sm:$0xf]  ;;  %v5209_v1 = vld [vmem:[%s7699_s0 + $0x164] sm:$0xf0]  ;;  %v5206_v2 = vld [vmem:[%s7699_s0 + $0x154] sm:$0xf] }
   0x2   :  { %v4572_v3 = vor.u32 %v5209_v1, %v4571_v0  ;;  %v4573_v4 = vld [vmem:[%s7699_s0 + $0x168] sm:$0xf0]  ;;  %v4547_v5 = vld [vmem:[%s7699_s0 + $0x120] sm:$0xf]  ;;  %v5203_v6 = vld [vmem:[%s7699_s0 + $0x134] sm:$0xf0] }
   0x3   :  { %v4576_v7 = vor.u32 %v5206_v2, %v4573_v4  ;;  %v127_v8 = vld [vmem:[%s7699_s0 + $0x1b0] sm:$0x33]  ;;  %v5200_v9 = vld [vmem:[%s7699_s0 + $0x124] sm:$0xf]  ;;  %v4548_v10 = vor.u32 %v5203_v6, %v4547_v5  ;;  %v4549_v12 = vld [vmem:[%s7699_s0 + $0x138] sm:$0xf0] }
   0x4   :  { %453 = vmatpush.bf16.msra.mxu0 %v4572_v3  ;;  %v307_v11 = vunpack.c.l.b16 %v127_v8  ;;  %v308_v13 = vunpack.c.h.b16 %v127_v8  ;;  %v4523_v14 = vld [vmem:[%s7699_s0 + $0xf0] sm:$0xf]  ;;  %v433_v16 = vsel %vm431_vm0, 4294967295, %v5523_v15  ;;  %v4552_v17 = vor.u32 %v5200_v9, %v4549_v12  ;;  %v5197_v18 = vld [vmem:[%s7699_s0 + $0x104] sm:$0xf0]  ;;  %v5652_v25 = vld [vmem:[%s7700_s1] sm:$0xff] }
   0x5   :  { %479 = vmatpush.bf16.msra.mxu2 %v4576_v7  ;;  %v4595_v19 = vld [vmem:[%s7699_s0 + $0x180] sm:$0xf]  ;;  %v5641_v21 = vsel %vm432_vm1, %v433_v16, 0  ;;  %v5215_v23 = vld [vmem:[%s7699_s0 + $0x194] sm:$0xf0]  ;;  %v4524_v31 = vor.u32 %v5197_v18, %v4523_v14  ;;  %v138_v39 = vunpack.c.h.b16 %v5652_v25 }
   0x6   :  { %v367_v20 = vpack.c.b16 %v307_v11, %v307_v11  ;;  %v368_v22 = vpack.c.b16 %v308_v13, %v308_v13  ;;  %v5194_v24 = vld [vmem:[%s7699_s0 + $0xf4] sm:$0xf]  ;;  %v4525_v26 = vld [vmem:[%s7699_s0 + $0x108] sm:$0xf0]  ;;  %v5212_v27 = vld [vmem:[%s7699_s0 + $0x184] sm:$0xf]  ;;  %v4596_v40 = vor.u32 %v5215_v23, %v4595_v19 }
   0x7   :  { %v4597_v28 = vld [vmem:[%s7699_s0 + $0x198] sm:$0xf0]  ;;  %v4579_v32 = vld [vmem:[%s7699_s0 + $0x158] sm:$0xf]  ;;  %v5210_v33 = vld [vmem:[%s7699_s0 + $0x16c] sm:$0xf0]  ;;  %v4528_v35 = vor.u32 %v5194_v24, %v4525_v26  ;;  %v5706_v54 = vpack.c.b16 %v138_v39, %v138_v39 }
   0x8   :  { %454 = vmatpush.bf16.msra.mxu0 %v4548_v10  ;;  %v436_v29 = vand.u32 %v5641_v21, %v367_v20  ;;  %v439_v30 = vand.u32 %v5641_v21, %v368_v22  ;;  %v5674_v34 = vld [vmem:[%s7699_s0 + $0x1b8] sm:$0x33]  ;;  %v4499_v37 = vld [vmem:[%s7699_s0 + $0xc0] sm:$0xf]  ;;  %v4600_v41 = vor.u32 %v5212_v27, %v4597_v28  ;;  %v5188_v42 = vld [vmem:[%s7699_s0 + $0xc4] sm:$0xf]  ;;  %v4580_v44 = vor.u32 %v5210_v33, %v4579_v32 }
   0x9   :  { %480 = vmatpush.bf16.msra.mxu2 %v4552_v17  ;;  %v309_v36 = vunpack.c.l.b16 %v5674_v34  ;;  %v5191_v38 = vld [vmem:[%s7699_s0 + $0xd4] sm:$0xf0]  ;;  %v4501_v43 = vld [vmem:[%s7699_s0 + $0xd8] sm:$0xf0]  ;;  %v4555_v46 = vld [vmem:[%s7699_s0 + $0x128] sm:$0xf]  ;;  %v310_v22 = vunpack.c.h.b16 %v5674_v34 }
   0xa   :  { %472 = vmatpush.bf16.msra.mxu1 %v436_v29  ;;  %498 = vmatpush.bf16.msra.mxu3 %v439_v30  ;;  %v5204_v47 = vld [vmem:[%s7699_s0 + $0x13c] sm:$0xf0]  ;;  %v4500_v48 = vor.u32 %v5191_v38, %v4499_v37  ;;  %v4603_v49 = vld [vmem:[%s7699_s0 + $0x188] sm:$0xf]  ;;  %v5207_v51 = vld [vmem:[%s7699_s0 + $0x15c] sm:$0xf]  ;;  %v4504_v53 = vor.u32 %v5188_v42, %v4501_v43 }
   0xb   :  { %v369_v45 = vpack.c.b16 %v309_v36, %v309_v36  ;;  %v5216_v50 = vld [vmem:[%s7699_s0 + $0x19c] sm:$0xf0]  ;;  %v4581_v55 = vld [vmem:[%s7699_s0 + $0x170] sm:$0xf0]  ;;  %v4475_v56 = vld [vmem:[%s7699_s0 + $0x90] sm:$0xf]  ;;  %v4556_v60 = vor.u32 %v5204_v47, %v4555_v46  ;;  %v370_v36 = vpack.c.b16 %v310_v22, %v310_v22 }
   0xc   :  { %455 = vmatpush.bf16.msra.mxu0 %v4524_v31  ;;  %v5185_v57 = vld [vmem:[%s7699_s0 + $0xa4] sm:$0xf0]  ;;  %v5182_v58 = vld [vmem:[%s7699_s0 + $0x94] sm:$0xf]  ;;  %v4477_v59 = vld [vmem:[%s7699_s0 + $0xa8] sm:$0xf0]  ;;  %v4604_v61 = vor.u32 %v5216_v50, %v4603_v49  ;;  %v4584_v62 = vor.u32 %v5207_v51, %v4581_v55 }
   0xd   :  { %481 = vmatpush.bf16.msra.mxu2 %v4528_v35  ;;  %v442_v52 = vand.u32 %v5641_v21, %v369_v45  ;;  %v4476_v63 = vor.u32 %v5185_v57, %v4475_v56  ;;  %v4531_v0 = vld [vmem:[%s7699_s0 + $0xf8] sm:$0xf]  ;;  %v5198_v1 = vld [vmem:[%s7699_s0 + $0x10c] sm:$0xf0]  ;;  %v5201_v2 = vld [vmem:[%s7699_s0 + $0x12c] sm:$0xf]  ;;  %v4480_v3 = vor.u32 %v5182_v58, %v4477_v59 }
   0xe   :  { %473 = vmatpush.bf16.msra.mxu1 %v4596_v40  ;;  %499 = vmatpush.bf16.msra.mxu3 %v4600_v41  ;;  %v4557_v4 = vld [vmem:[%s7699_s0 + $0x140] sm:$0xf0]  ;;  %v4451_v5 = vld [vmem:[%s7699_s0 + $0x60] sm:$0xf]  ;;  %v5179_v6 = vld [vmem:[%s7699_s0 + $0x74] sm:$0xf0]  ;;  %v4532_v9 = vor.u32 %v5198_v1, %v4531_v0  ;;  %v137_v40 = vunpack.c.l.b16 %v5652_v25 }
   0xf   :  { %v5176_v7 = vld [vmem:[%s7699_s0 + $0x64] sm:$0xf]  ;;  %v4453_v8 = vld [vmem:[%s7699_s0 + $0x78] sm:$0xf0]  ;;  %v4560_v10 = vor.u32 %v5201_v2, %v4557_v4  ;;  %v4452_v11 = vor.u32 %v5179_v6, %v4451_v5  ;;  %v4507_v12 = vld [vmem:[%s7699_s0 + $0xc8] sm:$0xf] }
  0x10   :  { %456 = vmatpush.bf16.msra.mxu0 %v4500_v48  ;;  %v5192_v13 = vld [vmem:[%s7699_s0 + $0xdc] sm:$0xf0]  ;;  %v5195_v14 = vld [vmem:[%s7699_s0 + $0xfc] sm:$0xf]  ;;  %v4456_v15 = vor.u32 %v5176_v7, %v4453_v8  ;;  %v4533_v16 = vld [vmem:[%s7699_s0 + $0x110] sm:$0xf0]  ;;  %v445_v48 = vand.u32 %v5641_v21, %v370_v36  ;;  %v5829_v55 = vpack.c.b16 %v137_v40, %v137_v40 }
  0x11   :  { %482 = vmatpush.bf16.msra.mxu2 %v4504_v53  ;;  %4618 = vmatmul.msk.bf16.vlgmr.msra.gmra.mxu3 %vm427_vm2, %v5706_v54  ;;  %v4427_v17 = vld [vmem:[%s7699_s0 + $0x30] sm:$0xf]  ;;  %v5173_v18 = vld [vmem:[%s7699_s0 + $0x44] sm:$0xf0]  ;;  %v5170_v19 = vld [vmem:[%s7699_s0 + $0x34] sm:$0xf]  ;;  %v4508_v23 = vor.u32 %v5192_v13, %v4507_v12  ;;  %v4536_v24 = vor.u32 %v5195_v14, %v4533_v16 }
  0x12   :  { %505 = vmatpush.bf16.msrb.mxu1 %v4580_v44  ;;  %524 = vmatpush.bf16.msrb.mxu3 %v442_v52  ;;  %v4429_v20 = vld [vmem:[%s7699_s0 + $0x48] sm:$0xf0]  ;;  %v4428_v26 = vor.u32 %v5173_v18, %v4427_v17  ;;  %v4483_v27 = vld [vmem:[%s7699_s0 + $0x98] sm:$0xf]  ;;  %v5186_v28 = vld [vmem:[%s7699_s0 + $0xac] sm:$0xf0] }
  0x13   :  { %4617 = vmatmul.msk.bf16.vlgmr.msra.gmra.mxu1 %vm427_vm2, %v5706_v54  ;;  %v5189_v29 = vld [vmem:[%s7699_s0 + $0xcc] sm:$0xf]  ;;  %v4432_v30 = vor.u32 %v5170_v19, %v4429_v20  ;;  %v4509_v31 = vld [vmem:[%s7699_s0 + $0xe0] sm:$0xf0]  ;;  %v4403_v32 = vld [vmem:[%s7699_s0] sm:$0xf]  ;;  %v4484_v37 = vor.u32 %v5186_v28, %v4483_v27 }
  0x14   :  { %457 = vmatpush.bf16.msra.mxu0 %v4476_v63  ;;  %v5167_v33 = vld [vmem:[%s7699_s0 + $0x14] sm:$0xf0]  ;;  %v5164_v34 = vld [vmem:[%s7699_s0 + $0x4] sm:$0xf]  ;;  %v4405_v35 = vld [vmem:[%s7699_s0 + $0x18] sm:$0xf0]  ;;  %v4512_v41 = vor.u32 %v5189_v29, %v4509_v31 }
  0x15   :  { %483 = vmatpush.bf16.msra.mxu2 %v4480_v3  ;;  %v4587_v38 = vld [vmem:[%s7699_s0 + $0x160] sm:$0xf]  ;;  %v5211_v39 = vld [vmem:[%s7699_s0 + $0x174] sm:$0xf0]  ;;  %v4404_v42 = vor.u32 %v5167_v33, %v4403_v32  ;;  %v4459_v43 = vld [vmem:[%s7699_s0 + $0x68] sm:$0xf]  ;;  %v4408_v45 = vor.u32 %v5164_v34, %v4405_v35 }
  0x16   :  { %506 = vmatpush.bf16.msrb.mxu1 %v4556_v60  ;;  %525 = vmatpush.bf16.msrb.mxu3 %v4604_v61  ;;  %v5180_v44 = vld [vmem:[%s7699_s0 + $0x7c] sm:$0xf0]  ;;  %v5183_v46 = vld [vmem:[%s7699_s0 + $0x9c] sm:$0xf]  ;;  %v4485_v25 = vld [vmem:[%s7699_s0 + $0xb0] sm:$0xf0]  ;;  %v4588_v49 = vor.u32 %v5211_v39, %v4587_v38 }
  0x17   :  { %v130_v47 = vld [vmem:[%s7701_s2] sm:$0xff]  ;;  %v4435_v50 = vld [vmem:[%s7699_s0 + $0x38] sm:$0xf]  ;;  %v5213_v51 = vld [vmem:[%s7699_s0 + $0x18c] sm:$0xf]  ;;  %v5524_v52 = vmov 0   ;;  %v4460_v53 = vor.u32 %v5180_v44, %v4459_v43  ;;  %v4488_v59 = vor.u32 %v5183_v46, %v4485_v25 }
  0x18   :  { %458 = vmatpush.bf16.msra.mxu0 %v4452_v11  ;;  %5384 = vset.pattern.permute.xlu0 %v5524_v52  ;;  %v4605_v56 = vld [vmem:[%s7699_s0 + $0x1a0] sm:$0xf0]  ;;  %v4563_v57 = vld [vmem:[%s7699_s0 + $0x130] sm:$0xf]  ;;  %v5205_v58 = vld [vmem:[%s7699_s0 + $0x144] sm:$0xf0] }
  0x19   :  { %484 = vmatpush.bf16.msra.mxu2 %v4456_v15  ;;  %133 = vperm.xlu0 %5384, %v130_v47   ;;  %v5174_v60 = vld [vmem:[%s7699_s0 + $0x4c] sm:$0xf0]  ;;  %v5208_v61 = vld [vmem:[%s7699_s0 + $0x164] sm:$0xf]  ;;  %v5177_v63 = vld [vmem:[%s7699_s0 + $0x6c] sm:$0xf]  ;;  %v4608_v1 = vor.u32 %v5213_v51, %v4605_v56  ;;  %v4564_v2 = vor.u32 %v5205_v58, %v4563_v57 }
  0x1a   :  { %531 = vmatpush.bf16.msra.mxu3 %v4584_v62  ;;  %507 = vmatpush.bf16.msrb.mxu1 %v4532_v9  ;;  %v4589_v62 = vld [vmem:[%s7699_s0 + $0x178] sm:$0xf0]  ;;  %v4461_v0 = vld [vmem:[%s7699_s0 + $0x80] sm:$0xf0]  ;;  %v4436_v4 = vor.u32 %v5174_v60, %v4435_v50  ;;  %v4411_v6 = vld [vmem:[%s7699_s0 + $0x8] sm:$0xf] }
  0x1b   :  { %v129_v3 = vld [vmem:[%s7699_s0 + $0x1c0] sm:$0x33]  ;;  %v4592_v5 = vor.u32 %v5208_v61, %v4589_v62  ;;  %v5199_v8 = vld [vmem:[%s7699_s0 + $0x114] sm:$0xf0]  ;;  %v5202_v12 = vld [vmem:[%s7699_s0 + $0x134] sm:$0xf] }
  0x1c   :  { %459 = vmatpush.bf16.msra.mxu0 %v4428_v26  ;;  %v4539_v7 = vld [vmem:[%s7699_s0 + $0x100] sm:$0xf]  ;;  %v311_v9 = vunpack.c.l.b16 %v129_v3  ;;  %v4565_v13 = vld [vmem:[%s7699_s0 + $0x148] sm:$0xf0]  ;;  %v5171_v14 = vld [vmem:[%s7699_s0 + $0x3c] sm:$0xf]  ;;  %v312_v17 = vunpack.c.h.b16 %v129_v3 }
  0x1d   :  { %485 = vmatpush.bf16.msra.mxu2 %v4432_v30  ;;  %v5168_v11 = vld [vmem:[%s7699_s0 + $0x1c] sm:$0xf0]  ;;  %v4437_v15 = vld [vmem:[%s7699_s0 + $0x50] sm:$0xf0]  ;;  %v4540_v18 = vor.u32 %v5199_v8, %v4539_v7  ;;  %v4515_v19 = vld [vmem:[%s7699_s0 + $0xd0] sm:$0xf]  ;;  %v4568_v22 = vor.u32 %v5202_v12, %v4565_v13 }
  0x1e   :  { %532 = vmatpush.bf16.msra.mxu3 %v4560_v10  ;;  %508 = vmatpush.bf16.msrb.mxu1 %v4508_v23  ;;  %v4464_v10 = vor.u32 %v5177_v63, %v4461_v0  ;;  %v371_v16 = vpack.c.b16 %v311_v9, %v311_v9  ;;  %v4412_v20 = vor.u32 %v5168_v11, %v4411_v6  ;;  %v5193_v23 = vld [vmem:[%s7699_s0 + $0xe4] sm:$0xf0]  ;;  %v5196_v27 = vld [vmem:[%s7699_s0 + $0x104] sm:$0xf]  ;;  %v4541_v28 = vld [vmem:[%s7699_s0 + $0x118] sm:$0xf0] }
  0x1f   :  { %v4440_v26 = vor.u32 %v5171_v14, %v4437_v15 }
  0x20   :  { %460 = vmatpush.bf16.msra.mxu0 %v4404_v42  ;;  %v448_v29 = vand.u32 %v5641_v21, %v371_v16 }
  0x21   :  { %486 = vmatpush.bf16.msra.mxu2 %v4408_v45  ;;  %4619 = vmatmul.msk.bf16.vlgmr.msrb.gmra.mxu3 %vm427_vm2, %v5706_v54 }
  0x22   :  { %533 = vmatpush.bf16.msra.mxu3 %v4536_v24  ;;  %509 = vmatpush.bf16.msrb.mxu1 %v4484_v37  ;;  %v5165_v24 = vld [vmem:[%s7699_s0 + $0xc] sm:$0xf] }
  0x23   :  { %461 = vmatmul.bf16.vlgmr.msra.gmra.mxu0 %v5829_v55 }
  0x24   :  { %550 = vmatpush.bf16.msrb.mxu0 %v445_v48  ;;  %487 = vmatmul.bf16.vlgmr.msra.gmra.mxu2 %v5829_v55 }
  0x25   :  { %557 = vmatpush.bf16.msrb.mxu2 %v4588_v49 }
  0x26   :  { %534 = vmatpush.bf16.msra.mxu3 %v4512_v41  ;;  %510 = vmatpush.bf16.msrb.mxu1 %v4460_v53 }
  0x28   :  { %551 = vmatpush.bf16.msrb.mxu0 %v4608_v1 }
  0x29   :  { %558 = vmatpush.bf16.msrb.mxu2 %v4564_v2 }
  0x2a   :  { %535 = vmatpush.bf16.msra.mxu3 %v4488_v59  ;;  %511 = vmatpush.bf16.msrb.mxu1 %v4436_v4 }
  0x2c   :  { %583 = vmatpush.bf16.msra.mxu0 %v4592_v5 }
  0x2e   :  { %536 = vmatpush.bf16.msra.mxu3 %v4464_v10 }
  0x2f   :  { %12 = vsyncpa [#allocation12], 0  ;;  %v4413_v30 = vld [vmem:[%s7699_s0 + $0x20] sm:$0xf0]  ;;  %v4611_v31 = vld [vmem:[%s7699_s0 + $0x190] sm:$0xf]  ;;  %v372_v33 = vpack.c.b16 %v312_v17, %v312_v17  ;;  %559 = vmatpush.bf16.msrb.mxu2 %v4540_v18  ;;  %v4516_v34 = vor.u32 %v5193_v23, %v4515_v19  ;;  %512 = vmatpush.bf16.msrb.mxu1 %v4412_v20  ;;  %v4544_v35 = vor.u32 %v5196_v27, %v4541_v28 }
  0x30   :  { %v5217_v32 = vld [vmem:[%s7699_s0 + $0x1a4] sm:$0xf0]  ;;  %584 = vmatpush.bf16.msra.mxu0 %v4568_v22  ;;  %v4491_v36 = vld [vmem:[%s7699_s0 + $0xa0] sm:$0xf]  ;;  %v5187_v37 = vld [vmem:[%s7699_s0 + $0xb4] sm:$0xf0]  ;;  %v4416_v38 = vor.u32 %v5165_v24, %v4413_v30 }
  0x31   :  { %v5190_v39 = vld [vmem:[%s7699_s0 + $0xd4] sm:$0xf]  ;;  %v4517_v40 = vld [vmem:[%s7699_s0 + $0xe8] sm:$0xf0]  ;;  %v4612_v41 = vor.u32 %v5217_v32, %v4611_v31  ;;  %v451_v42 = vand.u32 %v5641_v21, %v372_v33  ;;  %v4492_v43 = vor.u32 %v5187_v37, %v4491_v36  ;;  %v4467_v25 = vld [vmem:[%s7699_s0 + $0x70] sm:$0xf] }
  0x32   :  { %537 = vmatpush.bf16.msra.mxu3 %v4440_v26  ;;  %513 = vmatmul.bf16.vlgmr.msrb.gmra.mxu1 %v5829_v55  ;;  %v5214_v44 = vld [vmem:[%s7699_s0 + $0x194] sm:$0xf]  ;;  %v4613_v45 = vld [vmem:[%s7699_s0 + $0x1a8] sm:$0xf0]  ;;  %v4520_v46 = vor.u32 %v5190_v39, %v4517_v40  ;;  %v5181_v21 = vld [vmem:[%s7699_s0 + $0x84] sm:$0xf0] }
  0x33   :  { %576 = vmatpush.bf16.msra.mxu1 %v448_v29  ;;  %560 = vmatpush.bf16.msrb.mxu2 %v4516_v34  ;;  %v5184_v47 = vld [vmem:[%s7699_s0 + $0xa4] sm:$0xf]  ;;  %v4493_v48 = vld [vmem:[%s7699_s0 + $0xb8] sm:$0xf0]  ;;  %v4616_v49 = vor.u32 %v5214_v44, %v4613_v45  ;;  %v4468_v50 = vor.u32 %v5181_v21, %v4467_v25  ;;  %v4443_v52 = vld [vmem:[%s7699_s0 + $0x40] sm:$0xf] }
  0x34   :  { %585 = vmatpush.bf16.msra.mxu0 %v4544_v35  ;;  %v4496_v51 = vor.u32 %v5184_v47, %v4493_v48  ;;  %v5175_v53 = vld [vmem:[%s7699_s0 + $0x54] sm:$0xf0]  ;;  %v5178_v56 = vld [vmem:[%s7699_s0 + $0x74] sm:$0xf]  ;;  %v4469_v57 = vld [vmem:[%s7699_s0 + $0x88] sm:$0xf0] }
  0x35   :  { %4620 = vmatmul.msk.bf16.vlgmr.msrb.gmra.mxu0 %vm427_vm2, %v5706_v54  ;;  %v4444_v58 = vor.u32 %v5175_v53, %v4443_v52  ;;  %v4472_v59 = vor.u32 %v5178_v56, %v4469_v57  ;;  %v4419_v60 = vld [vmem:[%s7699_s0 + $0x10] sm:$0xf]  ;;  %v5169_v61 = vld [vmem:[%s7699_s0 + $0x24] sm:$0xf0]  ;;  %v5172_v62 = vld [vmem:[%s7699_s0 + $0x44] sm:$0xf] }
  0x36   :  { %538 = vmatpush.bf16.msra.mxu3 %v4416_v38  ;;  %v4445_v63 = vld [vmem:[%s7699_s0 + $0x58] sm:$0xf0]  ;;  %v4420_v0 = vor.u32 %v5169_v61, %v4419_v60  ;;  %v5166_v2 = vld [vmem:[%s7699_s0 + $0x14] sm:$0xf]  ;;  %v4421_v3 = vld [vmem:[%s7699_s0 + $0x28] sm:$0xf0] }
  0x37   :  { %577 = vmatpush.bf16.msra.mxu1 %v4612_v41  ;;  %561 = vmatpush.bf16.msrb.mxu2 %v4492_v43  ;;  %v4448_v1 = vor.u32 %v5172_v62, %v4445_v63  ;;  %v4424_v4 = vor.u32 %v5166_v2, %v4421_v3  ;;  %v615_v9 = vld [vmem:[%s7704_s5] ss:$8 sm:$0xf]  ;;  %s5525_s23 = smov 127   ;;  %s5526_s24 = smov 90   ;;  %vm642_vm3 = vcmask 64512  }
  0x38   :  { %586 = vmatpush.bf16.msra.mxu0 %v4520_v46  ;;  %v616_v10 = vld [vmem:[%s7704_s5] ss:$8 sm:$0x30]  ;;  %s5527_s25 = smov 91   ;;  %s5528_s26 = smov 108   ;;  %vm664_vm4 = vcmask 1039360  }
  0x39   :  { %539 = vmatmul.bf16.vlgmr.msra.gmra.mxu3 %v5829_v55  ;;  %v5988_v12 = vor.u32 %v616_v10, %v615_v9  ;;  %s5529_s27 = smov 110   ;;  %s5530_s28 = smov 126   ;;  %v4737_v10 = vld [vmem:[%s7702_s3 + $0xe0] sm:$0xf]  ;;  %vm689_vm5 = vcmask 1031168   ;;  %vm714_vm6 = vcmask 900096  }
  0x3a   :  { %s5531_s29 = smov 92   ;;  %s5532_s30 = smov 109   ;;  %vm764_vm7 = vcmask 883712   ;;  %vm739_vm8 = vcmask 891904   ;;  %vm793_vm9 = vcmask 752640   ;;  %vm849_vm10 = vcmask 736256  }
  0x3b   :  { %602 = vmatpush.bf16.msrb.mxu1 %v451_v42  ;;  %562 = vmatpush.bf16.msrb.mxu2 %v4468_v50  ;;  %v620_v23 = vperm.slane %v5988_v12, 1  ;;  %v621_v31 = vperm.slane %v5988_v12, 2  ;;  %v622_v41 = vperm.slane %v5988_v12, 3  ;;  %v623_v50 = vperm.slane %v5988_v12, 4  ;;  %s5535_s20 = smov 106   ;;  %s5536_s0 = smov 107  }
  0x3c   :  { %587 = vmatpush.bf16.msra.mxu0 %v4496_v51  ;;  %vm821_vm11 = vcmask 744448   ;;  %vm1332_vm12 = vcmask 801792   ;;  %vm28_vm13 = vcmask 89088   ;;  %vm30_vm14 = vcmask 589288   ;;  %s5537_s21 = smov 117   ;;  %s5538_s22 = smov 116  }
  0x3d   :  { %vm1481_vm15 = vcmask 1047640   ;;  %vm1483_vm1 = vcmask 498688   ;;  %s5545_s8 = smov 120   ;;  %s5547_s9 = smov 121  }
  0x3e   :  { %s5548_s10 = smov 122   ;;  %s5549_s11 = smov 114  }
  0x3f   :  { %603 = vmatpush.bf16.msrb.mxu1 %v4616_v49  ;;  %563 = vmatpush.bf16.msrb.mxu2 %v4444_v58  ;;  %s5553_s12 = smov 5   ;;  %s5554_s13 = smov 123  }
  0x40   :  { %588 = vmatpush.bf16.msra.mxu0 %v4472_v59  ;;  %v624_v59 = vperm.slane %v5988_v12, 5  ;;  %s5556_s16 = smov 119  }
  0x42   :  { %4621 = vmatmul.msk.bf16.vlgmr.msra.gmra.mxu1 %vm427_vm2, %v5706_v54 }
  0x43   :  { %564 = vmatpush.bf16.msrb.mxu2 %v4420_v0 }
  0x44   :  { %589 = vmatpush.bf16.msra.mxu0 %v4448_v1 }
  0x46   :  { %565 = vmatmul.bf16.vlgmr.msrb.gmra.mxu2 %v5829_v55 }
  0x48   :  { %590 = vmatpush.bf16.msra.mxu0 %v4424_v4  ;;  %v4745_v4 = vld [vmem:[%s7702_s3 + $0xf0] sm:$0xf] }
  0x4b   :  { %591 = vmatmul.bf16.vlgmr.msra.gmra.mxu0 %v5829_v55 }
  0x52   :  { %4622 = vmatmul.msk.bf16.vlgmr.msrb.gmra.mxu1 %vm427_vm2, %v5706_v54  ;;  %v619_v54 = vperm.slane %v5988_v12, 0  ;;  %v4673_v12 = vld [vmem:[%s7702_s3 + $0x60] sm:$0xf]  ;;  %vm1488_vm2 = vcmask 408576  }
  0x8b   :  { %v134_v11 = vpop.permute.xlu0 %133 }
  0x90   :  { %v475_v5 = vpop.f32.mrf.mxu1 }
  0x94   :  { %v501_v6 = vpop.f32.mrf.mxu3 }
  0x98   :  { %v477_v7 = vpop.f32.mrf.mxu1 }
  0x99   :  { %v4681_v7 = vld [vmem:[%s7702_s3 + $0x70] sm:$0xf] }
  0x9c   :  { %v503_v8 = vpop.f32.mrf.mxu3 }
  0x9d   :  { %v5233_v8 = vld [vmem:[%s7702_s3 + $0x74] sm:$0xf0] }
  0x9e   :  { %v4682_v9 = vor.u32 %v5233_v8, %v4681_v7  ;;  %v4793_v7 = vld [vmem:[%s7702_s3 + $0x150] sm:$0xf] }
  0xa0   :  { %v462_v13 = vpop.f32.mrf.mxu0  ;;  %1342 = vmatpush.bf16.msrb.mxu3 %v4682_v9 }
  0xa1   :  { %v463_v55 = vadd.f32 %v462_v13, %v134_v11 }
  0xa3   :  { %v476_v14 = vadd.f32 %v475_v5, %v463_v55  ;;  %v5249_v5 = vld [vmem:[%s7702_s3 + $0xf4] sm:$0xf0]  ;;  %v5231_v55 = vld [vmem:[%s7702_s3 + $0x64] sm:$0xf0] }
  0xa4   :  { %v527_v15 = vpop.f32.mrf.mxu3 }
  0xa5   :  { %v609_v16 = vmax.f32 %v476_v14, 0.0  ;;  %v4674_v14 = vor.u32 %v5231_v55, %v4673_v12  ;;  %v4865_v12 = vld [vmem:[%s7702_s3 + $0x1e0] sm:$0xf] }
  0xa7   :  { %v5991_v17 = vmul.f32 %v619_v54, %v609_v16  ;;  %v488_v18 = vpop.f32.mrf.mxu2  ;;  %1343 = vmatpush.bf16.msrb.mxu3 %v4674_v14  ;;  %v4729_v54 = vld [vmem:[%s7702_s3 + $0xd0] sm:$0xf] }
  0xa8   :  { %v489_v19 = vadd.f32 %v488_v18, %v134_v11  ;;  %v464_v20 = vpop.f32.mrf.mxu0  ;;  %v4665_v18 = vld [vmem:[%s7702_s3 + $0x50] sm:$0xf] }
  0xaa   :  { %v502_v22 = vadd.f32 %v501_v6, %v489_v19  ;;  %v4746_v6 = vor.u32 %v5249_v5, %v4745_v4  ;;  %v5229_v19 = vld [vmem:[%s7702_s3 + $0x54] sm:$0xf0]  ;;  %v4625_v5 = vld [vmem:[%s7702_s3] sm:$0xf] }
  0xab   :  { %v4666_v20 = vor.u32 %v5229_v19, %v4665_v18  ;;  %v5230_v18 = vld [vmem:[%s7702_s3 + $0x64] sm:$0xf]  ;;  %v4675_v19 = vld [vmem:[%s7702_s3 + $0x68] sm:$0xf0] }
  0xac   :  { %v610_v26 = vmax.f32 %v502_v22, 0.0  ;;  %v529_v28 = vpop.f32.mrf.mxu3  ;;  %1355 = vmatpush.bf16.msra.mxu2 %v4746_v6  ;;  %v4721_v22 = vld [vmem:[%s7702_s3 + $0xc0] sm:$0xf]  ;;  %v5219_v6 = vld [vmem:[%s7702_s3 + $0x4] sm:$0xf0] }
  0xad   :  { %1344 = vmatpush.bf16.msrb.mxu3 %v4666_v20  ;;  %v5227_v28 = vld [vmem:[%s7702_s3 + $0x44] sm:$0xf0] }
  0xae   :  { %v5994_v29 = vmul.f32 %v620_v23, %v610_v26  ;;  %v5243_v23 = vld [vmem:[%s7702_s3 + $0xc4] sm:$0xf0] }
  0xaf   :  { %v514_v24 = vpop.f32.mrf.mxu1  ;;  %v490_v32 = vpop.f32.mrf.mxu2  ;;  %v4722_v26 = vor.u32 %v5243_v23, %v4721_v22  ;;  %v4678_v22 = vor.u32 %v5230_v18, %v4675_v19  ;;  %v4785_v23 = vld [vmem:[%s7702_s3 + $0x140] sm:$0xf] }
  0xb0   :  { %v515_v27 = vadd.f32 %v514_v24, %v134_v11  ;;  %v5385_v34 = vpack.i.bf16 %v5994_v29, %v5991_v17  ;;  %v5241_v32 = vld [vmem:[%s7702_s3 + $0xb4] sm:$0xf0]  ;;  %v4833_v18 = vld [vmem:[%s7702_s3 + $0x1a0] sm:$0xf] }
  0xb2   :  { %v528_v30 = vadd.f32 %v527_v15, %v515_v27  ;;  %v553_v35 = vpop.f32.mrf.mxu0  ;;  %5386 = vrot.lane.b32.xlu0 %v5385_v34, %s5525_s23  ;;  %v5245_v15 = vld [vmem:[%s7702_s3 + $0xd4] sm:$0xf0]  ;;  %v4657_v27 = vld [vmem:[%s7702_s3 + $0x40] sm:$0xf] }
  0xb3   :  { %v4730_v16 = vor.u32 %v5245_v15, %v4729_v54 }
  0xb4   :  { %v611_v33 = vmax.f32 %v528_v30, 0.0  ;;  %v4658_v30 = vor.u32 %v5227_v28, %v4657_v27  ;;  %v4857_v27 = vld [vmem:[%s7702_s3 + $0x1d0] sm:$0xf] }
  0xb6   :  { %v5999_v36 = vmul.f32 %v621_v31, %v611_v33  ;;  %v4713_v31 = vld [vmem:[%s7702_s3 + $0xb0] sm:$0xf]  ;;  %1345 = vmatpush.bf16.msrb.mxu3 %v4658_v30  ;;  %v5277_v30 = vld [vmem:[%s7702_s3 + $0x1d4] sm:$0xf0] }
  0xb7   :  { %v516_v37 = vpop.f32.mrf.mxu1  ;;  %v4714_v33 = vor.u32 %v5241_v32, %v4713_v31  ;;  %v4921_v31 = vld [vmem:[%s7702_s3 + $0x250] sm:$0xf]  ;;  %v5293_v32 = vld [vmem:[%s7702_s3 + $0x254] sm:$0xf0] }
  0xb8   :  { %841 = vrot.lane.b32.xlu1 %v5999_v36, %s5526_s24  ;;  %813 = vrot.lane.b32.xlu2 %v5999_v36, %s5527_s25 }
  0xba   :  { %v555_v42 = vpop.f32.mrf.mxu0  ;;  %5406 = vrot.lane.b32.xlu0 %v5385_v34, %s5528_s26 }
  0xbb   :  { %v5223_v42 = vld [vmem:[%s7702_s3 + $0x24] sm:$0xf0] }
  0xbc   :  { %v540_v38 = vpop.f32.mrf.mxu3 }
  0xbd   :  { %v541_v39 = vadd.f32 %v540_v38, %v134_v11  ;;  %v4705_v38 = vld [vmem:[%s7702_s3 + $0xa0] sm:$0xf] }
  0xbf   :  { %v554_v40 = vadd.f32 %v553_v35, %v541_v39  ;;  %v579_v44 = vpop.f32.mrf.mxu1  ;;  %v5225_v35 = vld [vmem:[%s7702_s3 + $0x34] sm:$0xf0]  ;;  %v5239_v39 = vld [vmem:[%s7702_s3 + $0xa4] sm:$0xf0] }
  0xc0   :  { %5396 = vrot.lane.b32.xlu2 %v5385_v34, %s5529_s27  ;;  %5391 = vrot.lane.b32.xlu1 %v5385_v34, %s5530_s28 }
  0xc1   :  { %v612_v43 = vmax.f32 %v554_v40, 0.0  ;;  %v4641_v40 = vld [vmem:[%s7702_s3 + $0x20] sm:$0xf] }
  0xc2   :  { %5421 = vrot.lane.b32.xlu0 %v5385_v34, %s5526_s24 }
  0xc3   :  { %v6010_v45 = vmul.f32 %v622_v41, %v612_v43  ;;  %v4706_v41 = vor.u32 %v5239_v39, %v4705_v38  ;;  %v4809_v43 = vld [vmem:[%s7702_s3 + $0x170] sm:$0xf] }
  0xc4   :  { %v542_v46 = vpop.f32.mrf.mxu3 }
  0xc5   :  { %v4642_v46 = vor.u32 %v5223_v42, %v4641_v40  ;;  %v5257_v42 = vld [vmem:[%s7702_s3 + $0x134] sm:$0xf0] }
  0xc7   :  { %v581_v25 = vpop.f32.mrf.mxu1 }
  0xc8   :  { %v592_v21 = vpop.f32.mrf.mxu0  ;;  %5411 = vrot.lane.b32.xlu2 %v5385_v34, %s5531_s29  ;;  %5401 = vrot.lane.b32.xlu1 %v5385_v34, %s5532_s30 }
  0xc9   :  { %v566_v47 = vpop.f32.mrf.mxu2  ;;  %v593_v52 = vadd.f32 %v592_v21, %v134_v11 }
  0xca   :  { %v567_v48 = vadd.f32 %v566_v47, %v134_v11  ;;  %v5247_v11 = vld [vmem:[%s7702_s3 + $0xe4] sm:$0xf0]  ;;  %v4697_v47 = vld [vmem:[%s7702_s3 + $0x90] sm:$0xf] }
  0xcb   :  { %v4738_v13 = vor.u32 %v5247_v11, %v4737_v10  ;;  %v4626_v10 = vor.u32 %v5219_v6, %v4625_v5  ;;  %v5261_v11 = vld [vmem:[%s7702_s3 + $0x154] sm:$0xf0]  ;;  %v4905_v6 = vld [vmem:[%s7702_s3 + $0x230] sm:$0xf] }
  0xcc   :  { %v580_v49 = vadd.f32 %v579_v44, %v567_v48  ;;  %v5265_v44 = vld [vmem:[%s7702_s3 + $0x174] sm:$0xf0]  ;;  %v4794_v54 = vor.u32 %v5261_v11, %v4793_v7 }
  0xcd   :  { %1356 = vmatpush.bf16.msra.mxu2 %v4738_v13  ;;  %v4810_v25 = vor.u32 %v5265_v44, %v4809_v43  ;;  %v5237_v48 = vld [vmem:[%s7702_s3 + $0x94] sm:$0xf0]  ;;  %v5279_v13 = vld [vmem:[%s7702_s3 + $0x1e4] sm:$0xf0]  ;;  %v4849_v43 = vld [vmem:[%s7702_s3 + $0x1c0] sm:$0xf] }
  0xce   :  { %v613_v51 = vmax.f32 %v580_v49, 0.0  ;;  %v4698_v49 = vor.u32 %v5237_v48, %v4697_v47  ;;  %v4866_v15 = vor.u32 %v5279_v13, %v4865_v12  ;;  %v5291_v47 = vld [vmem:[%s7702_s3 + $0x244] sm:$0xf0]  ;;  %v5273_v5 = vld [vmem:[%s7702_s3 + $0x1b4] sm:$0xf0] }
  0xcf   :  { %v605_v56 = vpop.f32.mrf.mxu1  ;;  %1368 = vmatpush.bf16.msra.mxu1 %v4810_v25  ;;  %v4913_v25 = vld [vmem:[%s7702_s3 + $0x240] sm:$0xf]  ;;  %v5289_v7 = vld [vmem:[%s7702_s3 + $0x234] sm:$0xf0]  ;;  %v5224_v13 = vld [vmem:[%s7702_s3 + $0x34] sm:$0xf] }
  0xd0   :  { %v6015_v53 = vmul.f32 %v623_v50, %v613_v51  ;;  %v594_v57 = vpop.f32.mrf.mxu0  ;;  %v606_v58 = vadd.f32 %v605_v56, %v593_v52  ;;  %660 = vrot.lane.b32.xlu2 %v6010_v45, %s5525_s23  ;;  %5416 = vrot.lane.b32.xlu1 %v5385_v34, %s5527_s25  ;;  %v4649_v34 = vld [vmem:[%s7702_s3 + $0x30] sm:$0xf]  ;;  %v5221_v51 = vld [vmem:[%s7702_s3 + $0x14] sm:$0xf0]  ;;  %v4906_v12 = vor.u32 %v5289_v7, %v4905_v6 }
  0xd1   :  { %v568_v60 = vpop.f32.mrf.mxu2  ;;  %1357 = vmatpush.bf16.msra.mxu2 %v4730_v16  ;;  %v4650_v37 = vor.u32 %v5225_v35, %v4649_v34  ;;  %v4633_v50 = vld [vmem:[%s7702_s3 + $0x10] sm:$0xf]  ;;  %v4801_v56 = vld [vmem:[%s7702_s3 + $0x160] sm:$0xf]  ;;  %v5263_v57 = vld [vmem:[%s7702_s3 + $0x164] sm:$0xf0]  ;;  %v4922_v34 = vor.u32 %v5293_v32, %v4921_v31 }
  0xd2   :  { %v5435_v61 = vpack.i.bf16 %v6015_v53, %v5999_v36  ;;  %v614_v62 = vmax.f32 %v606_v58, 0.0  ;;  %v4634_v52 = vor.u32 %v5221_v51, %v4633_v50  ;;  %v4873_v58 = vld [vmem:[%s7702_s3 + $0x1f0] sm:$0xf]  ;;  %v5281_v60 = vld [vmem:[%s7702_s3 + $0x1f4] sm:$0xf0]  ;;  %v4914_v50 = vor.u32 %v5291_v47, %v4913_v25 }
  0xd3   :  { %1346 = vmatpush.bf16.msrb.mxu3 %v4650_v37  ;;  %v5228_v35 = vld [vmem:[%s7702_s3 + $0x54] sm:$0xf]  ;;  %v4667_v37 = vld [vmem:[%s7702_s3 + $0x58] sm:$0xf0] }
  0xd4   :  { %5436 = vrot.lane.b32.xlu0 %v5435_v61, %s5529_s27  ;;  %v636_v63 = vmul.f32 %v624_v59, %v614_v62  ;;  %v4802_v59 = vor.u32 %v5263_v57, %v4801_v56  ;;  %v5235_v62 = vld [vmem:[%s7702_s3 + $0x84] sm:$0xf0]  ;;  %v4670_v40 = vor.u32 %v5228_v35, %v4667_v37  ;;  %v5226_v56 = vld [vmem:[%s7702_s3 + $0x44] sm:$0xf]  ;;  %v4659_v57 = vld [vmem:[%s7702_s3 + $0x48] sm:$0xf0] }
  0xd5   :  { %1358 = vmatpush.bf16.msra.mxu2 %v4722_v26  ;;  %v5259_v26 = vld [vmem:[%s7702_s3 + $0x144] sm:$0xf0]  ;;  %v4635_v6 = vld [vmem:[%s7702_s3 + $0x18] sm:$0xf0] }
  0xd6   :  { %643 = vst.msk [vmem:[#allocation2 + $0x28] sm:$0xff] %vm642_vm3, %v636_v63  ;;  %v4874_v63 = vor.u32 %v5281_v60, %v4873_v58  ;;  %1369 = vmatpush.bf16.msra.mxu1 %v4802_v59  ;;  %v4786_v28 = vor.u32 %v5259_v26, %v4785_v23  ;;  %v4897_v23 = vld [vmem:[%s7702_s3 + $0x220] sm:$0xf]  ;;  %v5287_v26 = vld [vmem:[%s7702_s3 + $0x224] sm:$0xf0] }
  0xd7   :  { %v607_v0 = vpop.f32.mrf.mxu1  ;;  %1347 = vmatpush.bf16.msrb.mxu3 %v4642_v46  ;;  %v5275_v46 = vld [vmem:[%s7702_s3 + $0x1c4] sm:$0xf0] }
  0xd8   :  { %5431 = vrot.lane.b32.xlu2 %v5435_v61, %s5530_s28  ;;  %5426 = vrot.lane.b32.xlu1 %v5435_v61, %s5525_s23 }
  0xd9   :  { %1359 = vmatpush.bf16.msra.mxu2 %v4714_v33  ;;  %1381 = vmatpush.bf16.msrb.mxu0 %v4874_v63  ;;  %v4858_v33 = vor.u32 %v5277_v30, %v4857_v27  ;;  %v5255_v63 = vld [vmem:[%s7702_s3 + $0x124] sm:$0xf0]  ;;  %v4898_v30 = vor.u32 %v5287_v26, %v4897_v23 }
  0xda   :  { %1370 = vmatpush.bf16.msra.mxu1 %v4794_v54  ;;  %v4651_v54 = vld [vmem:[%s7702_s3 + $0x38] sm:$0xf0] }
  0xdb   :  { %1348 = vmatpush.bf16.msrb.mxu3 %v4634_v52 }
  0xdc   :  { %5451 = vrot.lane.b32.xlu0 %v5435_v61, %s5531_s29 }
  0xdd   :  { %v779_v1 = vld [vmem:[#allocation2 + $0x28] sm:$0xff]  ;;  %1360 = vmatpush.bf16.msra.mxu2 %v4706_v41  ;;  %1382 = vmatpush.bf16.msrb.mxu0 %v4866_v15  ;;  %v4777_v41 = vld [vmem:[%s7702_s3 + $0x130] sm:$0xf]  ;;  %v4654_v15 = vor.u32 %v5224_v13, %v4651_v54  ;;  %v4881_v13 = vld [vmem:[%s7702_s3 + $0x200] sm:$0xf] }
  0xde   :  { %v5460_v2 = vpack.i.bf16 %v779_v1, %v6015_v53  ;;  %v5455_v3 = vpack.i.bf16 %v6010_v45, %v779_v1  ;;  %v5232_v1 = vld [vmem:[%s7702_s3 + $0x74] sm:$0xf]  ;;  %1371 = vmatpush.bf16.msra.mxu1 %v4786_v28  ;;  %v4778_v44 = vor.u32 %v5257_v42, %v4777_v41  ;;  %v4753_v41 = vld [vmem:[%s7702_s3 + $0x100] sm:$0xf]  ;;  %v5251_v42 = vld [vmem:[%s7702_s3 + $0x104] sm:$0xf0] }
  0xdf   :  { %1349 = vmatpush.bf16.msrb.mxu3 %v4626_v10  ;;  %v4754_v47 = vor.u32 %v5251_v42, %v4753_v41 }
  0xe0   :  { %5441 = vrot.lane.b32.xlu2 %v5435_v61, %s5532_s30  ;;  %5446 = vrot.lane.b32.xlu1 %v5435_v61, %s5528_s26  ;;  %v4689_v61 = vld [vmem:[%s7702_s3 + $0x80] sm:$0xf] }
  0xe1   :  { %1361 = vmatpush.bf16.msra.mxu2 %v4698_v49  ;;  %v4690_v0 = vor.u32 %v5235_v62, %v4689_v61  ;;  %1383 = vmatpush.bf16.msrb.mxu0 %v4858_v33  ;;  %v4850_v49 = vor.u32 %v5275_v46, %v4849_v43  ;;  %v4662_v61 = vor.u32 %v5226_v56, %v4659_v57  ;;  %v4769_v62 = vld [vmem:[%s7702_s3 + $0x120] sm:$0xf]  ;;  %v5222_v33 = vld [vmem:[%s7702_s3 + $0x24] sm:$0xf]  ;;  %v4825_v43 = vld [vmem:[%s7702_s3 + $0x190] sm:$0xf] }
  0xe2   :  { %1372 = vmatpush.bf16.msra.mxu1 %v4778_v44  ;;  %v5285_v56 = vld [vmem:[%s7702_s3 + $0x214] sm:$0xf0] }
  0xe4   :  { %685 = vrot.lane.b32.xlu0 %v6010_v45, %s5530_s28 }
  0xe5   :  { %1362 = vmatpush.bf16.msra.mxu2 %v4690_v0  ;;  %1384 = vmatpush.bf16.msrb.mxu0 %v4850_v49  ;;  %v4841_v0 = vld [vmem:[%s7702_s3 + $0x1b0] sm:$0xf]  ;;  %v5269_v49 = vld [vmem:[%s7702_s3 + $0x194] sm:$0xf0] }
  0xe6   :  { %v4842_v11 = vor.u32 %v5273_v5, %v4841_v0  ;;  %v4747_v0 = vld [vmem:[%s7702_s3 + $0xf8] sm:$0xf0]  ;;  %v5220_v5 = vld [vmem:[%s7702_s3 + $0x14] sm:$0xf] }
  0xe8   :  { %735 = vrot.lane.b32.xlu2 %v6010_v45, %s5532_s30  ;;  %710 = vrot.lane.b32.xlu1 %v6010_v45, %s5529_s27  ;;  %s5544_s30 = smov 115  }
  0xe9   :  { %1385 = vmatpush.bf16.msrb.mxu0 %v4842_v11  ;;  %v4817_v11 = vld [vmem:[%s7702_s3 + $0x180] sm:$0xf] }
  0xec   :  { %760 = vrot.lane.b32.xlu0 %v6010_v45, %s5528_s26 }
  0xf0   :  { %5461 = vrot.lane.b32.xlu2 %v5460_v2, %s5527_s25  ;;  %5456 = vrot.lane.b32.xlu1 %v5455_v3, %s5531_s29  ;;  %v6166_v3 = vld [vmem:[%s7702_s3 + $0x260] sm:$0x11] }
  0xf1   :  { %v1176_v8 = vunpack.c.l.b16 %v6166_v3 }
  0xf3   :  { %v1254_v16 = vpack.c.b16 %v1176_v8, %v1176_v8 }
  0xf4   :  { %815 = vrot.lane.b32.xlu0 %v6010_v45, %s5527_s25 }
  0xf5   :  { %v1337_v20 = vsel %vm431_vm0, %v1254_v16, 0  ;;  %v4761_v16 = vld [vmem:[%s7702_s3 + $0x110] sm:$0xf] }
  0xf6   :  { %1395 = vmatpush.bf16.msra.mxu3 %v1337_v20 }
  0xf8   :  { %843 = vrot.lane.b32.xlu2 %v6010_v45, %s5526_s24  ;;  %5466 = vrot.lane.b32.xlu1 %v5460_v2, %s5526_s24  ;;  %v4683_v2 = vld [vmem:[%s7702_s3 + $0x78] sm:$0xf0]  ;;  %s5539_s24 = smov 118  }
  0xf9   :  { %v4686_v4 = vor.u32 %v5232_v1, %v4683_v2 }
  0xfa   :  { %1396 = vmatpush.bf16.msra.mxu3 %v4922_v34  ;;  %v4643_v34 = vld [vmem:[%s7702_s3 + $0x28] sm:$0xf0] }
  0xfb   :  { %1407 = vmatpush.bf16.msrb.mxu2 %v4686_v4  ;;  %v4770_v4 = vor.u32 %v5255_v63, %v4769_v62  ;;  %v5248_v63 = vld [vmem:[%s7702_s3 + $0xf4] sm:$0xf] }
  0xfd   :  { %1373 = vmatpush.bf16.msra.mxu1 %v4770_v4  ;;  %v4750_v4 = vor.u32 %v5248_v63, %v4747_v0 }
  0xfe   :  { %1397 = vmatpush.bf16.msra.mxu3 %v4914_v50  ;;  %v4889_v50 = vld [vmem:[%s7702_s3 + $0x210] sm:$0xf] }
  0xff   :  { %1408 = vmatpush.bf16.msrb.mxu2 %v4678_v22  ;;  %v5271_v22 = vld [vmem:[%s7702_s3 + $0x1a4] sm:$0xf0]  ;;  %v4890_v62 = vor.u32 %v5285_v56, %v4889_v50  ;;  %v5244_v50 = vld [vmem:[%s7702_s3 + $0xd4] sm:$0xf]  ;;  %v4731_v56 = vld [vmem:[%s7702_s3 + $0xd8] sm:$0xf0] }
 0x100   :  { %v4834_v28 = vor.u32 %v5271_v22, %v4833_v18  ;;  %v5246_v18 = vld [vmem:[%s7702_s3 + $0xe4] sm:$0xf] }
 0x102   :  { %1398 = vmatpush.bf16.msra.mxu3 %v4906_v12  ;;  %1386 = vmatpush.bf16.msrb.mxu0 %v4834_v28  ;;  %v5267_v12 = vld [vmem:[%s7702_s3 + $0x184] sm:$0xf0]  ;;  %v5264_v28 = vld [vmem:[%s7702_s3 + $0x174] sm:$0xf] }
 0x103   :  { %1409 = vmatpush.bf16.msrb.mxu2 %v4670_v40  ;;  %v4646_v40 = vor.u32 %v5222_v33, %v4643_v34 }
 0x106   :  { %1399 = vmatpush.bf16.msra.mxu3 %v4898_v30  ;;  %v4811_v30 = vld [vmem:[%s7702_s3 + $0x178] sm:$0xf0] }
 0x107   :  { %1410 = vmatpush.bf16.msrb.mxu2 %v4662_v61  ;;  %v4826_v61 = vor.u32 %v5269_v49, %v4825_v43  ;;  %v5280_v43 = vld [vmem:[%s7702_s3 + $0x1f4] sm:$0xf] }
 0x109   :  { %1387 = vmatpush.bf16.msrb.mxu0 %v4826_v61  ;;  %v4734_v61 = vor.u32 %v5244_v50, %v4731_v56 }
 0x10a   :  { %1400 = vmatpush.bf16.msra.mxu3 %v4890_v62  ;;  %v4803_v62 = vld [vmem:[%s7702_s3 + $0x168] sm:$0xf0] }
 0x10b   :  { %1411 = vmatpush.bf16.msrb.mxu2 %v4654_v15 }
 0x10f   :  { %1412 = vmatpush.bf16.msrb.mxu2 %v4646_v40  ;;  %v4627_v40 = vld [vmem:[%s7702_s3 + $0x8] sm:$0xf0] }
 0x112   :  { %v6087_v24 = vpop.permute.xlu2 %813 }
 0x11a   :  { %v6125_v21 = vpop.permute.xlu2 %5396 }
 0x11b   :  { %v5399_v1 = vunpack.i.h.bf16 %v6125_v21  ;;  %v5398_v8 = vunpack.i.l.bf16 %v6125_v21  ;;  %v4851_v21 = vld [vmem:[%s7702_s3 + $0x1c8] sm:$0xf0] }
 0x11d   :  { %v715_v31 = vsel %vm714_vm6, %v5398_v8, %v5399_v1  ;;  %v4638_v8 = vor.u32 %v5220_v5, %v4635_v6  ;;  %v5278_v5 = vld [vmem:[%s7702_s3 + $0x1e4] sm:$0xf]  ;;  %v4867_v6 = vld [vmem:[%s7702_s3 + $0x1e8] sm:$0xf0] }
 0x11f   :  { %1413 = vmatpush.bf16.msrb.mxu2 %v4638_v8 }
 0x122   :  { %v6189_v55 = vpop.permute.xlu2 %5411 }
 0x123   :  { %v5414_v44 = vunpack.i.h.bf16 %v6189_v55  ;;  %v5413_v57 = vunpack.i.l.bf16 %v6189_v55 }
 0x124   :  { %v6178_v9 = vpop.permute.xlu0 %5386 }
 0x125   :  { %v5389_v38 = vunpack.i.h.bf16 %v6178_v9  ;;  %v5388_v39 = vunpack.i.l.bf16 %v6178_v9  ;;  %v794_v54 = vsel %vm793_vm9, %v5413_v57, %v5414_v44  ;;  %v5262_v57 = vld [vmem:[%s7702_s3 + $0x164] sm:$0xf]  ;;  %v5240_v9 = vld [vmem:[%s7702_s3 + $0xb4] sm:$0xf] }
 0x127   :  { %v665_v58 = vsel %vm664_vm4, %v5388_v39, %v5389_v38 }
 0x128   :  { %v674_v10 = vmax.f32 %v5991_v17, %v665_v58  ;;  %v5253_v17 = vld [vmem:[%s7702_s3 + $0x114] sm:$0xf0] }
 0x129   :  { %v4762_v20 = vor.u32 %v5253_v17, %v4761_v16  ;;  %v4818_v16 = vor.u32 %v5267_v12, %v4817_v11  ;;  %v5283_v17 = vld [vmem:[%s7702_s3 + $0x204] sm:$0xf0]  ;;  %v4723_v11 = vld [vmem:[%s7702_s3 + $0xc8] sm:$0xf0]  ;;  %v5260_v12 = vld [vmem:[%s7702_s3 + $0x154] sm:$0xf] }
 0x12a   :  { %v6191_v14 = vpop.permute.xlu1 %841  ;;  %v6258_v59 = vpop.permute.xlu2 %660  ;;  %v4882_v33 = vor.u32 %v5283_v17, %v4881_v13 }
 0x12b   :  { %1374 = vmatpush.bf16.msra.mxu1 %v4762_v20  ;;  %1388 = vmatpush.bf16.msrb.mxu0 %v4818_v16  ;;  %v4795_v16 = vld [vmem:[%s7702_s3 + $0x158] sm:$0xf0] }
 0x12c   :  { %v6246_v51 = vpop.permute.xlu0 %5406  ;;  %1401 = vmatpush.bf16.msra.mxu3 %v4882_v33 }
 0x12d   :  { %v5409_v32 = vunpack.i.h.bf16 %v6246_v51  ;;  %v5408_v35 = vunpack.i.l.bf16 %v6246_v51  ;;  %v5254_v51 = vld [vmem:[%s7702_s3 + $0x124] sm:$0xf] }
 0x12f   :  { %v765_v7 = vsel %vm764_vm7, %v5408_v35, %v5409_v32  ;;  %1375 = vmatpush.bf16.msra.mxu1 %v4754_v47  ;;  %v4814_v35 = vor.u32 %v5264_v28, %v4811_v30  ;;  %v4870_v28 = vor.u32 %v5278_v5, %v4867_v6  ;;  %v5276_v30 = vld [vmem:[%s7702_s3 + $0x1d4] sm:$0xf] }
 0x131   :  { %1433 = vmatpush.bf16.msra.mxu0 %v4814_v35 }
 0x132   :  { %v6244_v48 = vpop.permute.xlu1 %5391  ;;  %v6346_v58 = vpop.permute.xlu2 %5431 }
 0x133   :  { %v5394_v52 = vunpack.i.h.bf16 %v6244_v48  ;;  %v5393_v60 = vunpack.i.l.bf16 %v6244_v48  ;;  %1420 = vmatpush.bf16.msrb.mxu1 %v4750_v4  ;;  %v5433_v13 = vunpack.i.l.bf16 %v6346_v58 }
 0x134   :  { %v6334_v25 = vpop.permute.xlu0 %5421 }
 0x135   :  { %v690_v2 = vsel %vm689_vm5, %v5393_v60, %v5394_v52  ;;  %v5424_v20 = vunpack.i.h.bf16 %v6334_v25  ;;  %v5423_v22 = vunpack.i.l.bf16 %v6334_v25  ;;  %v691_v35 = vsel %vm689_vm5, %v5394_v52, %v5433_v13  ;;  %v4763_v25 = vld [vmem:[%s7702_s3 + $0x118] sm:$0xf0] }
 0x136   :  { %v699_v19 = vmax.f32 %v674_v10, %v690_v2 }
 0x137   :  { %v851_v55 = vsel %vm849_vm10, %v5424_v20, %v6191_v14 }
 0x138   :  { %v724_v46 = vmax.f32 %v699_v19, %v715_v31  ;;  %v4739_v19 = vld [vmem:[%s7702_s3 + $0xe8] sm:$0xf0] }
 0x139   :  { %v4742_v34 = vor.u32 %v5246_v18, %v4739_v19  ;;  %v4798_v18 = vor.u32 %v5260_v12, %v4795_v16  ;;  %v5236_v12 = vld [vmem:[%s7702_s3 + $0x94] sm:$0xf] }
 0x13a   :  { %v6309_v27 = vpop.permute.xlu1 %5401  ;;  %v6431_v63 = vpop.permute.xlu2 %5441 }
 0x13b   :  { %v5404_v37 = vunpack.i.h.bf16 %v6309_v27  ;;  %v5403_v39 = vunpack.i.l.bf16 %v6309_v27  ;;  %1421 = vmatpush.bf16.msrb.mxu1 %v4742_v34  ;;  %v5258_v34 = vld [vmem:[%s7702_s3 + $0x144] sm:$0xf] }
 0x13d   :  { %v740_v60 = vsel %vm739_vm8, %v5403_v39, %v5404_v37  ;;  %v5218_v39 = vld [vmem:[%s7702_s3 + $0x4] sm:$0xf] }
 0x13e   :  { %v749_v2 = vmax.f32 %v724_v46, %v740_v60  ;;  %v4875_v46 = vld [vmem:[%s7702_s3 + $0x1f8] sm:$0xf0]  ;;  %v4630_v47 = vor.u32 %v5218_v39, %v4627_v40  ;;  %v850_v60 = vsel %vm849_vm10, %v5423_v22, %v5424_v20  ;;  %v4787_v39 = vld [vmem:[%s7702_s3 + $0x148] sm:$0xf0] }
 0x13f   :  { %v4878_v4 = vor.u32 %v5280_v43, %v4875_v46  ;;  %1422 = vmatpush.bf16.msrb.mxu1 %v4734_v61  ;;  %v4790_v43 = vor.u32 %v5258_v34, %v4787_v39 }
 0x140   :  { %v774_v10 = vmax.f32 %v749_v2, %v765_v7  ;;  %1414 = vmatpush.bf16.msrb.mxu2 %v4630_v47  ;;  %v4806_v2 = vor.u32 %v5262_v57, %v4803_v62  ;;  %v5274_v47 = vld [vmem:[%s7702_s3 + $0x1c4] sm:$0xf]  ;;  %v4707_v57 = vld [vmem:[%s7702_s3 + $0xa8] sm:$0xf0] }
 0x142   :  { %v6378_v15 = vpop.permute.xlu1 %5416  ;;  %v804_v31 = vmax.f32 %v774_v10, %v794_v54  ;;  %v5242_v10 = vld [vmem:[%s7702_s3 + $0xc4] sm:$0xf]  ;;  %1434 = vmatpush.bf16.msra.mxu0 %v4806_v2  ;;  %v4779_v2 = vld [vmem:[%s7702_s3 + $0x138] sm:$0xf0] }
 0x143   :  { %v5419_v23 = vunpack.i.h.bf16 %v6378_v15  ;;  %v5418_v26 = vunpack.i.l.bf16 %v6378_v15  ;;  %v4726_v17 = vor.u32 %v5242_v10, %v4723_v11  ;;  %v4854_v11 = vor.u32 %v5274_v47, %v4851_v21 }
 0x145   :  { %v822_v41 = vsel %vm821_vm11, %v5418_v26, %v5419_v23  ;;  %1423 = vmatpush.bf16.msrb.mxu1 %v4726_v17  ;;  %v5272_v17 = vld [vmem:[%s7702_s3 + $0x1b4] sm:$0xf] }
 0x146   :  { %v6408_v42 = vpop.permute.xlu0 %5436  ;;  %v832_v49 = vmax.f32 %v804_v31, %v822_v41  ;;  %v4859_v31 = vld [vmem:[%s7702_s3 + $0x1d8] sm:$0xf0]  ;;  %1435 = vmatpush.bf16.msra.mxu0 %v4798_v18 }
 0x147   :  { %v5438_v19 = vunpack.i.l.bf16 %v6408_v42  ;;  %v4862_v52 = vor.u32 %v5276_v30, %v4859_v31  ;;  %v4843_v18 = vld [vmem:[%s7702_s3 + $0x1b8] sm:$0xf0]  ;;  %v5439_v20 = vunpack.i.h.bf16 %v6408_v42  ;;  %v5444_v42 = vunpack.i.h.bf16 %v6431_v63 }
 0x148   :  { %v860_v0 = vmax.f32 %v832_v49, %v850_v60  ;;  %v6498_v49 = vpop.permute.xlu2 %735  ;;  %v4846_v34 = vor.u32 %v5272_v17, %v4843_v18 }
 0x149   :  { %v716_v46 = vsel %vm714_vm6, %v5399_v1, %v5438_v19  ;;  %v5238_v1 = vld [vmem:[%s7702_s3 + $0xa4] sm:$0xf] }
 0x14a   :  { %v6439_v7 = vpop.permute.xlu1 %5426  ;;  %v6441_v8 = vpack.c.bf16 %v860_v0, %v860_v0  ;;  %1436 = vmatpush.bf16.msra.mxu0 %v4790_v43  ;;  %v5256_v0 = vld [vmem:[%s7702_s3 + $0x134] sm:$0xf]  ;;  %v4710_v5 = vor.u32 %v5238_v1, %v4707_v57  ;;  %v4835_v43 = vld [vmem:[%s7702_s3 + $0x1a8] sm:$0xf0] }
 0x14b   :  { %v5428_v54 = vunpack.i.l.bf16 %v6439_v7  ;;  %v5429_v48 = vunpack.i.h.bf16 %v6439_v7  ;;  %v4782_v6 = vor.u32 %v5256_v0, %v4779_v2  ;;  %v5268_v2 = vld [vmem:[%s7702_s3 + $0x194] sm:$0xf] }
 0x14c   :  { %1350 = vmatmul.bf16.vlgmr.msrb.gmra.mxu3 %v6441_v8 }
 0x14d   :  { %v666_v22 = vsel %vm664_vm4, %v5389_v38, %v5428_v54  ;;  %1446 = vmatpush.bf16.msrb.mxu3 %v4878_v4  ;;  %v4715_v38 = vld [vmem:[%s7702_s3 + $0xb8] sm:$0xf0]  ;;  %v678_v27 = vmax.f32 %v6015_v53, %v5429_v48  ;;  %v667_v7 = vsel %vm664_vm4, %v5428_v54, %v6258_v59  ;;  %v1177_v54 = vunpack.c.h.b16 %v6166_v3 }
 0x14e   :  { %v6462_v26 = vpop.permute.xlu0 %5451  ;;  %v675_v33 = vmax.f32 %v5994_v29, %v666_v22  ;;  %v5443_v29 = vunpack.i.l.bf16 %v6431_v63  ;;  %v4718_v41 = vor.u32 %v5240_v9, %v4715_v38  ;;  %v4699_v53 = vld [vmem:[%s7702_s3 + $0x98] sm:$0xf0]  ;;  %v668_v30 = vsel %vm664_vm4, %v6258_v59, %v5429_v48  ;;  %1437 = vmatpush.bf16.msra.mxu0 %v4782_v6  ;;  %v5234_v9 = vld [vmem:[%s7702_s3 + $0x84] sm:$0xf]  ;;  %v5252_v38 = vld [vmem:[%s7702_s3 + $0x114] sm:$0xf] }
 0x14f   :  { %v5453_v61 = vunpack.i.l.bf16 %v6462_v26  ;;  %v4702_v22 = vor.u32 %v5236_v12, %v4699_v53  ;;  %v823_v59 = vsel %vm821_vm11, %v5419_v23, %v6087_v24  ;;  %v4766_v47 = vor.u32 %v5252_v38, %v4763_v25  ;;  %v5250_v6 = vld [vmem:[%s7702_s3 + $0x104] sm:$0xf]  ;;  %v4923_v12 = vld [vmem:[%s7702_s3 + $0x258] sm:$0xf0] }
 0x150   :  { %v700_v40 = vmax.f32 %v675_v33, %v691_v35  ;;  %1424 = vmatpush.bf16.msrb.mxu1 %v4718_v41  ;;  %v741_v60 = vsel %vm739_vm8, %v5404_v37, %v5443_v29  ;;  %v5270_v41 = vld [vmem:[%s7702_s3 + $0x1a4] sm:$0xf]  ;;  %v743_v63 = vsel %vm739_vm8, %v6498_v49, %v5444_v42 }
 0x151   :  { %1447 = vmatpush.bf16.msrb.mxu3 %v4870_v28  ;;  %v4771_v28 = vld [vmem:[%s7702_s3 + $0x128] sm:$0xf0]  ;;  %v795_v3 = vsel %vm793_vm9, %v5414_v44, %v5453_v61  ;;  %v4838_v0 = vor.u32 %v5270_v41, %v4835_v43 }
 0x152   :  { %v6500_v50 = vpop.permute.xlu1 %5446  ;;  %v725_v56 = vmax.f32 %v700_v40, %v716_v46  ;;  %v4774_v33 = vor.u32 %v5254_v51, %v4771_v28 }
 0x153   :  { %v5448_v62 = vunpack.i.l.bf16 %v6500_v50 }
 0x154   :  { %v750_v4 = vmax.f32 %v725_v56, %v741_v60  ;;  %1425 = vmatpush.bf16.msrb.mxu1 %v4710_v5  ;;  %1438 = vmatpush.bf16.msra.mxu0 %v4774_v33  ;;  %v6596_v56 = vpop.permute.xlu2 %5461  ;;  %v4827_v5 = vld [vmem:[%s7702_s3 + $0x198] sm:$0xf0] }
 0x155   :  { %v766_v37 = vsel %vm764_vm7, %v5409_v32, %v5448_v62  ;;  %1448 = vmatpush.bf16.msrb.mxu3 %v4862_v52  ;;  %v5434_v32 = vunpack.i.h.bf16 %v6346_v58  ;;  %v676_v58 = vmax.f32 %v5999_v36, %v667_v7  ;;  %v677_v36 = vmax.f32 %v6010_v45, %v668_v30 }
 0x156   :  { %v686_v10 = vpop.permute.xlu0 %685  ;;  %v775_v16 = vmax.f32 %v750_v4, %v766_v37  ;;  %v1255_v45 = vpack.c.b16 %v1177_v54, %v1177_v54  ;;  %v742_v37 = vsel %vm739_vm8, %v5443_v29, %v6498_v49  ;;  %v5449_v29 = vunpack.i.h.bf16 %v6500_v50  ;;  %v4915_v54 = vld [vmem:[%s7702_s3 + $0x248] sm:$0xf0]  ;;  %v5266_v50 = vld [vmem:[%s7702_s3 + $0x184] sm:$0xf] }
 0x157   :  { %v692_v31 = vsel %vm689_vm5, %v5433_v13, %v686_v10  ;;  %v4691_v13 = vld [vmem:[%s7702_s3 + $0x88] sm:$0xf0]  ;;  %v703_v15 = vmax.f32 %v678_v27, %v5434_v32  ;;  %v693_v23 = vsel %vm689_vm5, %v686_v10, %v5434_v32  ;;  %v4830_v17 = vor.u32 %v5268_v2, %v4827_v5 }
 0x158   :  { %v805_v44 = vmax.f32 %v775_v16, %v795_v3  ;;  %v701_v35 = vmax.f32 %v676_v58, %v692_v31  ;;  %1426 = vmatpush.bf16.msrb.mxu1 %v4702_v22  ;;  %v4694_v46 = vor.u32 %v5234_v9, %v4691_v13  ;;  %v702_v21 = vmax.f32 %v677_v36, %v693_v23  ;;  %v4755_v27 = vld [vmem:[%s7702_s3 + $0x108] sm:$0xf0]  ;;  %v5290_v16 = vld [vmem:[%s7702_s3 + $0x244] sm:$0xf] }
 0x159   :  { %1449 = vmatpush.bf16.msrb.mxu3 %v4854_v11  ;;  %v1340_v10 = vsel %vm431_vm0, %v1255_v45, 0  ;;  %v5292_v11 = vld [vmem:[%s7702_s3 + $0x254] sm:$0xf]  ;;  %1439 = vmatpush.bf16.msra.mxu0 %v4766_v47  ;;  %v4758_v53 = vor.u32 %v5250_v6, %v4755_v27  ;;  %v5454_v3 = vunpack.i.h.bf16 %v6462_v26  ;;  %v5464_v36 = vunpack.i.h.bf16 %v6596_v56 }
 0x15a   :  { %v711_v39 = vpop.permute.xlu1 %710  ;;  %v833_v40 = vmax.f32 %v805_v44, %v823_v59  ;;  %v4926_v28 = vor.u32 %v5292_v11, %v4923_v12  ;;  %v5288_v26 = vld [vmem:[%s7702_s3 + $0x234] sm:$0xf]  ;;  %v5282_v11 = vld [vmem:[%s7702_s3 + $0x204] sm:$0xf]  ;;  %v4883_v12 = vld [vmem:[%s7702_s3 + $0x208] sm:$0xf0] }
 0x15b   :  { %v717_v48 = vsel %vm714_vm6, %v5438_v19, %v711_v39  ;;  %v718_v52 = vsel %vm714_vm6, %v711_v39, %v5439_v20  ;;  %v728_v19 = vmax.f32 %v703_v15, %v5439_v20  ;;  %v5284_v27 = vld [vmem:[%s7702_s3 + $0x214] sm:$0xf]  ;;  %vm1593_vm6 = vcmask 867328  }
 0x15c   :  { %v726_v1 = vmax.f32 %v701_v35, %v717_v48  ;;  %v861_v57 = vmax.f32 %v833_v40, %v851_v55  ;;  %v727_v4 = vmax.f32 %v702_v21, %v718_v52  ;;  %1427 = vmatpush.bf16.msrb.mxu1 %v4694_v46  ;;  %v4918_v55 = vor.u32 %v5290_v16, %v4915_v54  ;;  %v844_v25 = vpop.permute.xlu2 %843 }
 0x15d   :  { %1450 = vmatpush.bf16.msrb.mxu3 %v4846_v34  ;;  %v753_v18 = vmax.f32 %v728_v19, %v5444_v42  ;;  %1440 = vmatpush.bf16.msra.mxu0 %v4758_v53  ;;  %v5463_v35 = vunpack.i.l.bf16 %v6596_v56  ;;  %v852_v43 = vsel %vm849_vm10, %v6191_v14, %v844_v25  ;;  %v4899_v14 = vld [vmem:[%s7702_s3 + $0x228] sm:$0xf0]  ;;  %v4886_v53 = vor.u32 %v5282_v11, %v4883_v12 }
 0x15e   :  { %v761_v60 = vpop.permute.xlu0 %760  ;;  %v6615_v7 = vpack.c.bf16 %v861_v57, %v861_v57  ;;  %v751_v51 = vmax.f32 %v726_v1, %v742_v37  ;;  %v752_v49 = vmax.f32 %v727_v4, %v743_v63  ;;  %v4891_v37 = vld [vmem:[%s7702_s3 + $0x218] sm:$0xf0]  ;;  %vm1579_vm8 = vcmask 875520  }
 0x15f   :  { %v767_v32 = vsel %vm764_vm7, %v5448_v62, %v761_v60  ;;  %v4819_v62 = vld [vmem:[%s7702_s3 + $0x188] sm:$0xf0]  ;;  %v768_v30 = vsel %vm764_vm7, %v761_v60, %v5449_v29  ;;  %v778_v20 = vmax.f32 %v753_v18, %v5449_v29  ;;  %v826_v45 = vsel %vm821_vm11, %v5463_v35, %v5464_v36  ;;  %v5286_v60 = vld [vmem:[%s7702_s3 + $0x224] sm:$0xf] }
 0x160   :  { %1363 = vmatmul.bf16.vlgmr.msra.gmra.mxu2 %v6615_v7  ;;  %v776_v9 = vmax.f32 %v751_v51, %v767_v32  ;;  %v4822_v38 = vor.u32 %v5266_v50, %v4819_v62  ;;  %v777_v15 = vmax.f32 %v752_v49, %v768_v30  ;;  %v4902_v4 = vor.u32 %v5286_v60, %v4899_v14 }
 0x161   :  { %1451 = vmatpush.bf16.msrb.mxu3 %v4838_v0  ;;  %1460 = vmatpush.bf16.msra.mxu2 %v1340_v10  ;;  %v4894_v10 = vor.u32 %v5284_v27, %v4891_v37  ;;  %v5540_v60 = vmov 1  }
 0x162   :  { %v5457_v22 = vpop.permute.xlu1 %5456  ;;  %5470 = vset.pattern.permute.xlu0 %v5540_v60 }
 0x163   :  { %v5459_v31 = vunpack.i.h.bf16 %v5457_v22  ;;  %v5458_v33 = vunpack.i.l.bf16 %v5457_v22 }
 0x165   :  { %v798_v59 = vsel %vm793_vm9, %v5454_v3, %v5458_v33  ;;  %v796_v58 = vsel %vm793_vm9, %v5453_v61, %v5459_v31  ;;  %v797_v13 = vsel %vm793_vm9, %v5459_v31, %v5454_v3  ;;  %1452 = vmatpush.bf16.msrb.mxu3 %v4830_v17  ;;  %1461 = vmatpush.bf16.msra.mxu2 %v4926_v28  ;;  %v4907_v61 = vld [vmem:[%s7702_s3 + $0x238] sm:$0xf0]  ;;  %s5533_s3 = smov 11   ;;  %vm1638_vm9 = vcmask 1043456  }
 0x166   :  { %v816_v44 = vpop.permute.xlu0 %815  ;;  %v806_v23 = vmax.f32 %v776_v9, %v796_v58  ;;  %v808_v39 = vmax.f32 %v778_v20, %v798_v59  ;;  %v807_v40 = vmax.f32 %v777_v15, %v797_v13  ;;  %v4910_v52 = vor.u32 %v5288_v26, %v4907_v61 }
 0x167   :  { %v824_v34 = vsel %vm821_vm11, %v6087_v24, %v816_v44  ;;  %v825_v24 = vsel %vm821_vm11, %v816_v44, %v5463_v35  ;;  %v5534_v15 = vmov 0.0   ;;  %vm1538_vm11 = vcmask 957440  }
 0x168   :  { %v834_v41 = vmax.f32 %v806_v23, %v824_v34  ;;  %v835_v21 = vmax.f32 %v807_v40, %v825_v24  ;;  %v836_v57 = vmax.f32 %v808_v39, %v826_v45  ;;  %29 = vst.msk [vmem:[#allocation3] sm:$0xff] %vm28_vm13, %v5534_v15 }
 0x169   :  { %1453 = vmatpush.bf16.msrb.mxu3 %v4822_v38  ;;  %1462 = vmatpush.bf16.msra.mxu2 %v4918_v55  ;;  %32 = vst.msk [vmem:[#allocation4] sm:$0xff] %vm28_vm13, %v5534_v15 }
 0x16a   :  { %v862_v46 = vmax.f32 %v834_v41, %v852_v43  ;;  %v5467_v48 = vpop.permute.xlu1 %5466  ;;  %31 = vst.msk [vmem:[#allocation3 + $0x8] sm:$0xff] %vm30_vm14, %v5534_v15 }
 0x16b   :  { %v5469_v47 = vunpack.i.h.bf16 %v5467_v48  ;;  %v5468_v56 = vunpack.i.l.bf16 %v5467_v48  ;;  %33 = vst.msk [vmem:[#allocation4 + $0x8] sm:$0xff] %vm30_vm14, %v5534_v15  ;;  %vm1634_vm14 = vcmask 588800  }
 0x16c   :  { %v867_v1 = vpack.c.bf16 %v862_v46, %v862_v46 }
 0x16d   :  { %v853_v0 = vsel %vm849_vm10, %v844_v25, %v5468_v56  ;;  %v854_v2 = vsel %vm849_vm10, %v5468_v56, %v5469_v47  ;;  %1463 = vmatpush.bf16.msra.mxu2 %v4910_v52  ;;  %vm1552_vm10 = vcmask 949248  }
 0x16e   :  { %v864_v42 = vmax.f32 %v836_v57, %v854_v2  ;;  %1376 = vmatmul.bf16.vlgmr.msra.gmra.mxu1 %v867_v1  ;;  %v863_v19 = vmax.f32 %v835_v21, %v853_v0  ;;  %v6746_v57 = vld [vmem:[%s7701_s2] sm:$0xff] }
 0x170   :  { %v869_v5 = vpack.c.bf16 %v864_v42, %v864_v42  ;;  %v868_v6 = vpack.c.bf16 %v863_v19, %v863_v19  ;;  %1415 = vmatmul.bf16.vlgmr.msrb.gmra.mxu2 %v6441_v8 }
 0x171   :  { %1464 = vmatpush.bf16.msra.mxu2 %v4902_v4 }
 0x172   :  { %1389 = vmatmul.bf16.vlgmr.msrb.gmra.mxu0 %v868_v6  ;;  %4927 = vmatmul.msk.bf16.vlgmr.msra.gmra.mxu3 %vm1332_vm12, %v869_v5 }
 0x175   :  { %1465 = vmatpush.bf16.msra.mxu2 %v4894_v10 }
 0x179   :  { %1466 = vmatpush.bf16.msra.mxu2 %v4886_v53 }
 0x17e   :  { %1428 = vmatmul.bf16.vlgmr.msrb.gmra.mxu1 %v6615_v7 }
 0x180   :  { %4928 = vmatmul.msk.bf16.vlgmr.msra.gmra.mxu2 %vm1332_vm12, %v869_v5  ;;  %vm1524_vm12 = vcmask 965632  }
 0x182   :  { %1441 = vmatmul.bf16.vlgmr.msra.gmra.mxu0 %v867_v1  ;;  %1454 = vmatmul.bf16.vlgmr.msrb.gmra.mxu3 %v868_v6 }
 0x1cf   :  { %v1351_v8 = vpop.f32.mrf.mxu3 }
 0x1d7   :  { %v1353_v51 = vpop.f32.mrf.mxu3 }
 0x1e3   :  { %v1364_v63 = vpop.f32.mrf.mxu2 }
 0x1e4   :  { %v1365_v54 = vadd.f32 %v1364_v63, %v1351_v8 }
 0x1eb   :  { %v1377_v29 = vpop.f32.mrf.mxu1  ;;  %v1366_v32 = vpop.f32.mrf.mxu2 }
 0x1ec   :  { %v1378_v17 = vadd.f32 %v1377_v29, %v1365_v54 }
 0x1ef   :  { %v1390_v16 = vpop.f32.mrf.mxu0 }
 0x1f0   :  { %v1391_v49 = vadd.f32 %v1390_v16, %v1378_v17 }
 0x1f3   :  { %v1379_v18 = vpop.f32.mrf.mxu1  ;;  %v1416_v22 = vpop.f32.mrf.mxu2 }
 0x1f5   :  { %v1403_v28 = vpop.f32.mrf.mxu3 }
 0x1f6   :  { %v1404_v50 = vadd.f32 %v1403_v28, %v1391_v49 }
 0x1f7   :  { %v1392_v62 = vpop.f32.mrf.mxu0 }
 0x1f8   :  { %1474 = vrot.lane.b32.xlu0 %v1404_v50, %s5533_s3  ;;  %v1599_v62 = vld [vmem:[%s7700_s1 + $0x8] sm:$0xf] }
 0x1fb   :  { %v1429_v7 = vpop.f32.mrf.mxu1  ;;  %v1418_v3 = vpop.f32.mrf.mxu2 }
 0x1fc   :  { %v1430_v33 = vadd.f32 %v1429_v7, %v1416_v22 }
 0x1fd   :  { %v1405_v30 = vpop.f32.mrf.mxu3 }
 0x1ff   :  { %v1442_v31 = vpop.f32.mrf.mxu0 }
 0x200   :  { %v1443_v55 = vadd.f32 %v1442_v31, %v1430_v33 }
 0x203   :  { %v1431_v9 = vpop.f32.mrf.mxu1  ;;  %v1468_v59 = vpop.f32.mrf.mxu2 }
 0x204   :  { %v4931_v9 = vld [vmem:[%s7704_s5 + $0x30] ss:$8 sm:$0x3] }
 0x205   :  { %v1455_v44 = vpop.f32.mrf.mxu3 }
 0x206   :  { %v1456_v58 = vadd.f32 %v1455_v44, %v1443_v55  ;;  %v1676_v44 = vperm.slane %v4931_v9, 0 }
 0x207   :  { %v1444_v13 = vpop.f32.mrf.mxu0 }
 0x208   :  { %v1469_v38 = vadd.f32 %v1468_v59, %v1456_v58 }
 0x20a   :  { %1476 = vrot.lane.b32.xlu1 %v1469_v38, %s5533_s3 }
 0x20b   :  { %v1470_v25 = vpop.f32.mrf.mxu2 }
 0x20d   :  { %v1457_v20 = vpop.f32.mrf.mxu3 }
 0x20e   :  { %v1677_v20 = vperm.slane %v4931_v9, 1 }
 0x26a   :  { %v1475_v23 = vpop.permute.xlu0 %1474 }
 0x26b   :  { %1482 = vst.msk [vmem:[#allocation3] sm:$0xff] %vm1481_vm15, %v1475_v23 }
 0x272   :  { %v6697_v34 = vld [vmem:[#allocation3] sm:$0xff] }
 0x273   :  { %1589 = vrot.lane.b32.xlu2 %v6697_v34, %s5535_s20  ;;  %1575 = vrot.lane.b32.xlu0 %v6697_v34, %s5536_s0 }
 0x274   :  { %1562 = vrot.lane.b32.xlu1 %v6697_v34, %s5528_s26 }
 0x27b   :  { %1534 = vrot.lane.b32.xlu2 %v6697_v34, %s5537_s21  ;;  %1507 = vrot.lane.b32.xlu0 %v6697_v34, %s5530_s28 }
 0x27c   :  { %1548 = vrot.lane.b32.xlu1 %v6697_v34, %s5538_s22  ;;  %v1477_v36 = vpop.permute.xlu1 %1476 }
 0x27d   :  { %v1478_v35 = vsel %vm28_vm13, %v1475_v23, %v1477_v36 }
 0x27e   :  { %1484 = vst.msk [vmem:[#allocation3 + $0x8] sm:$0xff] %vm1483_vm1, %v1478_v35 }
 0x283   :  { %1520 = vrot.lane.b32.xlu2 %v6697_v34, %s5539_s24 }
 0x285   :  { %v6715_v26 = vld [vmem:[#allocation3 + $0x8] sm:$0xff] }
 0x286   :  { %1577 = vrot.lane.b32.xlu1 %v6715_v26, %s5536_s0  ;;  %1591 = vrot.lane.b32.xlu0 %v6715_v26, %s5535_s20  ;;  %1489 = vst.msk [vmem:[#allocation10 + $0x8] sm:$0xff] %vm1488_vm2, %v6715_v26 }
 0x28b   :  { %1564 = vrot.lane.b32.xlu2 %v6715_v26, %s5528_s26 }
 0x28d   :  { %v1601_v30 = vld [vmem:[#allocation10 + $0x8] sm:$0xff] }
 0x28e   :  { %1509 = vrot.lane.b32.xlu1 %v6715_v26, %s5530_s28  ;;  %1536 = vrot.lane.b32.xlu0 %v6715_v26, %s5537_s21 }
 0x293   :  { %1550 = vrot.lane.b32.xlu2 %v6715_v26, %s5538_s22 }
 0x296   :  { %1522 = vrot.lane.b32.xlu0 %v6715_v26, %s5539_s24  ;;  %1494 = vrot.lane.b32.xlu1 %v6697_v34, %s5525_s23 }
 0x29b   :  { %1496 = vrot.lane.b32.xlu2 %v6715_v26, %s5525_s23 }
 0x29e   :  { %1631 = vperm.xlu0 %5470, %v6746_v57  }
 0x2cd   :  { %v1590_v61 = vpop.permute.xlu2 %1589 }
 0x2d5   :  { %v1535_v39 = vpop.permute.xlu2 %1534 }
 0x2dd   :  { %v1521_v40 = vpop.permute.xlu2 %1520 }
 0x2e5   :  { %v1565_v41 = vpop.permute.xlu2 %1564  ;;  %v1576_v43 = vpop.permute.xlu0 %1575 }
 0x2e6   :  { %v1563_v24 = vpop.permute.xlu1 %1562  ;;  %1570 = vst.msk [vmem:[#allocation10 + $0x68] sm:$0xff] %vm1488_vm2, %v1565_v41 }
 0x2e7   :  { %v1566_v2 = vsel %vm764_vm7, %v1563_v24, %v1565_v41 }
 0x2ed   :  { %v1551_v46 = vpop.permute.xlu2 %1550  ;;  %v1508_v52 = vpop.permute.xlu0 %1507  ;;  %v1613_v53 = vld [vmem:[#allocation10 + $0x68] sm:$0xff] }
 0x2ee   :  { %1557 = vst.msk [vmem:[#allocation10 + $0x58] sm:$0xff] %vm1488_vm2, %v1551_v46  ;;  %v1549_v48 = vpop.permute.xlu1 %1548 }
 0x2ef   :  { %v1553_v5 = vsel %vm1552_vm10, %v1549_v48, %v1551_v46 }
 0x2f5   :  { %v1497_v45 = vpop.permute.xlu2 %1496  ;;  %v1611_v54 = vld [vmem:[#allocation10 + $0x58] sm:$0xff] }
 0x2f6   :  { %1502 = vst.msk [vmem:[#allocation10 + $0x18] sm:$0xff] %vm1488_vm2, %v1497_v45 }
 0x2f8   :  { %v1578_v47 = vpop.permute.xlu1 %1577  ;;  %v1592_v56 = vpop.permute.xlu0 %1591 }
 0x2f9   :  { %1584 = vst.msk [vmem:[#allocation10 + $0x78] sm:$0xff] %vm1488_vm2, %v1578_v47  ;;  %v1594_v21 = vsel %vm1593_vm6, %v1590_v61, %v1592_v56  ;;  %v1580_v14 = vsel %vm1579_vm8, %v1576_v43, %v1578_v47 }
 0x2fa   :  { %1598 = vst.msk [vmem:[#allocation10 + $0x88] sm:$0xff] %vm1488_vm2, %v1592_v56  ;;  %v1626_v1 = vpack.c.bf16 %v1594_v21, %v1594_v21  ;;  %v1624_v42 = vpack.c.bf16 %v1580_v14, %v1566_v2 }
 0x2fc   :  { %v1640_v0 = vsel %vm1638_vm9, %v1626_v1, 0 }
 0x2fd   :  { %1648 = vmatpush.bf16.msra.mxu1 %v1640_v0  ;;  %v1603_v3 = vld [vmem:[#allocation10 + $0x18] sm:$0xff] }
 0x2fe   :  { %v1619_v31 = vpack.c.bf16 %v1603_v3, %v1601_v30 }
 0x300   :  { %v1510_v19 = vpop.permute.xlu1 %1509  ;;  %v1537_v4 = vpop.permute.xlu0 %1536  ;;  %v1615_v12 = vld [vmem:[#allocation10 + $0x78] sm:$0xff] }
 0x301   :  { %1515 = vst.msk [vmem:[#allocation10 + $0x28] sm:$0xff] %vm1488_vm2, %v1510_v19  ;;  %v1539_v6 = vsel %vm1538_vm11, %v1535_v39, %v1537_v4  ;;  %v1617_v27 = vld [vmem:[#allocation10 + $0x88] sm:$0xff]  ;;  %1649 = vmatpush.bf16.msra.mxu1 %v1624_v42  ;;  %v1625_v8 = vpack.c.bf16 %v1615_v12, %v1613_v53  ;;  %v1511_v29 = vsel %vm689_vm5, %v1508_v52, %v1510_v19 }
 0x302   :  { %1543 = vst.msk [vmem:[#allocation10 + $0x48] sm:$0xff] %vm1488_vm2, %v1537_v4  ;;  %v1627_v37 = vpack.c.bf16 %v1617_v27, %v1617_v27  ;;  %v1622_v10 = vpack.c.bf16 %v1553_v5, %v1539_v6  ;;  %v5541_v5 = vmov 2  }
 0x303   :  { %5471 = vset.pattern.permute.xlu2 %v5541_v5 }
 0x304   :  { %v1643_v11 = vsel %vm1638_vm9, %v1627_v37, 0 }
 0x305   :  { %1661 = vmatpush.bf16.msrb.mxu0 %v1643_v11  ;;  %1650 = vmatpush.bf16.msra.mxu1 %v1622_v10 }
 0x308   :  { %v1523_v51 = vpop.permute.xlu0 %1522  ;;  %v1495_v63 = vpop.permute.xlu1 %1494  ;;  %v1605_v28 = vld [vmem:[#allocation10 + $0x28] sm:$0xff] }
 0x309   :  { %1662 = vmatpush.bf16.msrb.mxu0 %v1625_v8  ;;  %v1525_v32 = vsel %vm1524_vm12, %v1521_v40, %v1523_v51  ;;  %1529 = vst.msk [vmem:[#allocation10 + $0x38] sm:$0xff] %vm1488_vm2, %v1523_v51  ;;  %v1609_v16 = vld [vmem:[#allocation10 + $0x48] sm:$0xff]  ;;  %v1498_v49 = vsel %vm664_vm4, %v1495_v63, %v1497_v45 }
 0x30a   :  { %v1623_v17 = vpack.c.bf16 %v1611_v54, %v1609_v16  ;;  %v1620_v18 = vpack.c.bf16 %v1525_v32, %v1511_v29  ;;  %v1618_v22 = vpack.c.bf16 %v1498_v49, %v6697_v34 }
 0x30c   :  { %1651 = vmatpush.bf16.msra.mxu1 %v1620_v18 }
 0x30d   :  { %1663 = vmatpush.bf16.msrb.mxu0 %v1623_v17 }
 0x310   :  { %v1607_v50 = vld [vmem:[#allocation10 + $0x38] sm:$0xff]  ;;  %1652 = vmatpush.bf16.msra.mxu1 %v1618_v22  ;;  %v1632_v33 = vpop.permute.xlu0 %1631 }
 0x311   :  { %v1621_v7 = vpack.c.bf16 %v1607_v50, %v1605_v28 }
 0x313   :  { %1664 = vmatpush.bf16.msrb.mxu0 %v1621_v7  ;;  %4929 = vmatmul.msk.bf16.vlgmr.msra.gmra.mxu1 %vm1634_vm14, %v1599_v62 }
 0x317   :  { %1665 = vmatpush.bf16.msrb.mxu0 %v1619_v31  ;;  %v1801_v31 = vld [vmem:[%s7700_s1 + $0xc] sm:$0xf] }
 0x31a   :  { %4930 = vmatmul.msk.bf16.vlgmr.msrb.gmra.mxu0 %vm1634_vm14, %v1599_v62 }
 0x390   :  { %v1654_v55 = vpop.f32.mrf.mxu1 }
 0x391   :  { %v1655_v59 = vadd.f32 %v1654_v55, %v1632_v33 }
 0x393   :  { %v1671_v58 = vmax.f32 %v1655_v59, 0.0 }
 0x395   :  { %v1680_v13 = vmul.f32 %v1676_v44, %v1671_v58 }
 0x397   :  { %v1667_v38 = vpop.f32.mrf.mxu0  ;;  %1684 = vrot.lane.b32.xlu1 %v1680_v13, %s5533_s3 }
 0x398   :  { %v1668_v25 = vadd.f32 %v1667_v38, %v1632_v33  ;;  %v1656_v23 = vpop.f32.mrf.mxu1  ;;  %v4934_v38 = vld [vmem:[%s7704_s5 + $0x30] ss:$8 sm:$0x3] }
 0x39a   :  { %v1672_v36 = vmax.f32 %v1668_v25, 0.0 }
 0x39c   :  { %v1681_v35 = vmul.f32 %v1677_v20, %v1672_v36 }
 0x39e   :  { %1686 = vrot.lane.b32.xlu2 %v1681_v35, %s5533_s3 }
 0x39f   :  { %v1669_v61 = vpop.f32.mrf.mxu0 }
 0x3f8   :  { %v1687_v39 = vpop.permute.xlu2 %1686 }
 0x409   :  { %v1685_v40 = vpop.permute.xlu1 %1684 }
 0x40a   :  { %v1688_v41 = vsel %vm28_vm13, %v1685_v40, %v1687_v39  ;;  %1691 = vst.msk [vmem:[#allocation4] sm:$0xff] %vm1481_vm15, %v1685_v40  ;;  %v1888_v39 = vperm.slane %v4934_v38, 0 }
 0x40b   :  { %1692 = vst.msk [vmem:[#allocation4 + $0x8] sm:$0xff] %vm1483_vm1, %v1688_v41  ;;  %v1889_v41 = vperm.slane %v4934_v38, 1  ;;  %v4937_v38 = vld [vmem:[%s7700_s1 + $0x10] sm:$0xf] }
 0x411   :  { %v6775_v43 = vld [vmem:[#allocation4] sm:$0xff] }
 0x412   :  { %v1694_v24 = vld [vmem:[#allocation4 + $0x8] sm:$0xff]  ;;  %1792 = vrot.lane.b32.xlu1 %v6775_v43, %s5535_s20  ;;  %1779 = vrot.lane.b32.xlu2 %v6775_v43, %s5536_s0 }
 0x413   :  { %1696 = vst.msk [vmem:[#allocation10 + $0x8] sm:$0xff] %vm1488_vm2, %v1694_v24  ;;  %1766 = vrot.lane.b32.xlu0 %v6775_v43, %s5528_s26 }
 0x41a   :  { %1740 = vrot.lane.b32.xlu1 %v6775_v43, %s5537_s21  ;;  %1714 = vrot.lane.b32.xlu2 %v6775_v43, %s5530_s28  ;;  %v1803_v9 = vld [vmem:[#allocation10 + $0x8] sm:$0xff] }
 0x41b   :  { %1753 = vrot.lane.b32.xlu0 %v6775_v43, %s5538_s22 }
 0x422   :  { %1727 = vrot.lane.b32.xlu1 %v6775_v43, %s5539_s24  ;;  %1794 = vrot.lane.b32.xlu2 %v1694_v24, %s5535_s20 }
 0x423   :  { %1781 = vrot.lane.b32.xlu0 %v1694_v24, %s5536_s0 }
 0x42a   :  { %1768 = vrot.lane.b32.xlu1 %v1694_v24, %s5528_s26  ;;  %1742 = vrot.lane.b32.xlu2 %v1694_v24, %s5537_s21 }
 0x42b   :  { %1716 = vrot.lane.b32.xlu0 %v1694_v24, %s5530_s28 }
 0x432   :  { %1755 = vrot.lane.b32.xlu1 %v1694_v24, %s5538_s22  ;;  %1729 = vrot.lane.b32.xlu2 %v1694_v24, %s5539_s24 }
 0x433   :  { %1701 = vrot.lane.b32.xlu0 %v6775_v43, %s5525_s23 }
 0x43a   :  { %1703 = vrot.lane.b32.xlu1 %v1694_v24, %s5525_s23  ;;  %1833 = vperm.xlu2 %5471, %v6746_v57  }
 0x43b   :  { %1875 = vrot.lane.b32.xlu0 %v6697_v34, %s5537_s21 }
 0x442   :  { %1877 = vrot.lane.b32.xlu1 %v6715_v26, %s5537_s21 }
 0x46c   :  { %v1780_v46 = vpop.permute.xlu2 %1779 }
 0x474   :  { %v1715_v48 = vpop.permute.xlu2 %1714 }
 0x47c   :  { %v1795_v52 = vpop.permute.xlu2 %1794 }
 0x47d   :  { %1800 = vst.msk [vmem:[#allocation10 + $0x88] sm:$0xff] %vm1488_vm2, %v1795_v52 }
 0x484   :  { %v1793_v45 = vpop.permute.xlu1 %1792  ;;  %v1743_v47 = vpop.permute.xlu2 %1742  ;;  %v1819_v56 = vld [vmem:[#allocation10 + $0x88] sm:$0xff] }
 0x485   :  { %v1796_v21 = vsel %vm1593_vm6, %v1793_v45, %v1795_v52  ;;  %v1767_v1 = vpop.permute.xlu0 %1766  ;;  %1748 = vst.msk [vmem:[#allocation10 + $0x48] sm:$0xff] %vm1488_vm2, %v1743_v47  ;;  %v1829_v60 = vpack.c.bf16 %v1819_v56, %v1819_v56 }
 0x486   :  { %v1828_v14 = vpack.c.bf16 %v1796_v21, %v1796_v21  ;;  %v5542_v21 = vmov 3  }
 0x487   :  { %v1843_v34 = vsel %vm1638_vm9, %v1829_v60, 0  ;;  %5472 = vset.pattern.permute.xlu2 %v5542_v21  ;;  %5473 = vset.pattern.permute.xlu0 %v5542_v21  ;;  %v5301_v21 = vld [vmem:[%s7703_s4 + $0x28] sm:$0xff] }
 0x488   :  { %1861 = vmatpush.bf16.msrb.mxu1 %v1843_v34  ;;  %v1840_v26 = vsel %vm1638_vm9, %v1828_v14, 0 }
 0x489   :  { %1848 = vmatpush.bf16.msra.mxu3 %v1840_v26 }
 0x48c   :  { %v1741_v0 = vpop.permute.xlu1 %1740  ;;  %v1730_v2 = vpop.permute.xlu2 %1729  ;;  %v1811_v22 = vld [vmem:[#allocation10 + $0x48] sm:$0xff] }
 0x48d   :  { %v1754_v42 = vpop.permute.xlu0 %1753  ;;  %1735 = vst.msk [vmem:[#allocation10 + $0x38] sm:$0xff] %vm1488_vm2, %v1730_v2  ;;  %v1744_v51 = vsel %vm1538_vm11, %v1741_v0, %v1743_v47 }
 0x494   :  { %v1728_v19 = vpop.permute.xlu1 %1727  ;;  %v1809_v30 = vld [vmem:[#allocation10 + $0x38] sm:$0xff]  ;;  %v1834_v44 = vpop.permute.xlu2 %1833 }
 0x495   :  { %v1782_v4 = vpop.permute.xlu0 %1781  ;;  %v1731_v54 = vsel %vm1524_vm12, %v1728_v19, %v1730_v2 }
 0x496   :  { %1787 = vst.msk [vmem:[#allocation10 + $0x78] sm:$0xff] %vm1488_vm2, %v1782_v4  ;;  %v1783_v27 = vsel %vm1579_vm8, %v1780_v46, %v1782_v4 }
 0x49c   :  { %v1769_v6 = vpop.permute.xlu1 %1768 }
 0x49d   :  { %v1770_v37 = vsel %vm764_vm7, %v1767_v1, %v1769_v6  ;;  %1774 = vst.msk [vmem:[#allocation10 + $0x68] sm:$0xff] %vm1488_vm2, %v1769_v6  ;;  %v1717_v10 = vpop.permute.xlu0 %1716  ;;  %v1817_v8 = vld [vmem:[#allocation10 + $0x78] sm:$0xff] }
 0x49e   :  { %1722 = vst.msk [vmem:[#allocation10 + $0x28] sm:$0xff] %vm1488_vm2, %v1717_v10  ;;  %v1826_v11 = vpack.c.bf16 %v1783_v27, %v1770_v37  ;;  %v1718_v16 = vsel %vm689_vm5, %v1715_v48, %v1717_v10 }
 0x49f   :  { %v1822_v17 = vpack.c.bf16 %v1731_v54, %v1718_v16 }
 0x4a0   :  { %1849 = vmatpush.bf16.msra.mxu3 %v1826_v11 }
 0x4a4   :  { %v1756_v12 = vpop.permute.xlu1 %1755  ;;  %v1815_v53 = vld [vmem:[#allocation10 + $0x68] sm:$0xff] }
 0x4a5   :  { %v1757_v63 = vsel %vm1552_vm10, %v1754_v42, %v1756_v12  ;;  %1761 = vst.msk [vmem:[#allocation10 + $0x58] sm:$0xff] %vm1488_vm2, %v1756_v12  ;;  %v1827_v29 = vpack.c.bf16 %v1817_v8, %v1815_v53  ;;  %v1702_v18 = vpop.permute.xlu0 %1701  ;;  %v1807_v7 = vld [vmem:[#allocation10 + $0x28] sm:$0xff] }
 0x4a6   :  { %v1824_v32 = vpack.c.bf16 %v1757_v63, %v1744_v51  ;;  %v1823_v33 = vpack.c.bf16 %v1809_v30, %v1807_v7 }
 0x4a7   :  { %1862 = vmatpush.bf16.msrb.mxu1 %v1827_v29 }
 0x4a8   :  { %1850 = vmatpush.bf16.msra.mxu3 %v1824_v32 }
 0x4ac   :  { %v1704_v49 = vpop.permute.xlu1 %1703  ;;  %v1813_v28 = vld [vmem:[#allocation10 + $0x58] sm:$0xff]  ;;  %1851 = vmatpush.bf16.msra.mxu3 %v1822_v17 }
 0x4ad   :  { %v1705_v50 = vsel %vm664_vm4, %v1702_v18, %v1704_v49  ;;  %1709 = vst.msk [vmem:[#allocation10 + $0x18] sm:$0xff] %vm1488_vm2, %v1704_v49  ;;  %v1825_v62 = vpack.c.bf16 %v1813_v28, %v1811_v22  ;;  %v1876_v25 = vpop.permute.xlu0 %1875  ;;  %v6888_v49 = vld [vmem:[%s7701_s2 + $0x8] sm:$0xff] }
 0x4ae   :  { %v1820_v3 = vpack.c.bf16 %v1705_v50, %v6775_v43 }
 0x4af   :  { %1863 = vmatpush.bf16.msrb.mxu1 %v1825_v62 }
 0x4b0   :  { %1852 = vmatpush.bf16.msra.mxu3 %v1820_v3 }
 0x4b3   :  { %1864 = vmatpush.bf16.msrb.mxu1 %v1823_v33  ;;  %4932 = vmatmul.msk.bf16.vlgmr.msra.gmra.mxu3 %vm1634_vm14, %v1801_v31 }
 0x4b4   :  { %v1805_v55 = vld [vmem:[#allocation10 + $0x18] sm:$0xff]  ;;  %v1878_v58 = vpop.permute.xlu1 %1877 }
 0x4b5   :  { %v1821_v59 = vpack.c.bf16 %v1805_v55, %v1803_v9  ;;  %v1879_v35 = vsel %vm1538_vm11, %v1876_v25, %v1878_v58  ;;  %v5294_v25 = vld [vmem:[%s7700_s1 + $0x60] sm:$0xf0] }
 0x4b7   :  { %1865 = vmatpush.bf16.msrb.mxu1 %v1821_v59 }
 0x4ba   :  { %4933 = vmatmul.msk.bf16.vlgmr.msrb.gmra.mxu1 %vm1634_vm14, %v1801_v31 }
 0x536   :  { %v1854_v13 = vpop.f32.mrf.mxu3 }
 0x537   :  { %v1867_v20 = vpop.f32.mrf.mxu1  ;;  %v1855_v23 = vadd.f32 %v1854_v13, %v1834_v44 }
 0x538   :  { %v1868_v36 = vadd.f32 %v1867_v20, %v1834_v44 }
 0x539   :  { %v1882_v61 = vadd.f32 %v1879_v35, %v1855_v23  ;;  %v5303_v23 = vld [vmem:[%s7703_s4 + $0x38] sm:$0xff] }
 0x53a   :  { %v1883_v40 = vadd.f32 %v1878_v58, %v1868_v36 }
 0x53b   :  { %v1884_v43 = vmax.f32 %v1882_v61, 0.0 }
 0x53c   :  { %v1885_v24 = vmax.f32 %v1883_v40, 0.0  ;;  %v4938_v40 = vor.u32 %v5294_v25, %v4937_v38 }
 0x53d   :  { %v1892_v46 = vmul.f32 %v1888_v39, %v1884_v43  ;;  %v5302_v43 = vld [vmem:[%s7703_s4 + $0x30] sm:$0xff] }
 0x53e   :  { %v1893_v48 = vmul.f32 %v1889_v41, %v1885_v24  ;;  %v1856_v52 = vpop.f32.mrf.mxu3 }
 0x53f   :  { %v1869_v45 = vpop.f32.mrf.mxu1  ;;  %1896 = vrot.lane.b32.xlu2 %v1892_v46, %s5533_s3 }
 0x540   :  { %1898 = vrot.lane.b32.xlu0 %v1893_v48, %s5533_s3  ;;  %s5560_s3 = smov 125  }
 0x599   :  { %v1897_v47 = vpop.permute.xlu2 %1896 }
 0x59a   :  { %1903 = vst.msk [vmem:[#allocation3] sm:$0xff] %vm1481_vm15, %v1897_v47  ;;  %vm44_vm15 = vcmask 39936  }
 0x59b   :  { %45 = vst.msk [vmem:[#allocation7] sm:$0xff] %vm44_vm15, %v5534_v15 }
 0x59c   :  { %46 = vst.msk [vmem:[#allocation7 + $0x8] sm:$0xff] %vm44_vm15, %v5534_v15 }
 0x59d   :  { %47 = vst.msk [vmem:[#allocation7 + $0x10] sm:$0xff] %vm44_vm15, %v5534_v15 }
 0x59e   :  { %52 = vst.msk [vmem:[#allocation8] sm:$0xff] %vm44_vm15, %v5534_v15 }
 0x59f   :  { %53 = vst.msk [vmem:[#allocation8 + $0x8] sm:$0xff] %vm44_vm15, %v5534_v15 }
 0x5a0   :  { %54 = vst.msk [vmem:[#allocation8 + $0x10] sm:$0xff] %vm44_vm15, %v5534_v15 }
 0x5a1   :  { %v6838_v56 = vld [vmem:[#allocation3] sm:$0xff] }
 0x5a2   :  { %2004 = vrot.lane.b32.xlu1 %v6838_v56, %s5535_s20  ;;  %1991 = vrot.lane.b32.xlu2 %v6838_v56, %s5536_s0  ;;  %1907 = vst [vmem:[#allocation10] sm:$0xff] %v6838_v56  ;;  %v2105_v34 = vpack.c.bf16 %v6838_v56, %v6838_v56 }
 0x5a3   :  { %1978 = vrot.lane.b32.xlu0 %v6838_v56, %s5528_s26 }
 0x5aa   :  { %1952 = vrot.lane.b32.xlu1 %v6838_v56, %s5537_s21  ;;  %1926 = vrot.lane.b32.xlu2 %v6838_v56, %s5530_s28 }
 0x5ab   :  { %1965 = vrot.lane.b32.xlu0 %v6838_v56, %s5538_s22 }
 0x5b2   :  { %v1899_v1 = vpop.permute.xlu0 %1898  ;;  %1939 = vrot.lane.b32.xlu1 %v6838_v56, %s5539_s24 }
 0x5b3   :  { %v1900_v60 = vsel %vm28_vm13, %v1897_v47, %v1899_v1  ;;  %vm2824_vm13 = vcmask 1044480  }
 0x5b4   :  { %1904 = vst.msk [vmem:[#allocation3 + $0x8] sm:$0xff] %vm1483_vm1, %v1900_v60  ;;  %v5300_v60 = vld [vmem:[%s7703_s4 + $0x20] sm:$0xff]  ;;  %vm48_vm1 = vcmask 261336  }
 0x5b5   :  { %49 = vst.msk [vmem:[#allocation7] sm:$0xff] %vm48_vm1, %v5534_v15 }
 0x5b6   :  { %50 = vst.msk [vmem:[#allocation7 + $0x8] sm:$0xff] %vm48_vm1, %v5534_v15 }
 0x5b7   :  { %51 = vst.msk [vmem:[#allocation7 + $0x10] sm:$0xff] %vm48_vm1, %v5534_v15 }
 0x5b8   :  { %55 = vst.msk [vmem:[#allocation8] sm:$0xff] %vm48_vm1, %v5534_v15 }
 0x5b9   :  { %56 = vst.msk [vmem:[#allocation8 + $0x8] sm:$0xff] %vm48_vm1, %v5534_v15 }
 0x5ba   :  { %57 = vst.msk [vmem:[#allocation8 + $0x10] sm:$0xff] %vm48_vm1, %v5534_v15 }
 0x5bb   :  { %v2001_v14 = vld [vmem:[#allocation3 + $0x8] sm:$0xff] }
 0x5bc   :  { %2006 = vrot.lane.b32.xlu2 %v2001_v14, %s5535_s20  ;;  %1993 = vrot.lane.b32.xlu0 %v2001_v14, %s5536_s0  ;;  %1908 = vst.msk [vmem:[#allocation10 + $0x8] sm:$0xff] %vm1488_vm2, %v2001_v14  ;;  %v2106_v26 = vpack.c.bf16 %v2001_v14, %v2001_v14  ;;  %s5543_s0 = smov 7  }
 0x5bd   :  { %1980 = vrot.lane.b32.xlu1 %v2001_v14, %s5528_s26  ;;  %s5555_s26 = smov 124  }
 0x5c3   :  { %v2016_v52 = vld [vmem:[#allocation10 + $0x8] sm:$0xff] }
 0x5c4   :  { %1954 = vrot.lane.b32.xlu2 %v2001_v14, %s5537_s21  ;;  %1928 = vrot.lane.b32.xlu0 %v2001_v14, %s5530_s28 }
 0x5c5   :  { %1967 = vrot.lane.b32.xlu1 %v2001_v14, %s5538_s22 }
 0x5cc   :  { %1941 = vrot.lane.b32.xlu2 %v2001_v14, %s5539_s24  ;;  %1913 = vrot.lane.b32.xlu0 %v6838_v56, %s5525_s23 }
 0x5cd   :  { %1915 = vrot.lane.b32.xlu1 %v2001_v14, %s5525_s23  ;;  %v2191_v14 = vld [vmem:[%s7703_s4 + $0x58] sm:$0x1] }
 0x5d4   :  { %2047 = vperm.xlu2 %5472, %v6746_v57   ;;  %2052 = vperm.xlu0 %5473, %v6888_v49  }
 0x5d5   :  { %2122 = vrot.lane.b32.xlu1 %v2105_v34, %s5537_s21  ;;  %v2237_v34 = vunpack.c.l.b16 %v2191_v14 }
 0x5dc   :  { %2124 = vrot.lane.b32.xlu2 %v2106_v26, %s5537_s21  ;;  %v2249_v26 = vpack.c.b16 %v2237_v34, %v2237_v34 }
 0x5fc   :  { %v1992_v0 = vpop.permute.xlu2 %1991 }
 0x604   :  { %v1927_v2 = vpop.permute.xlu2 %1926 }
 0x614   :  { %v2005_v42 = vpop.permute.xlu1 %2004 }
 0x615   :  { %v1979_v27 = vpop.permute.xlu0 %1978 }
 0x616   :  { %v2007_v19 = vpop.permute.xlu2 %2006 }
 0x617   :  { %2012 = vst.msk [vmem:[#allocation10 + $0x88] sm:$0xff] %vm1488_vm2, %v2007_v19  ;;  %v2008_v4 = vsel %vm1593_vm6, %v2005_v42, %v2007_v19  ;;  %v5298_v42 = vld [vmem:[%s7703_s4 + $0x10] sm:$0xff]  ;;  %vm2871_vm6 = vcmask 179200  }
 0x618   :  { %2011 = vst [vmem:[#allocation10 + $0x80] sm:$0xff] %v2008_v4  ;;  %v2041_v5 = vpack.c.bf16 %v2008_v4, %v2008_v4  ;;  %v5306_v19 = vld [vmem:[%s7703_s4 + $0x50] sm:$0xff]  ;;  %v5297_v4 = vld [vmem:[%s7703_s4 + $0x8] sm:$0xff] }
 0x61a   :  { %v2064_v6 = vsel %vm1638_vm9, %v2041_v5, 0  ;;  %v5305_v5 = vld [vmem:[%s7703_s4 + $0x48] sm:$0xff] }
 0x61b   :  { %2072 = vmatpush.bf16.msrb.mxu2 %v2064_v6  ;;  %v5296_v6 = vld [vmem:[%s7703_s4] sm:$0xff] }
 0x61c   :  { %v1953_v37 = vpop.permute.xlu1 %1952 }
 0x61d   :  { %v1966_v51 = vpop.permute.xlu0 %1965 }
 0x61e   :  { %v1955_v10 = vpop.permute.xlu2 %1954  ;;  %v2032_v11 = vld [vmem:[#allocation10 + $0x88] sm:$0xff] }
 0x61f   :  { %1960 = vst.msk [vmem:[#allocation10 + $0x48] sm:$0xff] %vm1488_vm2, %v1955_v10  ;;  %v2042_v12 = vpack.c.bf16 %v2032_v11, %v2032_v11  ;;  %v1956_v53 = vsel %vm1538_vm11, %v1953_v37, %v1955_v10 }
 0x620   :  { %1959 = vst [vmem:[#allocation10 + $0x40] sm:$0xff] %v1956_v53 }
 0x621   :  { %v2067_v8 = vsel %vm1638_vm9, %v2042_v12, 0 }
 0x622   :  { %2086 = vmatpush.bf16.msra.mxu0 %v2067_v8 }
 0x624   :  { %v1940_v29 = vpop.permute.xlu1 %1939 }
 0x626   :  { %v1942_v63 = vpop.permute.xlu2 %1941  ;;  %v2024_v36 = vld [vmem:[#allocation10 + $0x48] sm:$0xff] }
 0x627   :  { %1947 = vst.msk [vmem:[#allocation10 + $0x38] sm:$0xff] %vm1488_vm2, %v1942_v63  ;;  %v1943_v32 = vsel %vm1524_vm12, %v1940_v29, %v1942_v63  ;;  %vm3690_vm12 = vcmask 113696  }
 0x628   :  { %1946 = vst [vmem:[#allocation10 + $0x30] sm:$0xff] %v1943_v32 }
 0x62e   :  { %v6881_v16 = vpop.permute.xlu2 %2047  ;;  %v1994_v54 = vpop.permute.xlu0 %1993  ;;  %v2022_v24 = vld [vmem:[#allocation10 + $0x38] sm:$0xff] }
 0x62f   :  { %v1995_v17 = vsel %vm1579_vm8, %v1992_v0, %v1994_v54  ;;  %1999 = vst.msk [vmem:[#allocation10 + $0x78] sm:$0xff] %vm1488_vm2, %v1994_v54  ;;  %v1981_v18 = vpop.permute.xlu1 %1980  ;;  %v5299_v0 = vld [vmem:[%s7703_s4 + $0x18] sm:$0xff]  ;;  %vm3096_vm8 = vcmask 719872  }
 0x630   :  { %1998 = vst [vmem:[#allocation10 + $0x70] sm:$0xff] %v1995_v17  ;;  %v1982_v22 = vsel %vm764_vm7, %v1979_v27, %v1981_v18  ;;  %v5304_v27 = vld [vmem:[%s7703_s4 + $0x40] sm:$0xff]  ;;  %vm2321_vm7 = vcmask 474112  }
 0x631   :  { %1985 = vst [vmem:[#allocation10 + $0x60] sm:$0xff] %v1982_v22  ;;  %v2039_v28 = vpack.c.bf16 %v1995_v17, %v1982_v22 }
 0x632   :  { %1986 = vst.msk [vmem:[#allocation10 + $0x68] sm:$0xff] %vm1488_vm2, %v1981_v18 }
 0x633   :  { %2073 = vmatpush.bf16.msrb.mxu2 %v2039_v28 }
 0x636   :  { %v2125_v50 = vpop.permute.xlu2 %2124  ;;  %v1929_v62 = vpop.permute.xlu0 %1928  ;;  %v2030_v31 = vld [vmem:[#allocation10 + $0x78] sm:$0xff] }
 0x637   :  { %v1930_v7 = vsel %vm689_vm5, %v1927_v2, %v1929_v62  ;;  %1934 = vst.msk [vmem:[#allocation10 + $0x28] sm:$0xff] %vm1488_vm2, %v1929_v62  ;;  %v2135_v3 = vsel %vm1638_vm9, %v2125_v50, 0  ;;  %v1968_v30 = vpop.permute.xlu1 %1967  ;;  %v2268_v2 = vsel %vm431_vm0, %v2249_v26, 0  ;;  %vm34_vm0 = vcmask 56320  }
 0x638   :  { %1933 = vst [vmem:[#allocation10 + $0x20] sm:$0xff] %v1930_v7  ;;  %2158 = vmatpush.bf16.msra.mxu1 %v2135_v3  ;;  %v1969_v33 = vsel %vm1552_vm10, %v1966_v51, %v1968_v30  ;;  %v2035_v44 = vpack.c.bf16 %v1943_v32, %v1930_v7  ;;  %vm2316_vm5 = vcmask 531512   ;;  %vm58_vm10 = vcmask 31744  }
 0x639   :  { %1972 = vst [vmem:[#allocation10 + $0x50] sm:$0xff] %v1969_v33  ;;  %v2028_v9 = vld [vmem:[#allocation10 + $0x68] sm:$0xff]  ;;  %v2037_v55 = vpack.c.bf16 %v1969_v33, %v1956_v53 }
 0x63a   :  { %1973 = vst.msk [vmem:[#allocation10 + $0x58] sm:$0xff] %vm1488_vm2, %v1968_v30  ;;  %v2040_v59 = vpack.c.bf16 %v2030_v31, %v2028_v9  ;;  %v4943_v33 = vld [vmem:[%s7700_s1 + $0x1c] sm:$0xf]  ;;  %v5295_v9 = vld [vmem:[%s7700_s1 + $0x6c] sm:$0xf0] }
 0x63b   :  { %2074 = vmatpush.bf16.msrb.mxu2 %v2037_v55  ;;  %36 = vst.msk [vmem:[#allocation5 + $0x8] sm:$0xff] %vm34_vm0, %v5534_v15  ;;  %v4944_v55 = vor.u32 %v5295_v9, %v4943_v33 }
 0x63c   :  { %2087 = vmatpush.bf16.msra.mxu0 %v2040_v59  ;;  %35 = vst.msk [vmem:[#allocation5] sm:$0xff] %vm34_vm0, %v5534_v15 }
 0x63d   :  { %40 = vst.msk [vmem:[#allocation6] sm:$0xff] %vm34_vm0, %v5534_v15  ;;  %4946 = vmatmul.msk.bf16.vlgmr.msra.gmra.mxu1 %vm642_vm3, %v4944_v55 }
 0x63e   :  { %v1914_v58 = vpop.permute.xlu0 %1913  ;;  %v2020_v41 = vld [vmem:[#allocation10 + $0x28] sm:$0xff]  ;;  %41 = vst.msk [vmem:[#allocation6 + $0x8] sm:$0xff] %vm34_vm0, %v5534_v15  ;;  %vm3550_vm0 = vcmask 195584  }
 0x63f   :  { %v1916_v13 = vpop.permute.xlu1 %1915  ;;  %2075 = vmatpush.bf16.msrb.mxu2 %v2035_v44  ;;  %v2036_v46 = vpack.c.bf16 %v2022_v24, %v2020_v41  ;;  %59 = vst.msk [vmem:[#allocation9] sm:$0xff] %vm58_vm10, %v5534_v15 }
 0x640   :  { %v1917_v20 = vsel %vm664_vm4, %v1914_v58, %v1916_v13  ;;  %1921 = vst.msk [vmem:[#allocation10 + $0x18] sm:$0xff] %vm1488_vm2, %v1916_v13  ;;  %vm37_vm4 = vcmask 589320   ;;  %v5546_v13 = vmov 5  }
 0x641   :  { %1920 = vst [vmem:[#allocation10 + $0x10] sm:$0xff] %v1917_v20  ;;  %v2026_v35 = vld [vmem:[#allocation10 + $0x58] sm:$0xff]  ;;  %v2033_v61 = vpack.c.bf16 %v1917_v20, %v6838_v56  ;;  %5474 = vset.pattern.permute.xlu1 %v5546_v13  ;;  %5475 = vset.pattern.permute.xlu2 %v5546_v13 }
 0x642   :  { %v2038_v39 = vpack.c.bf16 %v2026_v35, %v2024_v36  ;;  %39 = vst.msk [vmem:[#allocation5 + $0x8] sm:$0xff] %vm37_vm4, %v5534_v15 }
 0x643   :  { %2076 = vmatpush.bf16.msrb.mxu2 %v2033_v61  ;;  %38 = vst.msk [vmem:[#allocation5] sm:$0xff] %vm37_vm4, %v5534_v15 }
 0x644   :  { %2088 = vmatpush.bf16.msra.mxu0 %v2038_v39  ;;  %42 = vst.msk [vmem:[#allocation6] sm:$0xff] %vm37_vm4, %v5534_v15 }
 0x645   :  { %43 = vst.msk [vmem:[#allocation6 + $0x8] sm:$0xff] %vm37_vm4, %v5534_v15  ;;  %vm4184_vm4 = vcmask 392192  }
 0x646   :  { %4939 = vmatmul.msk.bf16.vlgmr.msrb.gmra.mxu2 %vm1634_vm14, %v4938_v40  ;;  %v2053_v11 = vpop.permute.xlu0 %2052  ;;  %60 = vst.msk [vmem:[#allocation9 + $0x8] sm:$0xff] %vm58_vm10, %v5534_v15 }
 0x647   :  { %2270 = vmatpush.bf16.msra.mxu2 %v5303_v23  ;;  %v2123_v48 = vpop.permute.xlu1 %2122  ;;  %v2018_v45 = vld [vmem:[#allocation10 + $0x18] sm:$0xff]  ;;  %61 = vst.msk [vmem:[#allocation9 + $0x10] sm:$0xff] %vm58_vm10, %v5534_v15 }
 0x648   :  { %2089 = vmatpush.bf16.msra.mxu0 %v2036_v46  ;;  %v2127_v47 = vsel %vm1538_vm11, %v2123_v48, %v2125_v50  ;;  %v2034_v56 = vpack.c.bf16 %v2018_v45, %v2016_v52  ;;  %vm65_vm11 = vcmask 146544   ;;  %62 = vst.msk [vmem:[#allocation9 + $0x18] sm:$0xff] %vm58_vm10, %v5534_v15 }
 0x649   :  { %v2132_v1 = vsel %vm1638_vm9, %v2127_v47, 0  ;;  %66 = vst.msk [vmem:[#allocation9] sm:$0xff] %vm65_vm11, %v5534_v15 }
 0x64a   :  { %2144 = vmatpush.bf16.msrb.mxu3 %v2132_v1  ;;  %63 = vst.msk [vmem:[#allocation9 + $0x20] sm:$0xff] %vm58_vm10, %v5534_v15 }
 0x64b   :  { %2271 = vmatpush.bf16.msra.mxu2 %v5302_v43  ;;  %64 = vst.msk [vmem:[#allocation9 + $0x28] sm:$0xff] %vm58_vm10, %v5534_v15 }
 0x64c   :  { %2090 = vmatpush.bf16.msra.mxu0 %v2034_v56  ;;  %v7005_v56 = vld [vmem:[%s7701_s2] sm:$0xff]  ;;  %67 = vst.msk [vmem:[#allocation9 + $0x8] sm:$0xff] %vm65_vm11, %v5534_v15 }
 0x64d   :  { %4945 = vmatmul.msk.bf16.vlgmr.msrb.gmra.mxu3 %vm642_vm3, %v4944_v55  ;;  %v5307_v55 = vld [vmem:[%s7700_s1 + $0x18] sm:$0xf]  ;;  %vm2470_vm3 = vcmask 130048   ;;  %68 = vst.msk [vmem:[#allocation9 + $0x10] sm:$0xff] %vm65_vm11, %v5534_v15 }
 0x64e   :  { %69 = vst.msk [vmem:[#allocation9 + $0x18] sm:$0xff] %vm65_vm11, %v5534_v15 }
 0x64f   :  { %2272 = vmatpush.bf16.msra.mxu2 %v5301_v21  ;;  %4940 = vmatmul.msk.bf16.vlgmr.msra.gmra.mxu0 %vm1634_vm14, %v4938_v40  ;;  %v5550_v21 = vmov 4   ;;  %70 = vst.msk [vmem:[#allocation9 + $0x20] sm:$0xff] %vm65_vm11, %v5534_v15  ;;  %vm3703_vm14 = vcmask 80896  }
 0x650   :  { %2293 = vmatpush.bf16.msrb.mxu0 %v2268_v2  ;;  %5476 = vset.pattern.permute.xlu0 %v5550_v21  ;;  %71 = vst.msk [vmem:[#allocation9 + $0x28] sm:$0xff] %vm65_vm11, %v5534_v15 }
 0x653   :  { %2273 = vmatpush.bf16.msra.mxu2 %v5300_v60 }
 0x654   :  { %2294 = vmatpush.bf16.msrb.mxu0 %v5306_v19 }
 0x657   :  { %2274 = vmatpush.bf16.msra.mxu2 %v5299_v0 }
 0x658   :  { %2295 = vmatpush.bf16.msrb.mxu0 %v5305_v5 }
 0x65b   :  { %2275 = vmatpush.bf16.msra.mxu2 %v5298_v42 }
 0x65c   :  { %2296 = vmatpush.bf16.msrb.mxu0 %v5304_v27 }
 0x65f   :  { %2276 = vmatpush.bf16.msra.mxu2 %v5297_v4 }
 0x663   :  { %2277 = vmatpush.bf16.msra.mxu2 %v5296_v6 }
 0x6ba   :  { %v2160_v42 = vpop.f32.mrf.mxu1 }
 0x6c9   :  { %v2078_v37 = vpop.f32.mrf.mxu2 }
 0x6ca   :  { %v2079_v12 = vadd.f32 %v2078_v37, %v6881_v16 }
 0x6cc   :  { %v2092_v10 = vpop.f32.mrf.mxu0  ;;  %v2097_v63 = vmax.f32 %v2079_v12, 0.0 }
 0x6cd   :  { %v2093_v51 = vadd.f32 %v2092_v10, %v6881_v16 }
 0x6cf   :  { %v2098_v18 = vmax.f32 %v2093_v51, 0.0 }
 0x6d0   :  { %v2146_v26 = vpop.f32.mrf.mxu3 }
 0x6d1   :  { %v2080_v53 = vpop.f32.mrf.mxu2 }
 0x6d2   :  { %v2081_v8 = vadd.f32 %v2080_v53, %v2053_v11  ;;  %v2162_v53 = vpop.f32.mrf.mxu1 }
 0x6d4   :  { %v2094_v29 = vpop.f32.mrf.mxu0  ;;  %v2099_v32 = vmax.f32 %v2081_v8, 0.0 }
 0x6d5   :  { %v2095_v54 = vadd.f32 %v2094_v29, %v2053_v11 }
 0x6d6   :  { %v2165_v17 = vpack.c.bf16 %v2099_v32, %v2097_v63 }
 0x6d7   :  { %v2100_v22 = vmax.f32 %v2095_v54, 0.0 }
 0x6d8   :  { %2278 = vmatmul.bf16.vlgmr.msra.gmra.mxu2 %v2165_v17  ;;  %v2148_v10 = vpop.f32.mrf.mxu3 }
 0x6d9   :  { %v2166_v28 = vpack.c.bf16 %v2100_v22, %v2098_v18 }
 0x6db   :  { %4991 = vmatmul.msk.bf16.vlgmr.msrb.gmra.mxu0 %vm1488_vm2, %v2166_v28 }
 0x758   :  { %v2298_v16 = vpop.f32.mrf.mxu0 }
 0x75b   :  { %v2279_v50 = vpop.f32.mrf.mxu2 }
 0x75c   :  { %v2299_v62 = vadd.f32 %v2298_v16, %v2279_v50 }
 0x75e   :  { %2310 = vrot.lane.b32.xlu1 %v2299_v62, %s5543_s0 }
 0x760   :  { %v2300_v7 = vpop.f32.mrf.mxu0 }
 0x763   :  { %v2281_v3 = vpop.f32.mrf.mxu2 }
 0x764   :  { %v2301_v30 = vadd.f32 %v2300_v7, %v2281_v3  ;;  %v4995_v3 = vld [vmem:[%s7700_s1 + $0x14] sm:$0xf] }
 0x766   :  { %2312 = vrot.lane.b32.xlu2 %v2301_v30, %s5543_s0  ;;  %v5308_v30 = vld [vmem:[%s7700_s1 + $0x64] sm:$0xf0] }
 0x767   :  { %v4996_v9 = vor.u32 %v5308_v30, %v4995_v3 }
 0x7c0   :  { %v2313_v31 = vpop.permute.xlu2 %2312 }
 0x7c1   :  { %2318 = vst.msk [vmem:[#allocation5 + $0x8] sm:$0xff] %vm2316_vm5, %v2313_v31 }
 0x7c8   :  { %v2320_v59 = vld [vmem:[#allocation5 + $0x8] sm:$0xff] }
 0x7c9   :  { %2323 = vst.msk [vmem:[#allocation10 + $0x10] sm:$0xff] %vm2321_vm7, %v2320_v59 }
 0x7d0   :  { %v2311_v44 = vpop.permute.xlu1 %2310  ;;  %v2423_v31 = vld [vmem:[#allocation10 + $0x10] sm:$0xff] }
 0x7d1   :  { %2317 = vst.msk [vmem:[#allocation5] sm:$0xff] %vm2316_vm5, %v2311_v44 }
 0x7d8   :  { %v2319_v58 = vld [vmem:[#allocation5] sm:$0xff] }
 0x7d9   :  { %2400 = vrot.lane.b32.xlu0 %v2319_v58, %s5544_s30  ;;  %2376 = vrot.lane.b32.xlu1 %v2319_v58, %s5545_s8  ;;  %2322 = vst.msk [vmem:[#allocation10] sm:$0xff] %vm2321_vm7, %v2319_v58 }
 0x7da   :  { %2388 = vrot.lane.b32.xlu2 %v2319_v58, %s5538_s22 }
 0x7e0   :  { %v2422_v7 = vld [vmem:[#allocation10] sm:$0xff] }
 0x7e1   :  { %2402 = vrot.lane.b32.xlu1 %v2320_v59, %s5544_s30  ;;  %2390 = vrot.lane.b32.xlu0 %v2320_v59, %s5538_s22  ;;  %v2440_v33 = vpack.c.bf16 %v2423_v31, %v2422_v7 }
 0x7e2   :  { %2378 = vrot.lane.b32.xlu2 %v2320_v59, %s5545_s8 }
 0x7e9   :  { %2364 = vrot.lane.b32.xlu0 %v2319_v58, %s5547_s9  ;;  %2366 = vrot.lane.b32.xlu1 %v2320_v59, %s5547_s9 }
 0x7ea   :  { %2352 = vrot.lane.b32.xlu2 %v2319_v58, %s5548_s10 }
 0x7f1   :  { %2340 = vrot.lane.b32.xlu1 %v2319_v58, %s5530_s28  ;;  %2354 = vrot.lane.b32.xlu0 %v2320_v59, %s5548_s10 }
 0x7f2   :  { %2342 = vrot.lane.b32.xlu2 %v2320_v59, %s5530_s28 }
 0x7f9   :  { %2328 = vrot.lane.b32.xlu0 %v2319_v58, %s5525_s23  ;;  %2330 = vrot.lane.b32.xlu1 %v2320_v59, %s5525_s23 }
 0x7fa   :  { %2412 = vrot.lane.b32.xlu2 %v2319_v58, %s5549_s11 }
 0x801   :  { %2414 = vrot.lane.b32.xlu0 %v2320_v59, %s5549_s11  ;;  %2108 = vperm.xlu1 %5474, %v6746_v57   ;;  %v4997_v59 = vld [vmem:[%s7700_s1 + $0x68] sm:$0xf0] }
 0x802   :  { %2112 = vperm.xlu2 %5475, %v6888_v49  }
 0x809   :  { %2453 = vperm.xlu0 %5476, %v7005_v56   ;;  %5477 = vset.pattern.permute.xlu1 %v5550_v21 }
 0x80a   :  { %2458 = vperm.xlu1 %5477, %v6888_v49  }
 0x834   :  { %v2389_v38 = vpop.permute.xlu2 %2388 }
 0x835   :  { %2394 = vst.msk [vmem:[#allocation10 + $0xc0] sm:$0xff] %vm2321_vm7, %v2389_v38  ;;  %v5000_v38 = vor.u32 %v5307_v55, %v4997_v59 }
 0x83c   :  { %v2379_v25 = vpop.permute.xlu2 %2378  ;;  %v2434_v52 = vld [vmem:[#allocation10 + $0xc0] sm:$0xff] }
 0x83d   :  { %2383 = vst.msk [vmem:[#allocation10 + $0xb0] sm:$0xff] %vm2321_vm7, %v2379_v25 }
 0x844   :  { %v2353_v20 = vpop.permute.xlu2 %2352  ;;  %v2433_v14 = vld [vmem:[#allocation10 + $0xb0] sm:$0xff] }
 0x845   :  { %2358 = vst.msk [vmem:[#allocation10 + $0x60] sm:$0xff] %vm2321_vm7, %v2353_v20 }
 0x84b   :  { %v2401_v23 = vpop.permute.xlu0 %2400  ;;  %v2377_v36 = vpop.permute.xlu1 %2376 }
 0x84c   :  { %2406 = vst.msk [vmem:[#allocation10 + $0xe0] sm:$0xff] %vm2321_vm7, %v2401_v23  ;;  %v2343_v35 = vpop.permute.xlu2 %2342  ;;  %v2428_v6 = vld [vmem:[#allocation10 + $0x60] sm:$0xff] }
 0x84d   :  { %2382 = vst.msk [vmem:[#allocation10 + $0xa0] sm:$0xff] %vm2321_vm7, %v2377_v36 }
 0x84e   :  { %2347 = vst.msk [vmem:[#allocation10 + $0x50] sm:$0xff] %vm2321_vm7, %v2343_v35 }
 0x853   :  { %v2403_v57 = vpop.permute.xlu1 %2402  ;;  %v2391_v61 = vpop.permute.xlu0 %2390  ;;  %v2436_v43 = vld [vmem:[#allocation10 + $0xe0] sm:$0xff] }
 0x854   :  { %2407 = vst.msk [vmem:[#allocation10 + $0xf0] sm:$0xff] %vm2321_vm7, %v2403_v57  ;;  %v2413_v39 = vpop.permute.xlu2 %2412  ;;  %v2432_v47 = vld [vmem:[#allocation10 + $0xa0] sm:$0xff] }
 0x855   :  { %2395 = vst.msk [vmem:[#allocation10 + $0xd0] sm:$0xff] %vm2321_vm7, %v2391_v61  ;;  %v2445_v34 = vpack.c.bf16 %v2433_v14, %v2432_v47  ;;  %v2427_v8 = vld [vmem:[#allocation10 + $0x50] sm:$0xff] }
 0x856   :  { %2418 = vst.msk [vmem:[#allocation10 + $0x100] sm:$0xff] %vm2321_vm7, %v2413_v39 }
 0x85b   :  { %v2365_v40 = vpop.permute.xlu0 %2364  ;;  %v2367_v41 = vpop.permute.xlu1 %2366  ;;  %v2437_v24 = vld [vmem:[#allocation10 + $0xf0] sm:$0xff] }
 0x85c   :  { %2370 = vst.msk [vmem:[#allocation10 + $0x80] sm:$0xff] %vm2321_vm7, %v2365_v40  ;;  %v2447_v46 = vpack.c.bf16 %v2437_v24, %v2436_v43  ;;  %v2435_v48 = vld [vmem:[#allocation10 + $0xd0] sm:$0xff]  ;;  %v2113_v12 = vpop.permute.xlu2 %2112 }
 0x85d   :  { %2371 = vst.msk [vmem:[#allocation10 + $0x90] sm:$0xff] %vm2321_vm7, %v2367_v41  ;;  %v2446_v45 = vpack.c.bf16 %v2435_v48, %v2434_v52  ;;  %v2163_v63 = vadd.f32 %v2162_v53, %v2113_v12  ;;  %v2149_v29 = vadd.f32 %v2148_v10, %v2113_v12  ;;  %v2438_v44 = vld [vmem:[#allocation10 + $0x100] sm:$0xff]  ;;  %v2506_v43 = vld [vmem:[%s7704_s5 + $0x60] ss:$0 sm:$0xff] }
 0x85e   :  { %2474 = vmatpush.bf16.msra.mxu3 %v2447_v46 }
 0x862   :  { %2475 = vmatpush.bf16.msra.mxu3 %v2446_v45 }
 0x863   :  { %v2341_v1 = vpop.permute.xlu1 %2340  ;;  %v2355_v60 = vpop.permute.xlu0 %2354  ;;  %v2430_v0 = vld [vmem:[#allocation10 + $0x80] sm:$0xff] }
 0x864   :  { %2346 = vst.msk [vmem:[#allocation10 + $0x40] sm:$0xff] %vm2321_vm7, %v2341_v1  ;;  %v2431_v2 = vld [vmem:[#allocation10 + $0x90] sm:$0xff] }
 0x865   :  { %2359 = vst.msk [vmem:[#allocation10 + $0x70] sm:$0xff] %vm2321_vm7, %v2355_v60  ;;  %v2444_v19 = vpack.c.bf16 %v2431_v2, %v2430_v0 }
 0x866   :  { %2476 = vmatpush.bf16.msra.mxu3 %v2445_v34 }
 0x86a   :  { %2477 = vmatpush.bf16.msra.mxu3 %v2444_v19 }
 0x86b   :  { %v2329_v4 = vpop.permute.xlu0 %2328  ;;  %v2331_v5 = vpop.permute.xlu1 %2330  ;;  %v2426_v11 = vld [vmem:[#allocation10 + $0x40] sm:$0xff] }
 0x86c   :  { %2334 = vst.msk [vmem:[#allocation10 + $0x20] sm:$0xff] %vm2321_vm7, %v2329_v4  ;;  %v2429_v27 = vld [vmem:[#allocation10 + $0x70] sm:$0xff]  ;;  %v2442_v51 = vpack.c.bf16 %v2427_v8, %v2426_v11 }
 0x86d   :  { %2335 = vst.msk [vmem:[#allocation10 + $0x30] sm:$0xff] %vm2321_vm7, %v2331_v5  ;;  %v2443_v37 = vpack.c.bf16 %v2429_v27, %v2428_v6 }
 0x86f   :  { %2478 = vmatpush.bf16.msra.mxu3 %v2443_v37 }
 0x873   :  { %2479 = vmatpush.bf16.msra.mxu3 %v2442_v51  ;;  %v2415_v32 = vpop.permute.xlu0 %2414  ;;  %v2109_v54 = vpop.permute.xlu1 %2108  ;;  %v2424_v17 = vld [vmem:[#allocation10 + $0x20] sm:$0xff] }
 0x874   :  { %2419 = vst.msk [vmem:[#allocation10 + $0x110] sm:$0xff] %vm2321_vm7, %v2415_v32  ;;  %v2161_v18 = vadd.f32 %v2160_v42, %v2109_v54  ;;  %v2425_v22 = vld [vmem:[#allocation10 + $0x30] sm:$0xff]  ;;  %v2147_v28 = vadd.f32 %v2146_v26, %v2109_v54 }
 0x875   :  { %v2441_v16 = vpack.c.bf16 %v2425_v22, %v2424_v17  ;;  %v5551_v22 = vmov 6  }
 0x876   :  { %v2167_v50 = vpack.c.bf16 %v2149_v29, %v2147_v28  ;;  %v2168_v62 = vpack.c.bf16 %v2163_v63, %v2161_v18  ;;  %5478 = vset.pattern.permute.xlu1 %v5551_v22  ;;  %5480 = vset.pattern.permute.xlu0 %v5551_v22 }
 0x877   :  { %2480 = vmatpush.bf16.msra.mxu3 %v2441_v16  ;;  %5479 = vset.pattern.permute.xlu2 %v5551_v22 }
 0x878   :  { %2283 = vmatmul.bf16.gmra.mxu2 %v2167_v50  ;;  %4992 = vmatmul.msk.bf16.gmra.mxu0 %vm1488_vm2, %v2168_v62  ;;  %vm2864_vm2 = vcmask 220200  }
 0x87b   :  { %2481 = vmatpush.bf16.msra.mxu3 %v2440_v33  ;;  %v2439_v58 = vld [vmem:[#allocation10 + $0x110] sm:$0xff]  ;;  %v2454_v20 = vpop.permute.xlu0 %2453 }
 0x87c   :  { %v2448_v13 = vpack.c.bf16 %v2439_v58, %v2438_v44  ;;  %v2459_v41 = vpop.permute.xlu1 %2458 }
 0x87e   :  { %2482 = vmatmul.bf16.vlgmr.msra.gmra.mxu3 %v4996_v9  ;;  %2495 = vmatpush.bf16.msrb.mxu1 %v2448_v13 }
 0x881   :  { %5001 = vmatmul.msk.bf16.vlgmr.msrb.gmra.mxu1 %vm2470_vm3, %v5000_v38 }
 0x8f5   :  { %v2303_v23 = vpop.f32.mrf.mxu0 }
 0x8fb   :  { %v2284_v25 = vpop.f32.mrf.mxu2 }
 0x8fc   :  { %v2304_v61 = vadd.f32 %v2303_v23, %v2284_v25  ;;  %v7075_v25 = vld [vmem:[%s7701_s2 + $0x10] sm:$0xff] }
 0x8fd   :  { %v2305_v47 = vpop.f32.mrf.mxu0 }
 0x8fe   :  { %v2497_v36 = vpop.f32.mrf.mxu1 }
 0x901   :  { %v2483_v35 = vpop.f32.mrf.mxu3 }
 0x902   :  { %v2484_v57 = vadd.f32 %v2483_v35, %v2454_v20  ;;  %v5552_v20 = vmov 8   ;;  %v5311_v35 = vld [vmem:[%s7700_s1 + $0x80] sm:$0xf0] }
 0x903   :  { %v2286_v46 = vpop.f32.mrf.mxu2 }
 0x904   :  { %v2498_v39 = vadd.f32 %v2497_v36, %v2484_v57  ;;  %v2306_v1 = vadd.f32 %v2305_v47, %v2286_v46  ;;  %v5014_v36 = vld [vmem:[%s7700_s1 + $0x30] sm:$0xf]  ;;  %v5309_v57 = vld [vmem:[%s7700_s1 + $0x24] sm:$0xf] }
 0x906   :  { %v2502_v40 = vadd.f32 %v2498_v39, %v2304_v61  ;;  %v2499_v21 = vpop.f32.mrf.mxu1 }
 0x908   :  { %v2504_v24 = vmax.f32 %v2502_v40, 0.0 }
 0x909   :  { %v2485_v48 = vpop.f32.mrf.mxu3 }
 0x90a   :  { %v2486_v52 = vadd.f32 %v2485_v48, %v2459_v41  ;;  %v2507_v45 = vmul.f32 %v2506_v43, %v2504_v24  ;;  %v5006_v41 = vld [vmem:[%s7700_s1 + $0x74] sm:$0xf0] }
 0x90b   :  { %v5009_v47 = vor.u32 %v5309_v57, %v5006_v41  ;;  %v2729_v57 = vld [vmem:[%s7700_s1 + $0xd8] sm:$0xf] }
 0x90c   :  { %v2500_v60 = vadd.f32 %v2499_v21, %v2486_v52  ;;  %2511 = vrot.lane.b32.xlu2 %v2507_v45, %s5543_s0  ;;  %v5004_v21 = vld [vmem:[%s7700_s1 + $0x20] sm:$0xf] }
 0x90e   :  { %v2503_v14 = vadd.f32 %v2500_v60, %v2306_v1  ;;  %v5310_v1 = vld [vmem:[%s7700_s1 + $0x70] sm:$0xf0] }
 0x910   :  { %v2505_v34 = vmax.f32 %v2503_v14, 0.0 }
 0x912   :  { %v2508_v26 = vmul.f32 %v2506_v43, %v2505_v34  ;;  %v5015_v43 = vor.u32 %v5311_v35, %v5014_v36  ;;  %v5005_v34 = vor.u32 %v5310_v1, %v5004_v21 }
 0x914   :  { %2513 = vrot.lane.b32.xlu1 %v2508_v26, %s5543_s0  ;;  %v2621_v26 = vld [vmem:[%s7700_s1 + $0xc8] sm:$0xff]  ;;  %s5563_s0 = smov [#allocation11]  }
 0x915   :  { %s4390_s25 = sshll.u32 %s5563_s0, 4  ;;  %s4391_s25 = int_to_ptr.vmem [resolvable:$true] %s4390_s25 }
 0x966   :  { %v2512_v0 = vpop.permute.xlu2 %2511 }
 0x967   :  { %2517 = vst.msk [vmem:[#allocation6] sm:$0xff] %vm2316_vm5, %v2512_v0  ;;  %v2675_v0 = vunpack.c.h.b16 %v2621_v26 }
 0x96e   :  { %v2519_v2 = vld [vmem:[#allocation6] sm:$0xff] }
 0x96f   :  { %2521 = vst.msk [vmem:[#allocation10] sm:$0xff] %vm2321_vm7, %v2519_v2  ;;  %2599 = vrot.lane.b32.xlu2 %v2519_v2, %s5544_s30  ;;  %2575 = vrot.lane.b32.xlu0 %v2519_v2, %s5545_s8 }
 0x970   :  { %2587 = vrot.lane.b32.xlu1 %v2519_v2, %s5538_s22 }
 0x976   :  { %v2622_v60 = vld [vmem:[#allocation10] sm:$0xff] }
 0x986   :  { %v2514_v42 = vpop.permute.xlu1 %2513 }
 0x987   :  { %2518 = vst.msk [vmem:[#allocation6 + $0x8] sm:$0xff] %vm2316_vm5, %v2514_v42  ;;  %v2679_v42 = vpack.c.b16 %v2675_v0, %v2675_v0  ;;  %vm4383_vm5 = vcmask 74752  }
 0x98e   :  { %v2520_v19 = vld [vmem:[#allocation6 + $0x8] sm:$0xff] }
 0x98f   :  { %2522 = vst.msk [vmem:[#allocation10 + $0x10] sm:$0xff] %vm2321_vm7, %v2520_v19  ;;  %2601 = vrot.lane.b32.xlu0 %v2520_v19, %s5544_s30  ;;  %2589 = vrot.lane.b32.xlu2 %v2520_v19, %s5538_s22  ;;  %v2732_v4 = vpack.c.bf16 %v2520_v19, %v2519_v2 }
 0x990   :  { %2577 = vrot.lane.b32.xlu1 %v2520_v19, %s5545_s8 }
 0x996   :  { %v2623_v45 = vld [vmem:[#allocation10 + $0x10] sm:$0xff] }
 0x997   :  { %2563 = vrot.lane.b32.xlu2 %v2519_v2, %s5547_s9  ;;  %2565 = vrot.lane.b32.xlu0 %v2520_v19, %s5547_s9  ;;  %v2640_v14 = vpack.c.bf16 %v2623_v45, %v2622_v60 }
 0x998   :  { %2551 = vrot.lane.b32.xlu1 %v2519_v2, %s5548_s10 }
 0x99f   :  { %2539 = vrot.lane.b32.xlu0 %v2519_v2, %s5530_s28  ;;  %2553 = vrot.lane.b32.xlu2 %v2520_v19, %s5548_s10 }
 0x9a0   :  { %2541 = vrot.lane.b32.xlu1 %v2520_v19, %s5530_s28 }
 0x9a7   :  { %2527 = vrot.lane.b32.xlu2 %v2519_v2, %s5525_s23  ;;  %2529 = vrot.lane.b32.xlu0 %v2520_v19, %s5525_s23 }
 0x9a8   :  { %2611 = vrot.lane.b32.xlu1 %v2519_v2, %s5549_s11  ;;  %v2674_v2 = vunpack.c.l.b16 %v2621_v26 }
 0x9af   :  { %2613 = vrot.lane.b32.xlu2 %v2520_v19, %s5549_s11  ;;  %2754 = vrot.lane.b32.xlu0 %v2732_v4, %s5547_s9  ;;  %v2678_v19 = vpack.c.b16 %v2674_v2, %v2674_v2  ;;  %v5032_v4 = vld [vmem:[%s7703_s4 + $0x78] sm:$0xf] }
 0x9b0   :  { %2654 = vperm.xlu1 %5478, %v7005_v56  }
 0x9b7   :  { %2659 = vperm.xlu2 %5479, %v6888_v49   ;;  %2664 = vperm.xlu0 %5480, %v7075_v25  }
 0x9b8   :  { %5481 = vset.pattern.permute.xlu1 %v5552_v20 }
 0x9b9   :  { %2734 = vperm.xlu1 %5481, %v7005_v56  }
 0x9bf   :  { %5482 = vset.pattern.permute.xlu0 %v5552_v20 }
 0x9c9   :  { %v2600_v5 = vpop.permute.xlu2 %2599 }
 0x9ca   :  { %2605 = vst.msk [vmem:[#allocation10 + $0xe0] sm:$0xff] %vm2321_vm7, %v2600_v5  ;;  %v5315_v5 = vld [vmem:[%s7703_s4 + $0x78] sm:$0x10] }
 0x9d1   :  { %v2636_v29 = vld [vmem:[#allocation10 + $0xe0] sm:$0xff] }
 0x9e1   :  { %v2576_v6 = vpop.permute.xlu0 %2575 }
 0x9e2   :  { %2581 = vst.msk [vmem:[#allocation10 + $0xa0] sm:$0xff] %vm2321_vm7, %v2576_v6  ;;  %v2588_v27 = vpop.permute.xlu1 %2587  ;;  %v5033_v6 = vor.u32 %v5315_v5, %v5032_v4 }
 0x9e3   :  { %2593 = vst.msk [vmem:[#allocation10 + $0xc0] sm:$0xff] %vm2321_vm7, %v2588_v27 }
 0x9e4   :  { %v2826_v27 = vsel %vm2824_vm13, %v5033_v6, 0 }
 0x9e5   :  { %2832 = vmatpush.bf16.msrb.mxu2 %v2826_v27 }
 0x9e9   :  { %v2590_v37 = vpop.permute.xlu2 %2589  ;;  %v2632_v7 = vld [vmem:[#allocation10 + $0xa0] sm:$0xff] }
 0x9ea   :  { %2594 = vst.msk [vmem:[#allocation10 + $0xd0] sm:$0xff] %vm2321_vm7, %v2590_v37  ;;  %v2634_v28 = vld [vmem:[#allocation10 + $0xc0] sm:$0xff] }
 0x9eb   :  { %v5314_v37 = vld [vmem:[%s7703_s4 + $0x70] sm:$0xff] }
 0x9ec   :  { %2833 = vmatpush.bf16.msrb.mxu2 %v5314_v37 }
 0x9f1   :  { %v2564_v10 = vpop.permute.xlu2 %2563  ;;  %v2635_v18 = vld [vmem:[#allocation10 + $0xd0] sm:$0xff] }
 0x9f2   :  { %2569 = vst.msk [vmem:[#allocation10 + $0x80] sm:$0xff] %vm2321_vm7, %v2564_v10  ;;  %v2646_v16 = vpack.c.bf16 %v2635_v18, %v2634_v28  ;;  %v5313_v10 = vld [vmem:[%s7703_s4 + $0x68] sm:$0xff] }
 0x9f3   :  { %2834 = vmatpush.bf16.msrb.mxu2 %v5313_v10 }
 0x9f9   :  { %v2554_v11 = vpop.permute.xlu2 %2553  ;;  %v2630_v33 = vld [vmem:[#allocation10 + $0x80] sm:$0xff] }
 0x9fa   :  { %2558 = vst.msk [vmem:[#allocation10 + $0x70] sm:$0xff] %vm2321_vm7, %v2554_v11  ;;  %v5312_v11 = vld [vmem:[%s7703_s4 + $0x60] sm:$0xff] }
 0x9fb   :  { %2835 = vmatpush.bf16.msrb.mxu2 %v5312_v11 }
 0xa01   :  { %v2602_v12 = vpop.permute.xlu0 %2601  ;;  %v2528_v53 = vpop.permute.xlu2 %2527  ;;  %v2629_v44 = vld [vmem:[#allocation10 + $0x70] sm:$0xff] }
 0xa02   :  { %2606 = vst.msk [vmem:[#allocation10 + $0xf0] sm:$0xff] %vm2321_vm7, %v2602_v12  ;;  %v2578_v8 = vpop.permute.xlu1 %2577 }
 0xa03   :  { %2533 = vst.msk [vmem:[#allocation10 + $0x20] sm:$0xff] %vm2321_vm7, %v2528_v53 }
 0xa04   :  { %2582 = vst.msk [vmem:[#allocation10 + $0xb0] sm:$0xff] %vm2321_vm7, %v2578_v8 }
 0xa09   :  { %v2566_v51 = vpop.permute.xlu0 %2565  ;;  %v2614_v63 = vpop.permute.xlu2 %2613  ;;  %v2637_v32 = vld [vmem:[#allocation10 + $0xf0] sm:$0xff] }
 0xa0a   :  { %2570 = vst.msk [vmem:[#allocation10 + $0x90] sm:$0xff] %vm2321_vm7, %v2566_v51  ;;  %v2552_v54 = vpop.permute.xlu1 %2551  ;;  %v2647_v17 = vpack.c.bf16 %v2637_v32, %v2636_v29  ;;  %v2624_v39 = vld [vmem:[#allocation10 + $0x20] sm:$0xff] }
 0xa0b   :  { %2618 = vst.msk [vmem:[#allocation10 + $0x110] sm:$0xff] %vm2321_vm7, %v2614_v63  ;;  %v2633_v50 = vld [vmem:[#allocation10 + $0xb0] sm:$0xff] }
 0xa0c   :  { %2557 = vst.msk [vmem:[#allocation10 + $0x60] sm:$0xff] %vm2321_vm7, %v2552_v54  ;;  %2688 = vmatpush.bf16.msra.mxu0 %v2647_v17  ;;  %v2645_v30 = vpack.c.bf16 %v2633_v50, %v2632_v7 }
 0xa10   :  { %2689 = vmatpush.bf16.msra.mxu0 %v2646_v16 }
 0xa11   :  { %v2540_v62 = vpop.permute.xlu0 %2539  ;;  %v2631_v31 = vld [vmem:[#allocation10 + $0x90] sm:$0xff]  ;;  %v2660_v29 = vpop.permute.xlu2 %2659 }
 0xa12   :  { %2545 = vst.msk [vmem:[#allocation10 + $0x40] sm:$0xff] %vm2321_vm7, %v2540_v62  ;;  %v2542_v3 = vpop.permute.xlu1 %2541  ;;  %v2644_v9 = vpack.c.bf16 %v2631_v31, %v2630_v33  ;;  %v2639_v48 = vld [vmem:[#allocation10 + $0x110] sm:$0xff] }
 0xa13   :  { %2546 = vst.msk [vmem:[#allocation10 + $0x50] sm:$0xff] %vm2321_vm7, %v2542_v3  ;;  %v2628_v55 = vld [vmem:[#allocation10 + $0x60] sm:$0xff] }
 0xa14   :  { %2690 = vmatpush.bf16.msra.mxu0 %v2645_v30  ;;  %v2643_v58 = vpack.c.bf16 %v2629_v44, %v2628_v55 }
 0xa18   :  { %2691 = vmatpush.bf16.msra.mxu0 %v2644_v9 }
 0xa19   :  { %v2530_v59 = vpop.permute.xlu0 %2529  ;;  %v2626_v13 = vld [vmem:[#allocation10 + $0x40] sm:$0xff] }
 0xa1a   :  { %2534 = vst.msk [vmem:[#allocation10 + $0x30] sm:$0xff] %vm2321_vm7, %v2530_v59  ;;  %v2612_v49 = vpop.permute.xlu1 %2611  ;;  %v2627_v38 = vld [vmem:[#allocation10 + $0x50] sm:$0xff] }
 0xa1b   :  { %2617 = vst.msk [vmem:[#allocation10 + $0x100] sm:$0xff] %vm2321_vm7, %v2612_v49  ;;  %v2642_v23 = vpack.c.bf16 %v2627_v38, %v2626_v13 }
 0xa1c   :  { %2692 = vmatpush.bf16.msra.mxu0 %v2643_v58 }
 0xa20   :  { %2693 = vmatpush.bf16.msra.mxu0 %v2642_v23 }
 0xa21   :  { %v2755_v61 = vpop.permute.xlu0 %2754  ;;  %v2625_v40 = vld [vmem:[#allocation10 + $0x30] sm:$0xff] }
 0xa22   :  { %2770 = vmatpush.bf16.msrb.mxu3 %v2755_v61  ;;  %v2641_v24 = vpack.c.bf16 %v2625_v40, %v2624_v39  ;;  %v2638_v46 = vld [vmem:[#allocation10 + $0x100] sm:$0xff]  ;;  %v2655_v8 = vpop.permute.xlu1 %2654  ;;  %v2750_v61 = vunpack.c.l.b16 %v2729_v57 }
 0xa23   :  { %v2648_v52 = vpack.c.bf16 %v2639_v48, %v2638_v46 }
 0xa24   :  { %2694 = vmatpush.bf16.msra.mxu0 %v2641_v24  ;;  %v2752_v39 = vpack.c.b16 %v2750_v61, %v2750_v61 }
 0xa25   :  { %2713 = vmatpush.bf16.msra.mxu1 %v2648_v52  ;;  %5016 = vmatmul.msk.bf16.vlgmr.msrb.gmra.mxu3 %vm2470_vm3, %v5015_v43  ;;  %v5495_v43 = vld [vmem:[%s7701_s2 + $0x8] sm:$0xff] }
 0xa28   :  { %5010 = vmatmul.msk.bf16.vlgmr.msra.gmra.mxu1 %vm2470_vm3, %v5009_v47  ;;  %2695 = vmatpush.bf16.msra.mxu0 %v2640_v14 }
 0xa29   :  { %v2665_v50 = vpop.permute.xlu0 %2664 }
 0xa2b   :  { %2696 = vmatmul.bf16.vlgmr.msra.gmra.mxu0 %v5005_v34  ;;  %v2735_v33 = vpop.permute.xlu1 %2734 }
 0xa35   :  { %5017 = vmatmul.msk.bf16.gmra.mxu3 %vm2470_vm3, %v2752_v39 }
 0xa38   :  { %5011 = vmatmul.msk.bf16.gmra.mxu1 %vm2470_vm3, %v2679_v42 }
 0xa3b   :  { %2701 = vmatmul.bf16.gmra.mxu0 %v2678_v19 }
 0xaa5   :  { %v2715_v12 = vpop.f32.mrf.mxu1 }
 0xaa8   :  { %v2697_v53 = vpop.f32.mrf.mxu0  ;;  %v2772_v9 = vpop.f32.mrf.mxu3 }
 0xaa9   :  { %v2698_v51 = vadd.f32 %v2697_v53, %v2655_v8  ;;  %v2773_v44 = vadd.f32 %v2772_v9, %v2735_v33 }
 0xaab   :  { %v2716_v54 = vadd.f32 %v2715_v12, %v2698_v51 }
 0xaad   :  { %v2717_v63 = vpop.f32.mrf.mxu1  ;;  %v2724_v22 = vmax.f32 %v2716_v54, 0.0 }
 0xab0   :  { %v2699_v32 = vpop.f32.mrf.mxu0  ;;  %v7185_v0 = vpop.f32.mrf.mxu3 }
 0xab1   :  { %v2700_v17 = vadd.f32 %v2699_v32, %v2660_v29 }
 0xab3   :  { %v2718_v18 = vadd.f32 %v2717_v63, %v2700_v17 }
 0xab5   :  { %v2725_v28 = vmax.f32 %v2718_v18, 0.0  ;;  %v2720_v16 = vpop.f32.mrf.mxu1 }
 0xab7   :  { %v2781_v62 = vpack.c.bf16 %v2725_v28, %v2724_v22 }
 0xab8   :  { %v2702_v7 = vpop.f32.mrf.mxu0  ;;  %v7188_v42 = vpop.f32.mrf.mxu3 }
 0xab9   :  { %5034 = vmatmul.msk.bf16.vlgmr.msrb.gmra.mxu2 %vm2321_vm7, %v2781_v62  ;;  %v2703_v3 = vadd.f32 %v2702_v7, %v2665_v50 }
 0xabb   :  { %v2721_v30 = vadd.f32 %v2720_v16, %v2703_v3 }
 0xabd   :  { %v2722_v31 = vpop.f32.mrf.mxu1  ;;  %v2726_v59 = vmax.f32 %v2721_v30, 0.0 }
 0xabf   :  { %v2782_v49 = vpack.c.bf16 %v2773_v44, %v2726_v59 }
 0xac0   :  { %v2704_v55 = vpop.f32.mrf.mxu0  ;;  %v2779_v6 = vpop.f32.mrf.mxu3 }
 0xac9   :  { %5035 = vmatmul.msk.bf16.gmra.mxu2 %vm2321_vm7, %v2782_v49 }
 0xb3c   :  { %v2837_v58 = vpop.f32.mrf.mxu2 }
 0xb3d   :  { %2855 = vrot.lane.b32.xlu2 %v2837_v58, %s5553_s12 }
 0xb44   :  { %v2839_v13 = vpop.f32.mrf.mxu2 }
 0xb45   :  { %2857 = vrot.lane.b32.xlu2 %v2839_v13, %s5553_s12 }
 0xb4c   :  { %v2842_v38 = vpop.f32.mrf.mxu2 }
 0xb4d   :  { %2859 = vrot.lane.b32.xlu1 %v2842_v38, %s5553_s12 }
 0xb97   :  { %v2856_v20 = vpop.permute.xlu2 %2855 }
 0xb98   :  { %2865 = vst.msk [vmem:[#allocation7] sm:$0xff] %vm2864_vm2, %v2856_v20 }
 0xb9f   :  { %v2868_v23 = vld [vmem:[#allocation7] sm:$0xff]  ;;  %v2858_v36 = vpop.permute.xlu2 %2857 }
 0xba0   :  { %2866 = vst.msk [vmem:[#allocation7 + $0x8] sm:$0xff] %vm2864_vm2, %v2858_v36  ;;  %3007 = vrot.lane.b32.xlu0 %v2868_v23, %s5539_s24  ;;  %2935 = vrot.lane.b32.xlu2 %v2868_v23, %s5554_s13 }
 0xba1   :  { %2953 = vrot.lane.b32.xlu1 %v2868_v23, %s5548_s10  ;;  %2872 = vst.msk [vmem:[#allocation10] sm:$0xff] %vm2871_vm6, %v2868_v23 }
 0xba7   :  { %v2869_v35 = vld [vmem:[#allocation7 + $0x8] sm:$0xff] }
 0xba8   :  { %2917 = vrot.lane.b32.xlu2 %v2868_v23, %s5555_s26  ;;  %2937 = vrot.lane.b32.xlu0 %v2869_v35, %s5554_s13  ;;  %2873 = vst.msk [vmem:[#allocation10 + $0x10] sm:$0xff] %vm2871_vm6, %v2869_v35 }
 0xba9   :  { %2919 = vrot.lane.b32.xlu1 %v2869_v35, %s5555_s26 }
 0xbb0   :  { %2899 = vrot.lane.b32.xlu2 %v2868_v23, %s5530_s28  ;;  %2901 = vrot.lane.b32.xlu0 %v2869_v35, %s5530_s28 }
 0xbb1   :  { %3009 = vrot.lane.b32.xlu1 %v2869_v35, %s5539_s24 }
 0xbb9   :  { %2991 = vrot.lane.b32.xlu1 %v2869_v35, %s5556_s16 }
 0xbbf   :  { %v2860_v40 = vpop.permute.xlu1 %2859 }
 0xbc0   :  { %2867 = vst.msk [vmem:[#allocation7 + $0x10] sm:$0xff] %vm2864_vm2, %v2860_v40 }
 0xbc7   :  { %v2870_v41 = vld [vmem:[#allocation7 + $0x10] sm:$0xff] }
 0xbc8   :  { %2939 = vrot.lane.b32.xlu0 %v2870_v41, %s5554_s13  ;;  %2921 = vrot.lane.b32.xlu2 %v2870_v41, %s5555_s26  ;;  %2874 = vst.msk [vmem:[#allocation10 + $0x20] sm:$0xff] %vm2871_vm6, %v2870_v41 }
 0xbc9   :  { %2903 = vrot.lane.b32.xlu1 %v2870_v41, %s5530_s28 }
 0xbcf   :  { %v3024_v57 = vld [vmem:[#allocation10 + $0x20] sm:$0xff] }
 0xbd0   :  { %3011 = vrot.lane.b32.xlu0 %v2870_v41, %s5539_s24  ;;  %2993 = vrot.lane.b32.xlu2 %v2870_v41, %s5556_s16 }
 0xbd1   :  { %2885 = vrot.lane.b32.xlu1 %v2870_v41, %s5525_s23 }
 0xbd8   :  { %2883 = vrot.lane.b32.xlu0 %v2869_v35, %s5525_s23  ;;  %2971 = vrot.lane.b32.xlu2 %v2868_v23, %s5545_s8 }
 0xbd9   :  { %2881 = vrot.lane.b32.xlu1 %v2868_v23, %s5525_s23 }
 0xbe0   :  { %2989 = vrot.lane.b32.xlu0 %v2868_v23, %s5556_s16  ;;  %2975 = vrot.lane.b32.xlu2 %v2870_v41, %s5545_s8 }
 0xbe1   :  { %2955 = vrot.lane.b32.xlu1 %v2869_v35, %s5548_s10 }
 0xbe8   :  { %2973 = vrot.lane.b32.xlu0 %v2869_v35, %s5545_s8  ;;  %2957 = vrot.lane.b32.xlu2 %v2870_v41, %s5548_s10 }
 0xbe9   :  { %2742 = vperm.xlu1 %5481, %v7075_v25  }
 0xbf0   :  { %2738 = vperm.xlu0 %5482, %v5495_v43   ;;  %v3023_v43 = vld [vmem:[#allocation10 + $0x10] sm:$0xff] }
 0xbfa   :  { %v2936_v24 = vpop.permute.xlu2 %2935 }
 0xbfb   :  { %2944 = vst.msk [vmem:[#allocation10 + $0xc0] sm:$0xff] %vm2871_vm6, %v2936_v24  ;;  %v5039_v24 = vld [vmem:[%s7700_s1 + $0x28] sm:$0xf] }
 0xc02   :  { %v2918_v46 = vpop.permute.xlu2 %2917  ;;  %v3034_v51 = vld [vmem:[#allocation10 + $0xc0] sm:$0xff] }
 0xc03   :  { %2926 = vst.msk [vmem:[#allocation10 + $0x90] sm:$0xff] %vm2871_vm6, %v2918_v46  ;;  %v5317_v46 = vld [vmem:[%s7700_s1 + $0x78] sm:$0xf0] }
 0xc0a   :  { %v2900_v48 = vpop.permute.xlu2 %2899  ;;  %v3031_v7 = vld [vmem:[#allocation10 + $0x90] sm:$0xff] }
 0xc0b   :  { %2908 = vst.msk [vmem:[#allocation10 + $0x60] sm:$0xff] %vm2871_vm6, %v2900_v48  ;;  %v3022_v48 = vld [vmem:[#allocation10] sm:$0xff] }
 0xc12   :  { %v3008_v52 = vpop.permute.xlu0 %3007  ;;  %v3028_v44 = vld [vmem:[#allocation10 + $0x60] sm:$0xff] }
 0xc13   :  { %3016 = vst.msk [vmem:[#allocation10 + $0x180] sm:$0xff] %vm2871_vm6, %v3008_v52  ;;  %v2954_v45 = vpop.permute.xlu1 %2953  ;;  %v5557_v52 = vmov 7  }
 0xc14   :  { %2962 = vst.msk [vmem:[#allocation10 + $0xf0] sm:$0xff] %vm2871_vm6, %v2954_v45  ;;  %5483 = vset.pattern.permute.xlu2 %v5557_v52  ;;  %5484 = vset.pattern.permute.xlu1 %v5557_v52  ;;  %v3049_v45 = vpack.c.bf16 %v3023_v43, %v3022_v48  ;;  %v7276_v48 = vld [vmem:[%s7701_s2 + $0x18] sm:$0xff] }
 0xc15   :  { %3068 = vperm.xlu2 %5483, %v7005_v56   ;;  %3078 = vperm.xlu1 %5484, %v7075_v25  }
 0xc1a   :  { %v2938_v47 = vpop.permute.xlu0 %2937  ;;  %v3046_v30 = vld [vmem:[#allocation10 + $0x180] sm:$0xff] }
 0xc1b   :  { %2945 = vst.msk [vmem:[#allocation10 + $0xd0] sm:$0xff] %vm2871_vm6, %v2938_v47  ;;  %v2920_v21 = vpop.permute.xlu1 %2919  ;;  %v3037_v11 = vld [vmem:[#allocation10 + $0xf0] sm:$0xff] }
 0xc1c   :  { %2927 = vst.msk [vmem:[#allocation10 + $0xa0] sm:$0xff] %vm2871_vm6, %v2920_v21  ;;  %v5040_v21 = vor.u32 %v5317_v46, %v5039_v24  ;;  %v5558_v24 = vmov 9   ;;  %v7271_v46 = vld [vmem:[%s7701_s2 + $0x20] sm:$0xff] }
 0xc1d   :  { %5486 = vset.pattern.permute.xlu1 %v5558_v24  ;;  %5485 = vset.pattern.permute.xlu0 %v5558_v24 }
 0xc22   :  { %v2902_v1 = vpop.permute.xlu0 %2901  ;;  %v2922_v60 = vpop.permute.xlu2 %2921  ;;  %v3035_v8 = vld [vmem:[#allocation10 + $0xd0] sm:$0xff] }
 0xc23   :  { %2909 = vst.msk [vmem:[#allocation10 + $0x70] sm:$0xff] %vm2871_vm6, %v2902_v1  ;;  %v3010_v14 = vpop.permute.xlu1 %3009  ;;  %v3055_v63 = vpack.c.bf16 %v3035_v8, %v3034_v51  ;;  %v3032_v54 = vld [vmem:[#allocation10 + $0xa0] sm:$0xff] }
 0xc24   :  { %2928 = vst.msk [vmem:[#allocation10 + $0xb0] sm:$0xff] %vm2871_vm6, %v2922_v60 }
 0xc25   :  { %3017 = vst.msk [vmem:[#allocation10 + $0x190] sm:$0xff] %vm2871_vm6, %v3010_v14 }
 0xc2a   :  { %v2994_v34 = vpop.permute.xlu2 %2993  ;;  %v3029_v33 = vld [vmem:[#allocation10 + $0x70] sm:$0xff] }
 0xc2b   :  { %3000 = vst.msk [vmem:[#allocation10 + $0x170] sm:$0xff] %vm2871_vm6, %v2994_v34  ;;  %v2992_v26 = vpop.permute.xlu1 %2991  ;;  %v3033_v29 = vld [vmem:[#allocation10 + $0xb0] sm:$0xff]  ;;  %v3052_v58 = vpack.c.bf16 %v3029_v33, %v3028_v44 }
 0xc2c   :  { %2999 = vst.msk [vmem:[#allocation10 + $0x160] sm:$0xff] %vm2871_vm6, %v2992_v26  ;;  %v3054_v22 = vpack.c.bf16 %v3033_v29, %v3032_v54  ;;  %v3047_v62 = vld [vmem:[#allocation10 + $0x190] sm:$0xff]  ;;  %v2844_v29 = vpop.f32.mrf.mxu2 }
 0xc2d   :  { %v3061_v31 = vpack.c.bf16 %v3047_v62, %v3046_v30 }
 0xc32   :  { %v2972_v2 = vpop.permute.xlu2 %2971  ;;  %v3045_v55 = vld [vmem:[#allocation10 + $0x170] sm:$0xff] }
 0xc33   :  { %2980 = vst.msk [vmem:[#allocation10 + $0x120] sm:$0xff] %vm2871_vm6, %v2972_v2  ;;  %v3044_v9 = vld [vmem:[#allocation10 + $0x160] sm:$0xff] }
 0xc34   :  { %v3060_v13 = vpack.c.bf16 %v3045_v55, %v3044_v9 }
 0xc3a   :  { %v2940_v19 = vpop.permute.xlu0 %2939  ;;  %v2976_v4 = vpop.permute.xlu2 %2975  ;;  %v3040_v60 = vld [vmem:[#allocation10 + $0x120] sm:$0xff] }
 0xc3b   :  { %2946 = vst.msk [vmem:[#allocation10 + $0xe0] sm:$0xff] %vm2871_vm6, %v2940_v19  ;;  %v2904_v5 = vpop.permute.xlu1 %2903 }
 0xc3c   :  { %2982 = vst.msk [vmem:[#allocation10 + $0x140] sm:$0xff] %vm2871_vm6, %v2976_v4  ;;  %v7215_v4 = vld [vmem:[%s7701_s2 + $0x8] sm:$0xff] }
 0xc3d   :  { %2910 = vst.msk [vmem:[#allocation10 + $0x80] sm:$0xff] %vm2871_vm6, %v2904_v5  ;;  %v5316_v5 = vld [vmem:[%s7700_s1 + $0x2c] sm:$0xf]  ;;  %3073 = vperm.xlu2 %5483, %v7215_v4  }
 0xc42   :  { %v3012_v27 = vpop.permute.xlu0 %3011  ;;  %v2958_v37 = vpop.permute.xlu2 %2957  ;;  %v3036_v10 = vld [vmem:[#allocation10 + $0xe0] sm:$0xff] }
 0xc43   :  { %3018 = vst.msk [vmem:[#allocation10 + $0x1a0] sm:$0xff] %vm2871_vm6, %v3012_v27  ;;  %v2886_v12 = vpop.permute.xlu1 %2885  ;;  %v3056_v53 = vpack.c.bf16 %v3037_v11, %v3036_v10  ;;  %v3042_v61 = vld [vmem:[#allocation10 + $0x140] sm:$0xff] }
 0xc44   :  { %2964 = vst.msk [vmem:[#allocation10 + $0x110] sm:$0xff] %vm2871_vm6, %v2958_v37  ;;  %v3030_v16 = vld [vmem:[#allocation10 + $0x80] sm:$0xff] }
 0xc45   :  { %2892 = vst.msk [vmem:[#allocation10 + $0x50] sm:$0xff] %vm2871_vm6, %v2886_v12  ;;  %3106 = vmatpush.bf16.msrb.mxu1 %v3056_v53  ;;  %v3053_v3 = vpack.c.bf16 %v3031_v7, %v3030_v16  ;;  %v3021_v37 = vld [vmem:[%s7700_s1 + $0xd0] sm:$0xff]  ;;  %5487 = vset.pattern.permute.xlu2 %v5558_v24 }
 0xc46   :  { %v3088_v10 = vunpack.c.l.b16 %v3021_v37  ;;  %v3089_v12 = vunpack.c.h.b16 %v3021_v37 }
 0xc48   :  { %v3092_v11 = vpack.c.b16 %v3088_v10, %v3088_v10  ;;  %v3093_v53 = vpack.c.b16 %v3089_v12, %v3089_v12 }
 0xc49   :  { %3107 = vmatpush.bf16.msrb.mxu1 %v3055_v63 }
 0xc4a   :  { %v2884_v32 = vpop.permute.xlu0 %2883  ;;  %v3048_v17 = vld [vmem:[#allocation10 + $0x1a0] sm:$0xff] }
 0xc4b   :  { %2891 = vst.msk [vmem:[#allocation10 + $0x40] sm:$0xff] %vm2871_vm6, %v2884_v32  ;;  %v2882_v18 = vpop.permute.xlu1 %2881  ;;  %v3062_v28 = vpack.c.bf16 %v3048_v17, %v3048_v17  ;;  %v3039_v6 = vld [vmem:[#allocation10 + $0x110] sm:$0xff] }
 0xc4c   :  { %2890 = vst.msk [vmem:[#allocation10 + $0x30] sm:$0xff] %vm2871_vm6, %v2882_v18  ;;  %v3027_v20 = vld [vmem:[#allocation10 + $0x50] sm:$0xff] }
 0xc4d   :  { %3108 = vmatpush.bf16.msrb.mxu1 %v3054_v22  ;;  %v3104_v50 = vsel %vm1638_vm9, %v3062_v28, 0  ;;  %v3148_v22 = vld [vmem:[%s7704_s5 + $0x90] ss:$0 sm:$0xff] }
 0xc4e   :  { %3126 = vmatpush.bf16.msrb.mxu0 %v3104_v50 }
 0xc51   :  { %3109 = vmatpush.bf16.msrb.mxu1 %v3053_v3 }
 0xc52   :  { %v2990_v59 = vpop.permute.xlu0 %2989  ;;  %3127 = vmatpush.bf16.msrb.mxu0 %v3061_v31  ;;  %v3026_v38 = vld [vmem:[#allocation10 + $0x40] sm:$0xff] }
 0xc53   :  { %2998 = vst.msk [vmem:[#allocation10 + $0x150] sm:$0xff] %vm2871_vm6, %v2990_v59  ;;  %v2956_v49 = vpop.permute.xlu1 %2955  ;;  %v3051_v23 = vpack.c.bf16 %v3027_v20, %v3026_v38  ;;  %v3025_v36 = vld [vmem:[#allocation10 + $0x30] sm:$0xff] }
 0xc54   :  { %2963 = vst.msk [vmem:[#allocation10 + $0x100] sm:$0xff] %vm2871_vm6, %v2956_v49  ;;  %v3050_v40 = vpack.c.bf16 %v3025_v36, %v3024_v57 }
 0xc55   :  { %3110 = vmatpush.bf16.msrb.mxu1 %v3052_v58 }
 0xc56   :  { %3128 = vmatpush.bf16.msrb.mxu0 %v3060_v13 }
 0xc59   :  { %3111 = vmatpush.bf16.msrb.mxu1 %v3051_v23 }
 0xc5a   :  { %v2974_v35 = vpop.permute.xlu0 %2973  ;;  %v3043_v39 = vld [vmem:[#allocation10 + $0x150] sm:$0xff] }
 0xc5b   :  { %2981 = vst.msk [vmem:[#allocation10 + $0x130] sm:$0xff] %vm2871_vm6, %v2974_v35  ;;  %v3059_v41 = vpack.c.bf16 %v3043_v39, %v3042_v61  ;;  %v2743_v47 = vpop.permute.xlu1 %2742  ;;  %v3038_v19 = vld [vmem:[#allocation10 + $0x100] sm:$0xff] }
 0xc5c   :  { %v2778_v34 = vadd.f32 %v7188_v42, %v2743_v47  ;;  %v5041_v42 = vld [vmem:[%s7700_s1 + $0x7c] sm:$0xf0] }
 0xc5d   :  { %3112 = vmatpush.bf16.msrb.mxu1 %v3050_v40  ;;  %3129 = vmatpush.bf16.msrb.mxu0 %v3059_v41  ;;  %v5044_v27 = vor.u32 %v5316_v5, %v5041_v42 }
 0xc61   :  { %3113 = vmatpush.bf16.msrb.mxu1 %v3049_v45 }
 0xc62   :  { %v2739_v1 = vpop.permute.xlu0 %2738  ;;  %v3041_v14 = vld [vmem:[#allocation10 + $0x130] sm:$0xff] }
 0xc63   :  { %v2775_v26 = vadd.f32 %v7185_v0, %v2739_v1  ;;  %v3058_v2 = vpack.c.bf16 %v3041_v14, %v3040_v60  ;;  %v3057_v0 = vpack.c.bf16 %v3039_v6, %v3038_v19 }
 0xc64   :  { %3114 = vmatmul.bf16.vlgmr.msrb.gmra.mxu1 %v5040_v21 }
 0xc65   :  { %v2783_v56 = vpack.c.bf16 %v2778_v34, %v2775_v26  ;;  %3130 = vmatpush.bf16.msrb.mxu0 %v3058_v2 }
 0xc67   :  { %5036 = vmatmul.msk.bf16.gmra.mxu2 %vm2321_vm7, %v2783_v56 }
 0xc69   :  { %3131 = vmatpush.bf16.msrb.mxu0 %v3057_v0 }
 0xc6c   :  { %5045 = vmatmul.msk.bf16.vlgmr.msrb.gmra.mxu0 %vm3096_vm8, %v5044_v27 }
 0xc6f   :  { %v3069_v51 = vpop.permute.xlu2 %3068 }
 0xc74   :  { %3119 = vmatmul.bf16.gmra.mxu1 %v3092_v11 }
 0xc7c   :  { %5046 = vmatmul.msk.bf16.gmra.mxu0 %vm3096_vm8, %v3093_v53 }
 0xc87   :  { %v3079_v33 = vpop.permute.xlu1 %3078 }
 0xc97   :  { %v3074_v16 = vpop.permute.xlu2 %3073 }
 0xce1   :  { %v3115_v8 = vpop.f32.mrf.mxu1 }
 0xce2   :  { %v3116_v63 = vadd.f32 %v3115_v8, %v3069_v51 }
 0xce9   :  { %v3117_v32 = vpop.f32.mrf.mxu1  ;;  %v3133_v54 = vpop.f32.mrf.mxu0 }
 0xcea   :  { %v3134_v17 = vadd.f32 %v3133_v54, %v3116_v63  ;;  %v3118_v50 = vadd.f32 %v3117_v32, %v3074_v16  ;;  %v2847_v7 = vpop.f32.mrf.mxu2 }
 0xcec   :  { %v3142_v18 = vadd.f32 %v3134_v17, %v2844_v29 }
 0xcee   :  { %v3145_v28 = vmax.f32 %v3142_v18, 0.0 }
 0xcf0   :  { %v3149_v62 = vmul.f32 %v3148_v22, %v3145_v28 }
 0xcf1   :  { %v3135_v3 = vpop.f32.mrf.mxu0  ;;  %v3120_v30 = vpop.f32.mrf.mxu1 }
 0xcf2   :  { %v3136_v31 = vadd.f32 %v3135_v3, %v3118_v50  ;;  %3155 = vrot.lane.b32.xlu0 %v3149_v62, %s5553_s12  ;;  %v3121_v59 = vadd.f32 %v3120_v30, %v3079_v33  ;;  %v2849_v38 = vpop.f32.mrf.mxu2 }
 0xcf4   :  { %v3143_v9 = vadd.f32 %v3136_v31, %v2847_v7 }
 0xcf6   :  { %v3146_v55 = vmax.f32 %v3143_v9, 0.0 }
 0xcf8   :  { %v3150_v44 = vmul.f32 %v3148_v22, %v3146_v55 }
 0xcf9   :  { %v3138_v49 = vpop.f32.mrf.mxu0  ;;  %v3122_v58 = vpop.f32.mrf.mxu1 }
 0xcfa   :  { %v3139_v13 = vadd.f32 %v3138_v49, %v3121_v59  ;;  %3157 = vrot.lane.b32.xlu2 %v3150_v44, %s5553_s12 }
 0xcfc   :  { %v3144_v20 = vadd.f32 %v3139_v13, %v2849_v38 }
 0xcfe   :  { %v3147_v23 = vmax.f32 %v3144_v20, 0.0  ;;  %v7308_v20 = vld [vmem:[%s7701_s2] sm:$0xff] }
 0xd00   :  { %v3151_v36 = vmul.f32 %v3148_v22, %v3147_v23 }
 0xd01   :  { %v3140_v35 = vpop.f32.mrf.mxu0 }
 0xd02   :  { %3159 = vrot.lane.b32.xlu1 %v3151_v36, %s5553_s12 }
 0xd54   :  { %v3158_v57 = vpop.permute.xlu2 %3157 }
 0xd55   :  { %3165 = vst.msk [vmem:[#allocation8 + $0x8] sm:$0xff] %vm2864_vm2, %v3158_v57 }
 0xd5c   :  { %v3168_v61 = vld [vmem:[#allocation8 + $0x8] sm:$0xff] }
 0xd5d   :  { %3171 = vst.msk [vmem:[#allocation10 + $0x10] sm:$0xff] %vm2871_vm6, %v3168_v61 }
 0xd64   :  { %v3156_v39 = vpop.permute.xlu0 %3155 }
 0xd65   :  { %3164 = vst.msk [vmem:[#allocation8] sm:$0xff] %vm2864_vm2, %v3156_v39 }
 0xd6c   :  { %v3167_v40 = vld [vmem:[#allocation8] sm:$0xff] }
 0xd6d   :  { %3170 = vst.msk [vmem:[#allocation10] sm:$0xff] %vm2871_vm6, %v3167_v40  ;;  %3197 = vrot.lane.b32.xlu0 %v3167_v40, %s5530_s28  ;;  %3233 = vrot.lane.b32.xlu2 %v3167_v40, %s5554_s13  ;;  %v3502_v52 = vpack.c.bf16 %v3168_v61, %v3167_v40 }
 0xd6e   :  { %3251 = vrot.lane.b32.xlu1 %v3167_v40, %s5548_s10 }
 0xd74   :  { %v3160_v41 = vpop.permute.xlu1 %3159 }
 0xd75   :  { %3166 = vst.msk [vmem:[#allocation8 + $0x10] sm:$0xff] %vm2864_vm2, %v3160_v41  ;;  %3179 = vrot.lane.b32.xlu0 %v3167_v40, %s5525_s23  ;;  %3181 = vrot.lane.b32.xlu2 %v3168_v61, %s5525_s23 }
 0xd76   :  { %3215 = vrot.lane.b32.xlu1 %v3167_v40, %s5555_s26 }
 0xd7c   :  { %v3169_v43 = vld [vmem:[#allocation8 + $0x10] sm:$0xff] }
 0xd7d   :  { %3172 = vst.msk [vmem:[#allocation10 + $0x20] sm:$0xff] %vm2871_vm6, %v3169_v43  ;;  %3235 = vrot.lane.b32.xlu0 %v3168_v61, %s5554_s13  ;;  %3307 = vrot.lane.b32.xlu2 %v3168_v61, %s5539_s24  ;;  %v3503_v45 = vpack.c.bf16 %v3169_v43, %v3169_v43 }
 0xd7e   :  { %3305 = vrot.lane.b32.xlu1 %v3167_v40, %s5539_s24 }
 0xd85   :  { %3237 = vrot.lane.b32.xlu0 %v3169_v43, %s5554_s13  ;;  %3219 = vrot.lane.b32.xlu2 %v3169_v43, %s5555_s26 }
 0xd86   :  { %3217 = vrot.lane.b32.xlu1 %v3168_v61, %s5555_s26 }
 0xd8d   :  { %3309 = vrot.lane.b32.xlu2 %v3169_v43, %s5539_s24  ;;  %3201 = vrot.lane.b32.xlu0 %v3169_v43, %s5530_s28  ;;  %s5559_s24 = smov 4  }
 0xd8e   :  { %3199 = vrot.lane.b32.xlu1 %v3168_v61, %s5530_s28 }
 0xd95   :  { %3291 = vrot.lane.b32.xlu2 %v3169_v43, %s5556_s16  ;;  %3183 = vrot.lane.b32.xlu0 %v3169_v43, %s5525_s23 }
 0xd96   :  { %3289 = vrot.lane.b32.xlu1 %v3168_v61, %s5556_s16 }
 0xd9d   :  { %3269 = vrot.lane.b32.xlu2 %v3167_v40, %s5545_s8  ;;  %3273 = vrot.lane.b32.xlu0 %v3169_v43, %s5545_s8 }
 0xd9e   :  { %3287 = vrot.lane.b32.xlu1 %v3167_v40, %s5556_s16 }
 0xda5   :  { %3255 = vrot.lane.b32.xlu2 %v3169_v43, %s5548_s10  ;;  %3271 = vrot.lane.b32.xlu0 %v3168_v61, %s5545_s8 }
 0xda6   :  { %3253 = vrot.lane.b32.xlu1 %v3168_v61, %s5548_s10  ;;  %v3325_v61 = vld [vmem:[#allocation10 + $0x20] sm:$0xff] }
 0xdad   :  { %3382 = vperm.xlu2 %5487, %v7075_v25   ;;  %3372 = vperm.xlu0 %5485, %v7308_v20  }
 0xdae   :  { %3377 = vperm.xlu1 %5486, %v7215_v4  }
 0xdb5   :  { %3392 = vperm.xlu2 %5487, %v7271_v46  }
 0xdb6   :  { %3387 = vperm.xlu1 %5486, %v7276_v48  }
 0xdbd   :  { %3545 = vrot.lane.b32.xlu2 %v3502_v52, %s5554_s13  ;;  %v3323_v52 = vld [vmem:[#allocation10] sm:$0xff] }
 0xdbe   :  { %3547 = vrot.lane.b32.xlu1 %v3503_v45, %s5554_s13  ;;  %v7316_v45 = vld [vmem:[%s7701_s2 + $0x28] sm:$0xff] }
 0xdbf   :  { %3397 = vperm.xlu0 %5485, %v7316_v45  }
 0xdc7   :  { %v3234_v25 = vpop.permute.xlu2 %3233 }
 0xdc8   :  { %3242 = vst.msk [vmem:[#allocation10 + $0xc0] sm:$0xff] %vm2871_vm6, %v3234_v25  ;;  %v5049_v25 = vld [vmem:[%s7700_s1 + $0x34] sm:$0xf] }
 0xdcf   :  { %v3182_v47 = vpop.permute.xlu2 %3181  ;;  %v3335_v18 = vld [vmem:[#allocation10 + $0xc0] sm:$0xff] }
 0xdd0   :  { %3189 = vst.msk [vmem:[#allocation10 + $0x40] sm:$0xff] %vm2871_vm6, %v3182_v47  ;;  %v5319_v47 = vld [vmem:[%s7700_s1 + $0x84] sm:$0xf0] }
 0xdd7   :  { %v3308_v21 = vpop.permute.xlu2 %3307  ;;  %v3327_v23 = vld [vmem:[#allocation10 + $0x40] sm:$0xff] }
 0xdd8   :  { %3315 = vst.msk [vmem:[#allocation10 + $0x190] sm:$0xff] %vm2871_vm6, %v3308_v21  ;;  %v3324_v21 = vld [vmem:[#allocation10 + $0x10] sm:$0xff] }
 0xddf   :  { %v3198_v1 = vpop.permute.xlu0 %3197  ;;  %v3220_v60 = vpop.permute.xlu2 %3219  ;;  %v3348_v12 = vld [vmem:[#allocation10 + $0x190] sm:$0xff] }
 0xde0   :  { %3206 = vst.msk [vmem:[#allocation10 + $0x60] sm:$0xff] %vm2871_vm6, %v3198_v1  ;;  %v3252_v14 = vpop.permute.xlu1 %3251  ;;  %v3350_v1 = vpack.c.bf16 %v3324_v21, %v3323_v52 }
 0xde1   :  { %3226 = vst.msk [vmem:[#allocation10 + $0xb0] sm:$0xff] %vm2871_vm6, %v3220_v60  ;;  %v5050_v60 = vor.u32 %v5319_v47, %v5049_v25 }
 0xde2   :  { %3260 = vst.msk [vmem:[#allocation10 + $0xf0] sm:$0xff] %vm2871_vm6, %v3252_v14 }
 0xde7   :  { %v3180_v34 = vpop.permute.xlu0 %3179  ;;  %v3310_v26 = vpop.permute.xlu2 %3309  ;;  %v3329_v55 = vld [vmem:[#allocation10 + $0x60] sm:$0xff] }
 0xde8   :  { %3188 = vst.msk [vmem:[#allocation10 + $0x30] sm:$0xff] %vm2871_vm6, %v3180_v34  ;;  %v3216_v2 = vpop.permute.xlu1 %3215  ;;  %v3334_v50 = vld [vmem:[#allocation10 + $0xb0] sm:$0xff] }
 0xde9   :  { %3316 = vst.msk [vmem:[#allocation10 + $0x1a0] sm:$0xff] %vm2871_vm6, %v3310_v26  ;;  %v3338_v29 = vld [vmem:[#allocation10 + $0xf0] sm:$0xff] }
 0xdea   :  { %3224 = vst.msk [vmem:[#allocation10 + $0x90] sm:$0xff] %vm2871_vm6, %v3216_v2 }
 0xdef   :  { %v3236_v19 = vpop.permute.xlu0 %3235  ;;  %v3292_v56 = vpop.permute.xlu2 %3291  ;;  %v3326_v35 = vld [vmem:[#allocation10 + $0x30] sm:$0xff] }
 0xdf0   :  { %3243 = vst.msk [vmem:[#allocation10 + $0xd0] sm:$0xff] %vm2871_vm6, %v3236_v19  ;;  %v3306_v5 = vpop.permute.xlu1 %3305  ;;  %v3349_v42 = vld [vmem:[#allocation10 + $0x1a0] sm:$0xff]  ;;  %v3351_v41 = vpack.c.bf16 %v3326_v35, %v3325_v61 }
 0xdf1   :  { %3298 = vst.msk [vmem:[#allocation10 + $0x170] sm:$0xff] %vm2871_vm6, %v3292_v56  ;;  %v3363_v6 = vpack.c.bf16 %v3349_v42, %v3349_v42  ;;  %v3332_v30 = vld [vmem:[#allocation10 + $0x90] sm:$0xff]  ;;  %v5051_v42 = vld [vmem:[%s7700_s1 + $0x88] sm:$0xf0] }
 0xdf2   :  { %3314 = vst.msk [vmem:[#allocation10 + $0x180] sm:$0xff] %vm2871_vm6, %v3306_v5  ;;  %v5318_v5 = vld [vmem:[%s7700_s1 + $0x38] sm:$0xf] }
 0xdf3   :  { %v3437_v0 = vsel %vm1638_vm9, %v3363_v6, 0 }
 0xdf4   :  { %3465 = vmatpush.bf16.msra.mxu1 %v3437_v0 }
 0xdf7   :  { %v3238_v27 = vpop.permute.xlu0 %3237  ;;  %v3270_v37 = vpop.permute.xlu2 %3269  ;;  %v3336_v17 = vld [vmem:[#allocation10 + $0xd0] sm:$0xff] }
 0xdf8   :  { %3244 = vst.msk [vmem:[#allocation10 + $0xe0] sm:$0xff] %vm2871_vm6, %v3238_v27  ;;  %v3218_v10 = vpop.permute.xlu1 %3217  ;;  %v3356_v22 = vpack.c.bf16 %v3336_v17, %v3335_v18  ;;  %v3346_v58 = vld [vmem:[#allocation10 + $0x170] sm:$0xff]  ;;  %v5054_v27 = vor.u32 %v5318_v5, %v5051_v42  ;;  %v5323_v18 = vld [vmem:[%s7700_s1 + $0x1d4] sm:$0xf0] }
 0xdf9   :  { %3278 = vst.msk [vmem:[#allocation10 + $0x120] sm:$0xff] %vm2871_vm6, %v3270_v37  ;;  %v3347_v11 = vld [vmem:[#allocation10 + $0x180] sm:$0xff]  ;;  %v5065_v17 = vld [vmem:[%s7700_s1 + $0x184] sm:$0xf] }
 0xdfa   :  { %3225 = vst.msk [vmem:[#allocation10 + $0xa0] sm:$0xff] %vm2871_vm6, %v3218_v10  ;;  %v3362_v53 = vpack.c.bf16 %v3348_v12, %v3347_v11  ;;  %v5057_v10 = vld [vmem:[%s7700_s1 + $0xdc] sm:$0xf]  ;;  %v5321_v11 = vld [vmem:[%s7700_s1 + $0x12c] sm:$0xf0] }
 0xdfc   :  { %3466 = vmatpush.bf16.msra.mxu1 %v3362_v53  ;;  %v5058_v53 = vor.u32 %v5321_v11, %v5057_v10 }
 0xdff   :  { %v3256_v8 = vpop.permute.xlu2 %3255  ;;  %v3202_v51 = vpop.permute.xlu0 %3201  ;;  %v3337_v63 = vld [vmem:[#allocation10 + $0xe0] sm:$0xff] }
 0xe00   :  { %3262 = vst.msk [vmem:[#allocation10 + $0x110] sm:$0xff] %vm2871_vm6, %v3256_v8  ;;  %v3200_v32 = vpop.permute.xlu1 %3199  ;;  %v3357_v54 = vpack.c.bf16 %v3338_v29, %v3337_v63  ;;  %v3341_v14 = vld [vmem:[#allocation10 + $0x120] sm:$0xff]  ;;  %v5320_v63 = vld [vmem:[%s7700_s1 + $0xe0] sm:$0xf] }
 0xe01   :  { %3208 = vst.msk [vmem:[#allocation10 + $0x80] sm:$0xff] %vm2871_vm6, %v3202_v51  ;;  %v3333_v28 = vld [vmem:[#allocation10 + $0xa0] sm:$0xff] }
 0xe02   :  { %3207 = vst.msk [vmem:[#allocation10 + $0x70] sm:$0xff] %vm2871_vm6, %v3200_v32  ;;  %3439 = vmatpush.bf16.msra.mxu3 %v3357_v54  ;;  %v3355_v7 = vpack.c.bf16 %v3334_v50, %v3333_v28  ;;  %v5059_v29 = vld [vmem:[%s7700_s1 + $0x130] sm:$0xf0]  ;;  %v5322_v28 = vld [vmem:[%s7700_s1 + $0x188] sm:$0xf] }
 0xe03   :  { %v5062_v54 = vor.u32 %v5320_v63, %v5059_v29 }
 0xe06   :  { %3440 = vmatpush.bf16.msra.mxu3 %v3356_v22  ;;  %v5066_v22 = vor.u32 %v5323_v18, %v5065_v17 }
 0xe07   :  { %v3184_v16 = vpop.permute.xlu0 %3183  ;;  %v3383_v19 = vpop.permute.xlu2 %3382  ;;  %v3340_v6 = vld [vmem:[#allocation10 + $0x110] sm:$0xff] }
 0xe08   :  { %3190 = vst.msk [vmem:[#allocation10 + $0x50] sm:$0xff] %vm2871_vm6, %v3184_v16  ;;  %v3290_v62 = vpop.permute.xlu1 %3289  ;;  %v3331_v3 = vld [vmem:[#allocation10 + $0x80] sm:$0xff]  ;;  %v5067_v16 = vld [vmem:[%s7700_s1 + $0x1d8] sm:$0xf0] }
 0xe09   :  { %3297 = vst.msk [vmem:[#allocation10 + $0x160] sm:$0xff] %vm2871_vm6, %v3290_v62  ;;  %v3354_v31 = vpack.c.bf16 %v3332_v30, %v3331_v3  ;;  %v3330_v33 = vld [vmem:[#allocation10 + $0x70] sm:$0xff]  ;;  %v5070_v50 = vor.u32 %v5322_v28, %v5067_v16  ;;  %v3595_v62 = vld [vmem:[%s7703_s4 + $0x88] sm:$0x7] }
 0xe0a   :  { %3441 = vmatpush.bf16.msra.mxu3 %v3355_v7  ;;  %v3353_v44 = vpack.c.bf16 %v3330_v33, %v3329_v55  ;;  %v3601_v7 = vunpack.c.l.b16 %v3595_v62  ;;  %v5324_v62 = vld [vmem:[%s7700_s1 + $0x9c] sm:$0xf0] }
 0xe0c   :  { %v3603_v3 = vpack.c.b16 %v3601_v7, %v3601_v7 }
 0xe0e   :  { %3442 = vmatpush.bf16.msra.mxu3 %v3354_v31  ;;  %v5327_v31 = vld [vmem:[%s7703_s4 + $0x80] sm:$0xff] }
 0xe0f   :  { %v3274_v9 = vpop.permute.xlu0 %3273  ;;  %v3328_v38 = vld [vmem:[#allocation10 + $0x50] sm:$0xff]  ;;  %v3393_v12 = vpop.permute.xlu2 %3392 }
 0xe10   :  { %3280 = vst.msk [vmem:[#allocation10 + $0x140] sm:$0xff] %vm2871_vm6, %v3274_v9  ;;  %v3288_v59 = vpop.permute.xlu1 %3287  ;;  %v3345_v49 = vld [vmem:[#allocation10 + $0x160] sm:$0xff]  ;;  %v3352_v36 = vpack.c.bf16 %v3328_v38, %v3327_v23 }
 0xe11   :  { %3296 = vst.msk [vmem:[#allocation10 + $0x150] sm:$0xff] %vm2871_vm6, %v3288_v59  ;;  %v3361_v13 = vpack.c.bf16 %v3346_v58, %v3345_v49 }
 0xe12   :  { %3443 = vmatpush.bf16.msra.mxu3 %v3353_v44 }
 0xe13   :  { %3467 = vmatpush.bf16.msra.mxu1 %v3361_v13 }
 0xe16   :  { %3444 = vmatpush.bf16.msra.mxu3 %v3352_v36 }
 0xe17   :  { %v3272_v57 = vpop.permute.xlu0 %3271  ;;  %v3343_v39 = vld [vmem:[#allocation10 + $0x140] sm:$0xff]  ;;  %v3546_v32 = vpop.permute.xlu2 %3545 }
 0xe18   :  { %3279 = vst.msk [vmem:[#allocation10 + $0x130] sm:$0xff] %vm2871_vm6, %v3272_v57  ;;  %v3254_v40 = vpop.permute.xlu1 %3253  ;;  %v3344_v43 = vld [vmem:[#allocation10 + $0x150] sm:$0xff] }
 0xe19   :  { %3261 = vst.msk [vmem:[#allocation10 + $0x100] sm:$0xff] %vm2871_vm6, %v3254_v40  ;;  %v3360_v24 = vpack.c.bf16 %v3344_v43, %v3343_v39 }
 0xe1a   :  { %3445 = vmatpush.bf16.msra.mxu3 %v3351_v41 }
 0xe1b   :  { %3468 = vmatpush.bf16.msra.mxu1 %v3360_v24 }
 0xe1e   :  { %3446 = vmatpush.bf16.msra.mxu3 %v3350_v1 }
 0xe1f   :  { %v3342_v34 = vld [vmem:[#allocation10 + $0x130] sm:$0xff]  ;;  %v3373_v9 = vpop.permute.xlu0 %3372 }
 0xe20   :  { %v3378_v26 = vpop.permute.xlu1 %3377  ;;  %v3359_v2 = vpack.c.bf16 %v3342_v34, %v3341_v14  ;;  %v3339_v56 = vld [vmem:[#allocation10 + $0x100] sm:$0xff] }
 0xe21   :  { %3447 = vmatmul.bf16.vlgmr.msra.gmra.mxu3 %v5050_v60  ;;  %v3358_v0 = vpack.c.bf16 %v3340_v6, %v3339_v56 }
 0xe22   :  { %3469 = vmatpush.bf16.msra.mxu1 %v3359_v2 }
 0xe26   :  { %3470 = vmatpush.bf16.msra.mxu1 %v3358_v0 }
 0xe28   :  { %v3388_v37 = vpop.permute.xlu1 %3387 }
 0xe29   :  { %5071 = vmatmul.msk.bf16.vlgmr.msra.gmra.mxu1 %vm3096_vm8, %v5054_v27 }
 0xe30   :  { %v3548_v8 = vpop.permute.xlu1 %3547 }
 0xe31   :  { %v3561_v51 = vsel %vm1638_vm9, %v3548_v8, 0  ;;  %3452 = vmatmul.bf16.gmra.mxu3 %v5058_v53  ;;  %vm3623_vm9 = vcmask 1042432  }
 0xe32   :  { %3569 = vmatpush.bf16.msra.mxu2 %v3561_v51  ;;  %v3625_v30 = vsel %vm3623_vm9, %v3603_v3, 0 }
 0xe33   :  { %3633 = vmatpush.bf16.msra.mxu0 %v3625_v30  ;;  %v5080_v30 = vld [vmem:[%s7700_s1 + $0xf4] sm:$0xf] }
 0xe36   :  { %3570 = vmatpush.bf16.msra.mxu2 %v3546_v32 }
 0xe37   :  { %3634 = vmatpush.bf16.msra.mxu0 %v5327_v31  ;;  %v5325_v31 = vld [vmem:[%s7700_s1 + $0x144] sm:$0xf0] }
 0xe39   :  { %5072 = vmatmul.msk.bf16.gmra.mxu1 %vm3096_vm8, %v5062_v54 }
 0xe41   :  { %3457 = vmatmul.bf16.gmra.mxu3 %v5066_v22 }
 0xe49   :  { %5073 = vmatmul.msk.bf16.gmra.mxu1 %vm3096_vm8, %v5070_v50  ;;  %v5076_v50 = vld [vmem:[%s7700_s1 + $0x4c] sm:$0xf] }
 0xe4a   :  { %v5077_v7 = vor.u32 %v5324_v62, %v5076_v50 }
 0xe4c   :  { %5086 = vmatmul.msk.bf16.vlgmr.msra.gmra.mxu2 %vm3550_vm0, %v5077_v7 }
 0xea4   :  { %v3448_v33 = vpop.f32.mrf.mxu3 }
 0xea5   :  { %v3449_v59 = vadd.f32 %v3448_v33, %v3373_v9  ;;  %v5081_v33 = vor.u32 %v5325_v31, %v5080_v30  ;;  %v4094_v30 = vld [vmem:[%s7701_s2 + $0x18] sm:$0xff] }
 0xea6   :  { %v3472_v55 = vpop.f32.mrf.mxu1 }
 0xea7   :  { %v3473_v49 = vadd.f32 %v3472_v55, %v3449_v59  ;;  %5087 = vmatmul.msk.bf16.gmra.mxu2 %vm3550_vm0, %v5081_v33  ;;  %v5084_v55 = vld [vmem:[%s7700_s1 + $0x19c] sm:$0xf]  ;;  %v5326_v59 = vld [vmem:[%s7700_s1 + $0x1ec] sm:$0xf0] }
 0xea9   :  { %v3487_v23 = vmax.f32 %v3473_v49, 0.0 }
 0xeac   :  { %v3450_v44 = vpop.f32.mrf.mxu3 }
 0xead   :  { %v3451_v58 = vadd.f32 %v3450_v44, %v3378_v26  ;;  %v3398_v26 = vpop.permute.xlu0 %3397  ;;  %v5085_v44 = vor.u32 %v5326_v59, %v5084_v55 }
 0xeae   :  { %v3474_v13 = vpop.f32.mrf.mxu1 }
 0xeaf   :  { %v3475_v38 = vadd.f32 %v3474_v13, %v3451_v58  ;;  %v5561_v13 = vmov 11  }
 0xeb0   :  { %5488 = vset.pattern.permute.xlu0 %v5561_v13  ;;  %5489 = vset.pattern.permute.xlu1 %v5561_v13 }
 0xeb1   :  { %v3488_v36 = vmax.f32 %v3475_v38, 0.0  ;;  %5490 = vset.pattern.permute.xlu2 %v5561_v13 }
 0xeb3   :  { %v3587_v35 = vpack.c.bf16 %v3488_v36, %v3487_v23 }
 0xeb4   :  { %v3453_v57 = vpop.f32.mrf.mxu3 }
 0xeb5   :  { %5093 = vmatmul.msk.bf16.vlgmr.msra.gmra.mxu0 %vm2871_vm6, %v3587_v35  ;;  %v3454_v39 = vadd.f32 %v3453_v57, %v3383_v19 }
 0xeb6   :  { %v3477_v61 = vpop.f32.mrf.mxu1 }
 0xeb7   :  { %v3478_v40 = vadd.f32 %v3477_v61, %v3454_v39  ;;  %5088 = vmatmul.msk.bf16.gmra.mxu2 %vm3550_vm0, %v5085_v44  ;;  %v5496_v39 = vld [vmem:[%s7701_s2 + $0x10] sm:$0xff] }
 0xeb9   :  { %v3489_v52 = vmax.f32 %v3478_v40, 0.0 }
 0xebc   :  { %v3455_v41 = vpop.f32.mrf.mxu3 }
 0xebd   :  { %v3456_v43 = vadd.f32 %v3455_v41, %v3388_v37 }
 0xebe   :  { %v3479_v24 = vpop.f32.mrf.mxu1 }
 0xebf   :  { %v3480_v25 = vadd.f32 %v3479_v24, %v3456_v43 }
 0xec1   :  { %v3490_v47 = vmax.f32 %v3480_v25, 0.0 }
 0xec3   :  { %v3588_v21 = vpack.c.bf16 %v3490_v47, %v3489_v52 }
 0xec4   :  { %v3458_v1 = vpop.f32.mrf.mxu3 }
 0xec5   :  { %5094 = vmatmul.msk.bf16.gmra.mxu0 %vm2871_vm6, %v3588_v21  ;;  %v3459_v14 = vadd.f32 %v3458_v1, %v3393_v12 }
 0xec6   :  { %v3482_v60 = vpop.f32.mrf.mxu1 }
 0xec7   :  { %v3483_v34 = vadd.f32 %v3482_v60, %v3459_v14 }
 0xec9   :  { %v3491_v42 = vmax.f32 %v3483_v34, 0.0 }
 0xecc   :  { %v3460_v2 = vpop.f32.mrf.mxu3 }
 0xecd   :  { %v3461_v56 = vadd.f32 %v3460_v2, %v3398_v26 }
 0xece   :  { %v3484_v5 = vpop.f32.mrf.mxu1 }
 0xecf   :  { %v3485_v19 = vadd.f32 %v3484_v5, %v3461_v56 }
 0xed1   :  { %v3492_v6 = vmax.f32 %v3485_v19, 0.0 }
 0xed3   :  { %v3589_v0 = vpack.c.bf16 %v3492_v6, %v3491_v42 }
 0xed5   :  { %5095 = vmatmul.msk.bf16.gmra.mxu0 %vm2871_vm6, %v3589_v0 }
 0xf32   :  { %v3636_v27 = vpop.f32.mrf.mxu0 }
 0xf33   :  { %3672 = vrot.lane.b32.xlu2 %v3636_v27, %s5559_s24 }
 0xf3a   :  { %v3638_v37 = vpop.f32.mrf.mxu0 }
 0xf3b   :  { %3674 = vrot.lane.b32.xlu0 %v3638_v37, %s5559_s24 }
 0xf42   :  { %v3641_v10 = vpop.f32.mrf.mxu0 }
 0xf43   :  { %3676 = vrot.lane.b32.xlu0 %v3641_v10, %s5559_s24 }
 0xf4a   :  { %v3643_v11 = vpop.f32.mrf.mxu0 }
 0xf4b   :  { %3678 = vrot.lane.b32.xlu1 %v3643_v11, %s5559_s24 }
 0xf52   :  { %v3646_v12 = vpop.f32.mrf.mxu0 }
 0xf53   :  { %3680 = vrot.lane.b32.xlu1 %v3646_v12, %s5559_s24 }
 0xf5a   :  { %v3648_v53 = vpop.f32.mrf.mxu0 }
 0xf5b   :  { %3682 = vrot.lane.b32.xlu2 %v3648_v53, %s5559_s24 }
 0xf8d   :  { %v3673_v8 = vpop.permute.xlu2 %3672 }
 0xf8e   :  { %3691 = vst.msk [vmem:[#allocation9] sm:$0xff] %vm3690_vm12, %v3673_v8 }
 0xf95   :  { %v7381_v51 = vld [vmem:[#allocation9] sm:$0xff] }
 0xf96   :  { %3866 = vrot.lane.b32.xlu0 %v7381_v51, %s5554_s13  ;;  %3758 = vrot.lane.b32.xlu2 %v7381_v51, %s5530_s28  ;;  %3704 = vst.msk [vmem:[#allocation10] sm:$0xff] %vm3703_vm14, %v7381_v51 }
 0xf9e   :  { %3938 = vrot.lane.b32.xlu0 %v7381_v51, %s5547_s9  ;;  %3722 = vrot.lane.b32.xlu2 %v7381_v51, %s5525_s23 }
 0xfa6   :  { %3830 = vrot.lane.b32.xlu0 %v7381_v51, %s5555_s26 }
 0xfad   :  { %v3675_v15 = vpop.permute.xlu0 %3674 }
 0xfae   :  { %3692 = vst.msk [vmem:[#allocation9 + $0x8] sm:$0xff] %vm3690_vm12, %v3675_v15 }
 0xfb5   :  { %v7396_v63 = vld [vmem:[#allocation9 + $0x8] sm:$0xff]  ;;  %v3677_v29 = vpop.permute.xlu0 %3676  ;;  %v3683_v32 = vpop.permute.xlu2 %3682 }
 0xfb6   :  { %3693 = vst.msk [vmem:[#allocation9 + $0x10] sm:$0xff] %vm3690_vm12, %v3677_v29  ;;  %3760 = vrot.lane.b32.xlu0 %v7396_v63, %s5530_s28  ;;  %3868 = vrot.lane.b32.xlu1 %v7396_v63, %s5554_s13  ;;  %v4095_v29 = vld [vmem:[%s7701_s2 + $0x20] sm:$0xff] }
 0xfb7   :  { %3696 = vst.msk [vmem:[#allocation9 + $0x28] sm:$0xff] %vm3690_vm12, %v3683_v32 }
 0xfb8   :  { %3705 = vst.msk [vmem:[#allocation10 + $0x10] sm:$0xff] %vm3703_vm14, %v7396_v63 }
 0xfbd   :  { %v3699_v54 = vld [vmem:[#allocation9 + $0x10] sm:$0xff]  ;;  %v3679_v17 = vpop.permute.xlu1 %3678 }
 0xfbe   :  { %v7406_v18 = vld [vmem:[#allocation9 + $0x28] sm:$0xff]  ;;  %3694 = vst.msk [vmem:[#allocation9 + $0x18] sm:$0xff] %vm3690_vm12, %v3679_v17  ;;  %3724 = vrot.lane.b32.xlu0 %v7396_v63, %s5525_s23  ;;  %3940 = vrot.lane.b32.xlu1 %v7396_v63, %s5547_s9 }
 0xfbf   :  { %3942 = vrot.lane.b32.xlu2 %v3699_v54, %s5547_s9  ;;  %3706 = vst.msk [vmem:[#allocation10 + $0x20] sm:$0xff] %vm3703_vm14, %v3699_v54 }
 0xfc0   :  { %3709 = vst.msk [vmem:[#allocation10 + $0x50] sm:$0xff] %vm3703_vm14, %v7406_v18 }
 0xfc5   :  { %v7417_v22 = vld [vmem:[#allocation9 + $0x18] sm:$0xff]  ;;  %v3681_v28 = vpop.permute.xlu1 %3680 }
 0xfc6   :  { %3695 = vst.msk [vmem:[#allocation9 + $0x20] sm:$0xff] %vm3690_vm12, %v3681_v28  ;;  %3762 = vrot.lane.b32.xlu0 %v3699_v54, %s5530_s28  ;;  %3832 = vrot.lane.b32.xlu1 %v7396_v63, %s5555_s26  ;;  %v4012_v44 = vld [vmem:[#allocation10 + $0x20] sm:$0xff] }
 0xfc7   :  { %3834 = vrot.lane.b32.xlu2 %v3699_v54, %s5555_s26  ;;  %3707 = vst.msk [vmem:[#allocation10 + $0x30] sm:$0xff] %vm3703_vm14, %v7417_v22 }
 0xfcd   :  { %v7426_v16 = vld [vmem:[#allocation9 + $0x20] sm:$0xff] }
 0xfce   :  { %3902 = vrot.lane.b32.xlu0 %v7381_v51, %s5548_s10  ;;  %3904 = vrot.lane.b32.xlu1 %v7396_v63, %s5548_s10  ;;  %3708 = vst.msk [vmem:[#allocation10 + $0x40] sm:$0xff] %vm3703_vm14, %v7426_v16  ;;  %v4013_v55 = vld [vmem:[#allocation10 + $0x30] sm:$0xff] }
 0xfcf   :  { %3906 = vrot.lane.b32.xlu2 %v3699_v54, %s5548_s10  ;;  %v4065_v13 = vpack.c.bf16 %v4013_v55, %v4012_v44 }
 0xfd6   :  { %3726 = vrot.lane.b32.xlu0 %v3699_v54, %s5525_s23  ;;  %3764 = vrot.lane.b32.xlu1 %v7417_v22, %s5530_s28 }
 0xfd7   :  { %3982 = vrot.lane.b32.xlu2 %v7426_v16, %s5545_s8 }
 0xfde   :  { %3944 = vrot.lane.b32.xlu0 %v7417_v22, %s5547_s9  ;;  %3728 = vrot.lane.b32.xlu1 %v7417_v22, %s5525_s23 }
 0xfdf   :  { %3732 = vrot.lane.b32.xlu2 %v7406_v18, %s5525_s23 }
 0xfe6   :  { %3836 = vrot.lane.b32.xlu0 %v7417_v22, %s5555_s26  ;;  %3730 = vrot.lane.b32.xlu1 %v7426_v16, %s5525_s23 }
 0xfe7   :  { %3800 = vrot.lane.b32.xlu2 %v7417_v22, %s5560_s3 }
 0xfee   :  { %3908 = vrot.lane.b32.xlu0 %v7417_v22, %s5548_s10  ;;  %3798 = vrot.lane.b32.xlu1 %v3699_v54, %s5560_s3 }
 0xfef   :  { %3978 = vrot.lane.b32.xlu2 %v3699_v54, %s5545_s8 }
 0xff0   :  { %v3759_v3 = vpop.permute.xlu2 %3758 }
 0xff1   :  { %3776 = vst.msk [vmem:[#allocation10 + $0xc0] sm:$0xff] %vm3703_vm14, %v3759_v3  ;;  %v4014_v3 = vld [vmem:[#allocation10 + $0x40] sm:$0xff] }
 0xff6   :  { %3874 = vrot.lane.b32.xlu0 %v7426_v16, %s5554_s13  ;;  %3946 = vrot.lane.b32.xlu1 %v7426_v16, %s5547_s9 }
 0xff7   :  { %3796 = vrot.lane.b32.xlu2 %v7396_v63, %s5560_s3 }
 0xff8   :  { %v3723_v9 = vpop.permute.xlu2 %3722  ;;  %v4022_v0 = vld [vmem:[#allocation10 + $0xc0] sm:$0xff] }
 0xff9   :  { %3740 = vst.msk [vmem:[#allocation10 + $0x60] sm:$0xff] %vm3703_vm14, %v3723_v9 }
 0xffe   :  { %3980 = vrot.lane.b32.xlu0 %v7417_v22, %s5545_s8  ;;  %3838 = vrot.lane.b32.xlu1 %v7426_v16, %s5555_s26 }
 0xfff   :  { %3948 = vrot.lane.b32.xlu2 %v7406_v18, %s5547_s9 }
0x1000   :  { %v4016_v62 = vld [vmem:[#allocation10 + $0x60] sm:$0xff] }
0x1006   :  { %3870 = vrot.lane.b32.xlu0 %v3699_v54, %s5554_s13  ;;  %3910 = vrot.lane.b32.xlu1 %v7426_v16, %s5548_s10  ;;  %v5562_v54 = vmov 10  }
0x1007   :  { %3840 = vrot.lane.b32.xlu2 %v7406_v18, %s5555_s26 }
0x1008   :  { %v3867_v49 = vpop.permute.xlu0 %3866 }
0x1009   :  { %3884 = vst.msk [vmem:[#allocation10 + $0x1e0] sm:$0xff] %vm3703_vm14, %v3867_v49 }
0x100e   :  { %3984 = vrot.lane.b32.xlu0 %v7406_v18, %s5545_s8  ;;  %3802 = vrot.lane.b32.xlu1 %v7426_v16, %s5560_s3 }
0x100f   :  { %3912 = vrot.lane.b32.xlu2 %v7406_v18, %s5548_s10 }
0x1010   :  { %v3939_v58 = vpop.permute.xlu0 %3938  ;;  %v4040_v24 = vld [vmem:[#allocation10 + $0x1e0] sm:$0xff] }
0x1011   :  { %3956 = vst.msk [vmem:[#allocation10 + $0x2a0] sm:$0xff] %vm3703_vm14, %v3939_v58 }
0x1016   :  { %3976 = vrot.lane.b32.xlu0 %v7396_v63, %s5545_s8  ;;  %3794 = vrot.lane.b32.xlu1 %v7381_v51, %s5560_s3 }
0x1017   :  { %3804 = vrot.lane.b32.xlu2 %v7406_v18, %s5560_s3 }
0x1018   :  { %v3831_v38 = vpop.permute.xlu0 %3830 }
0x1019   :  { %3848 = vst.msk [vmem:[#allocation10 + $0x180] sm:$0xff] %vm3703_vm14, %v3831_v38  ;;  %v3943_v23 = vpop.permute.xlu2 %3942 }
0x101a   :  { %3958 = vst.msk [vmem:[#allocation10 + $0x2c0] sm:$0xff] %vm3703_vm14, %v3943_v23  ;;  %v4011_v23 = vld [vmem:[#allocation10 + $0x10] sm:$0xff] }
0x101e   :  { %3872 = vrot.lane.b32.xlu1 %v7417_v22, %s5554_s13  ;;  %3505 = vperm.xlu0 %5488, %v7308_v20  }
0x101f   :  { %3974 = vrot.lane.b32.xlu2 %v7381_v51, %s5545_s8  ;;  %s4392_s8 = sshll.u32 %s7706_s7, 4  ;;  %s4393_s8 = int_to_ptr.hbm [resolvable:$true] %s4392_s8 }
0x1021   :  { %v3835_v36 = vpop.permute.xlu2 %3834 }
0x1022   :  { %3850 = vst.msk [vmem:[#allocation10 + $0x1a0] sm:$0xff] %vm3703_vm14, %v3835_v36 }
0x1026   :  { %3876 = vrot.lane.b32.xlu1 %v7406_v18, %s5554_s13  ;;  %3525 = vperm.xlu0 %5488, %v7316_v45  }
0x1027   :  { %3768 = vrot.lane.b32.xlu2 %v7406_v18, %s5530_s28 }
0x1028   :  { %v3761_v35 = vpop.permute.xlu0 %3760  ;;  %v3869_v57 = vpop.permute.xlu1 %3868 }
0x1029   :  { %3777 = vst.msk [vmem:[#allocation10 + $0xd0] sm:$0xff] %vm3703_vm14, %v3761_v35  ;;  %v3907_v61 = vpop.permute.xlu2 %3906  ;;  %v5101_v35 = vld [vmem:[%s7700_s1 + $0x3c] sm:$0xf] }
0x102a   :  { %3922 = vst.msk [vmem:[#allocation10 + $0x260] sm:$0xff] %vm3703_vm14, %v3907_v61  ;;  %v4010_v61 = vld [vmem:[#allocation10] sm:$0xff] }
0x102b   :  { %3885 = vst.msk [vmem:[#allocation10 + $0x1f0] sm:$0xff] %vm3703_vm14, %v3869_v57  ;;  %v5330_v57 = vld [vmem:[%s7700_s1 + $0x8c] sm:$0xf0] }
0x102e   :  { %3766 = vrot.lane.b32.xlu1 %v7426_v16, %s5530_s28  ;;  %5493 = vset.pattern.permute.xlu0 %v5562_v54 }
0x102f   :  { %3513 = vperm.xlu2 %5490, %v5496_v39   ;;  %v4054_v39 = vld [vmem:[#allocation10 + $0x2c0] sm:$0xff] }
0x1030   :  { %v3725_v40 = vpop.permute.xlu0 %3724  ;;  %v3941_v41 = vpop.permute.xlu1 %3940  ;;  %v4023_v6 = vld [vmem:[#allocation10 + $0xd0] sm:$0xff] }
0x1031   :  { %3741 = vst.msk [vmem:[#allocation10 + $0x70] sm:$0xff] %vm3703_vm14, %v3725_v40  ;;  %v3983_v43 = vpop.permute.xlu2 %3982  ;;  %v4070_v27 = vpack.c.bf16 %v4023_v6, %v4022_v0  ;;  %v4064_v40 = vpack.c.bf16 %v4011_v23, %v4010_v61 }
0x1032   :  { %3996 = vst.msk [vmem:[#allocation10 + $0x340] sm:$0xff] %vm3703_vm14, %v3983_v43  ;;  %v4041_v52 = vld [vmem:[#allocation10 + $0x1f0] sm:$0xff] }
0x1033   :  { %3957 = vst.msk [vmem:[#allocation10 + $0x2b0] sm:$0xff] %vm3703_vm14, %v3941_v41  ;;  %v4079_v25 = vpack.c.bf16 %v4041_v52, %v4040_v24  ;;  %v5102_v52 = vor.u32 %v5330_v57, %v5101_v35 }
0x1035   :  { %4218 = vmatpush.bf16.msrb.mxu1 %v4079_v25 }
0x1036   :  { %3509 = vperm.xlu1 %5489, %v7215_v4  }
0x1037   :  { %3521 = vperm.xlu2 %5490, %v7271_v46  }
0x1038   :  { %v3763_v47 = vpop.permute.xlu0 %3762  ;;  %v3833_v21 = vpop.permute.xlu1 %3832  ;;  %v4017_v16 = vld [vmem:[#allocation10 + $0x70] sm:$0xff] }
0x1039   :  { %3778 = vst.msk [vmem:[#allocation10 + $0xe0] sm:$0xff] %vm3703_vm14, %v3763_v47  ;;  %v3733_v1 = vpop.permute.xlu2 %3732  ;;  %v4067_v7 = vpack.c.bf16 %v4017_v16, %v4016_v62 }
0x103a   :  { %3745 = vst.msk [vmem:[#allocation10 + $0xb0] sm:$0xff] %vm3703_vm14, %v3733_v1  ;;  %v4053_v25 = vld [vmem:[#allocation10 + $0x2b0] sm:$0xff] }
0x103b   :  { %3849 = vst.msk [vmem:[#allocation10 + $0x190] sm:$0xff] %vm3703_vm14, %v3833_v21 }
0x103e   :  { %3517 = vperm.xlu1 %5489, %v7276_v48  }
0x103f   :  { %5492 = vset.pattern.permute.xlu2 %v5562_v54 }
0x1040   :  { %v3903_v60 = vpop.permute.xlu0 %3902  ;;  %v3905_v14 = vpop.permute.xlu1 %3904  ;;  %v4024_v5 = vld [vmem:[#allocation10 + $0xe0] sm:$0xff]  ;;  %4124 = vperm.xlu2 %5492, %v7316_v45   ;;  %v4015_v45 = vld [vmem:[#allocation10 + $0x50] sm:$0xff] }
0x1041   :  { %3920 = vst.msk [vmem:[#allocation10 + $0x240] sm:$0xff] %vm3703_vm14, %v3903_v60  ;;  %v3801_v34 = vpop.permute.xlu2 %3800  ;;  %v4021_v15 = vld [vmem:[#allocation10 + $0xb0] sm:$0xff]  ;;  %v4066_v31 = vpack.c.bf16 %v4015_v45, %v4014_v3  ;;  %v4052_v60 = vld [vmem:[#allocation10 + $0x2a0] sm:$0xff] }
0x1042   :  { %3815 = vst.msk [vmem:[#allocation10 + $0x150] sm:$0xff] %vm3703_vm14, %v3801_v34  ;;  %v4085_v34 = vpack.c.bf16 %v4053_v25, %v4052_v60  ;;  %v5111_v60 = vld [vmem:[%s7700_s1 + $0x98] sm:$0xf0] }
0x1043   :  { %3921 = vst.msk [vmem:[#allocation10 + $0x250] sm:$0xff] %vm3703_vm14, %v3905_v14 }
0x1046   :  { %5491 = vset.pattern.permute.xlu1 %v5562_v54 }
0x1047   :  { %4119 = vperm.xlu1 %5491, %v4095_v29  }
0x1048   :  { %v3727_v4 = vpop.permute.xlu0 %3726  ;;  %v3765_v46 = vpop.permute.xlu1 %3764  ;;  %4099 = vperm.xlu2 %5492, %v7308_v20   ;;  %v4092_v20 = vld [vmem:[%s7701_s2 + $0x8] sm:$0xff] }
0x1049   :  { %3742 = vst.msk [vmem:[#allocation10 + $0x80] sm:$0xff] %vm3703_vm14, %v3727_v4  ;;  %v3979_v26 = vpop.permute.xlu2 %3978  ;;  %v4031_v45 = vld [vmem:[#allocation10 + $0x150] sm:$0xff] }
0x104a   :  { %3994 = vst.msk [vmem:[#allocation10 + $0x320] sm:$0xff] %vm3703_vm14, %v3979_v26  ;;  %v4036_v26 = vld [vmem:[#allocation10 + $0x1a0] sm:$0xff]  ;;  %v4047_v54 = vld [vmem:[#allocation10 + $0x250] sm:$0xff] }
0x104b   :  { %3779 = vst.msk [vmem:[#allocation10 + $0xf0] sm:$0xff] %vm3703_vm14, %v3765_v46  ;;  %v4093_v46 = vld [vmem:[%s7701_s2 + $0x10] sm:$0xff] }
0x104c   :  { %4109 = vperm.xlu0 %5493, %v4093_v46   ;;  %v5103_v46 = vld [vmem:[%s7700_s1 + $0x90] sm:$0xf0] }
0x104f   :  { %4114 = vperm.xlu1 %5491, %v4094_v30  }
0x1050   :  { %v3945_v2 = vpop.permute.xlu0 %3944  ;;  %v3729_v48 = vpop.permute.xlu1 %3728  ;;  %v4018_v17 = vld [vmem:[#allocation10 + $0x80] sm:$0xff] }
0x1051   :  { %3959 = vst.msk [vmem:[#allocation10 + $0x2d0] sm:$0xff] %vm3703_vm14, %v3945_v2  ;;  %v3797_v56 = vpop.permute.xlu2 %3796  ;;  %v4060_v3 = vld [vmem:[#allocation10 + $0x320] sm:$0xff] }
0x1052   :  { %3813 = vst.msk [vmem:[#allocation10 + $0x130] sm:$0xff] %vm3703_vm14, %v3797_v56  ;;  %v4025_v42 = vld [vmem:[#allocation10 + $0xf0] sm:$0xff] }
0x1053   :  { %3743 = vst.msk [vmem:[#allocation10 + $0x90] sm:$0xff] %vm3703_vm14, %v3729_v48  ;;  %v4071_v19 = vpack.c.bf16 %v4025_v42, %v4024_v5  ;;  %v4035_v5 = vld [vmem:[#allocation10 + $0x190] sm:$0xff] }
0x1055   :  { %4194 = vmatpush.bf16.msrb.mxu3 %v4071_v19  ;;  %v4034_v19 = vld [vmem:[#allocation10 + $0x180] sm:$0xff] }
0x1057   :  { %4104 = vperm.xlu1 %5491, %v4092_v20   ;;  %v5338_v20 = vld [vmem:[%s7700_s1 + $0x1dc] sm:$0xf0] }
0x1058   :  { %v3837_v37 = vpop.permute.xlu0 %3836  ;;  %v3731_v10 = vpop.permute.xlu1 %3730  ;;  %v4055_v36 = vld [vmem:[#allocation10 + $0x2d0] sm:$0xff] }
0x1059   :  { %4195 = vmatpush.bf16.msrb.mxu3 %v4070_v27  ;;  %3851 = vst.msk [vmem:[#allocation10 + $0x1b0] sm:$0xff] %vm3703_vm14, %v3837_v37  ;;  %v3949_v11 = vpop.permute.xlu2 %3948  ;;  %v4086_v41 = vpack.c.bf16 %v4055_v36, %v4054_v39  ;;  %v4076_v27 = vpack.c.bf16 %v4035_v5, %v4034_v19 }
0x105a   :  { %3961 = vst.msk [vmem:[#allocation10 + $0x2f0] sm:$0xff] %vm3703_vm14, %v3949_v11  ;;  %v4019_v32 = vld [vmem:[#allocation10 + $0x90] sm:$0xff] }
0x105b   :  { %3744 = vst.msk [vmem:[#allocation10 + $0xa0] sm:$0xff] %vm3703_vm14, %v3731_v10  ;;  %v4068_v18 = vpack.c.bf16 %v4019_v32, %v4018_v17  ;;  %v5117_v11 = vld [vmem:[%s7700_s1 + $0xe4] sm:$0xf]  ;;  %v4046_v32 = vld [vmem:[#allocation10 + $0x240] sm:$0xff] }
0x105c   :  { %v4082_v62 = vpack.c.bf16 %v4047_v54, %v4046_v32 }
0x1060   :  { %v3909_v12 = vpop.permute.xlu0 %3908  ;;  %v3799_v53 = vpop.permute.xlu1 %3798  ;;  %v4037_v4 = vld [vmem:[#allocation10 + $0x1b0] sm:$0xff] }
0x1061   :  { %3923 = vst.msk [vmem:[#allocation10 + $0x270] sm:$0xff] %vm3703_vm14, %v3909_v12  ;;  %v3841_v8 = vpop.permute.xlu2 %3840  ;;  %v4057_v58 = vld [vmem:[#allocation10 + $0x2f0] sm:$0xff]  ;;  %v4077_v2 = vpack.c.bf16 %v4037_v4, %v4036_v26  ;;  %v5334_v12 = vld [vmem:[%s7700_s1 + $0x134] sm:$0xf0] }
0x1062   :  { %3853 = vst.msk [vmem:[#allocation10 + $0x1d0] sm:$0xff] %vm3703_vm14, %v3841_v8  ;;  %v4020_v51 = vld [vmem:[#allocation10 + $0xa0] sm:$0xff]  ;;  %v5118_v29 = vor.u32 %v5334_v12, %v5117_v11  ;;  %v5328_v4 = vld [vmem:[%s7700_s1 + $0x40] sm:$0xf]  ;;  %v5127_v12 = vld [vmem:[%s7700_s1 + $0x140] sm:$0xf0] }
0x1063   :  { %3814 = vst.msk [vmem:[#allocation10 + $0x140] sm:$0xff] %vm3703_vm14, %v3799_v53  ;;  %v4069_v63 = vpack.c.bf16 %v4021_v15, %v4020_v51  ;;  %v4048_v53 = vld [vmem:[#allocation10 + $0x260] sm:$0xff]  ;;  %v5106_v19 = vor.u32 %v5328_v4, %v5103_v46 }
0x1064   :  { %v4062_v51 = vld [vmem:[#allocation10 + $0x340] sm:$0xff] }
0x1065   :  { %4196 = vmatpush.bf16.msrb.mxu3 %v4069_v63  ;;  %v5333_v11 = vld [vmem:[%s7700_s1 + $0xf0] sm:$0xf] }
0x1066   :  { %v5130_v32 = vor.u32 %v5333_v11, %v5127_v12 }
0x1068   :  { %v3875_v22 = vpop.permute.xlu0 %3874  ;;  %v3947_v28 = vpop.permute.xlu1 %3946  ;;  %v4049_v10 = vld [vmem:[#allocation10 + $0x270] sm:$0xff] }
0x1069   :  { %4197 = vmatpush.bf16.msrb.mxu3 %v4068_v18  ;;  %v3913_v50 = vpop.permute.xlu2 %3912  ;;  %3888 = vst.msk [vmem:[#allocation10 + $0x220] sm:$0xff] %vm3703_vm14, %v3875_v22  ;;  %v4039_v1 = vld [vmem:[#allocation10 + $0x1d0] sm:$0xff]  ;;  %v4083_v8 = vpack.c.bf16 %v4049_v10, %v4048_v53 }
0x106a   :  { %3925 = vst.msk [vmem:[#allocation10 + $0x290] sm:$0xff] %vm3703_vm14, %v3913_v50 }
0x106b   :  { %3960 = vst.msk [vmem:[#allocation10 + $0x2e0] sm:$0xff] %vm3703_vm14, %v3947_v28 }
0x106d   :  { %4198 = vmatpush.bf16.msrb.mxu3 %v4067_v7  ;;  %v4030_v7 = vld [vmem:[#allocation10 + $0x140] sm:$0xff] }
0x1070   :  { %v3981_v33 = vpop.permute.xlu0 %3980  ;;  %v3839_v9 = vpop.permute.xlu1 %3838  ;;  %v4044_v61 = vld [vmem:[#allocation10 + $0x220] sm:$0xff] }
0x1071   :  { %4199 = vmatpush.bf16.msrb.mxu3 %v4066_v31  ;;  %v3805_v59 = vpop.permute.xlu2 %3804  ;;  %3995 = vst.msk [vmem:[#allocation10 + $0x330] sm:$0xff] %vm3703_vm14, %v3981_v33  ;;  %v4051_v0 = vld [vmem:[#allocation10 + $0x290] sm:$0xff]  ;;  %v4074_v31 = vpack.c.bf16 %v4031_v45, %v4030_v7  ;;  %v5337_v7 = vld [vmem:[%s7700_s1 + $0x198] sm:$0xf] }
0x1072   :  { %3817 = vst.msk [vmem:[#allocation10 + $0x170] sm:$0xff] %vm3703_vm14, %v3805_v59  ;;  %v4056_v49 = vld [vmem:[#allocation10 + $0x2e0] sm:$0xff]  ;;  %v3572_v59 = vpop.f32.mrf.mxu2 }
0x1073   :  { %3852 = vst.msk [vmem:[#allocation10 + $0x1c0] sm:$0xff] %vm3703_vm14, %v3839_v9  ;;  %v4087_v38 = vpack.c.bf16 %v4057_v58, %v4056_v49  ;;  %v4029_v49 = vld [vmem:[#allocation10 + $0x130] sm:$0xff] }
0x1075   :  { %4200 = vmatpush.bf16.msrb.mxu3 %v4065_v13  ;;  %4242 = vmatpush.bf16.msrb.mxu2 %v4087_v38  ;;  %v5133_v38 = vld [vmem:[%s7700_s1 + $0x18c] sm:$0xf] }
0x1076   :  { %v5134_v36 = vor.u32 %v5338_v20, %v5133_v38 }
0x1078   :  { %v3871_v43 = vpop.permute.xlu0 %3870  ;;  %v3911_v24 = vpop.permute.xlu1 %3910  ;;  %v4061_v16 = vld [vmem:[#allocation10 + $0x330] sm:$0xff] }
0x1079   :  { %4201 = vmatpush.bf16.msrb.mxu3 %v4064_v40  ;;  %4243 = vmatpush.bf16.msrb.mxu2 %v4086_v41  ;;  %v3975_v47 = vpop.permute.xlu2 %3974  ;;  %3886 = vst.msk [vmem:[#allocation10 + $0x200] sm:$0xff] %vm3703_vm14, %v3871_v43  ;;  %v4033_v28 = vld [vmem:[#allocation10 + $0x170] sm:$0xff]  ;;  %v4089_v30 = vpack.c.bf16 %v4061_v16, %v4060_v3  ;;  %v5339_v16 = vld [vmem:[%s7700_s1 + $0x1e4] sm:$0xf0]  ;;  %v5143_v3 = vld [vmem:[%s7700_s1 + $0x1e8] sm:$0xf0] }
0x107a   :  { %3992 = vst.msk [vmem:[#allocation10 + $0x300] sm:$0xff] %vm3703_vm14, %v3975_v47  ;;  %v4038_v21 = vld [vmem:[#allocation10 + $0x1c0] sm:$0xff]  ;;  %v3574_v35 = vpop.f32.mrf.mxu2  ;;  %v5109_v43 = vld [vmem:[%s7700_s1 + $0x44] sm:$0xf] }
0x107b   :  { %3924 = vst.msk [vmem:[#allocation10 + $0x280] sm:$0xff] %vm3703_vm14, %v3911_v24  ;;  %v4078_v14 = vpack.c.bf16 %v4039_v1, %v4038_v21  ;;  %v5331_v24 = vld [vmem:[%s7700_s1 + $0x94] sm:$0xf0]  ;;  %v5329_v1 = vld [vmem:[%s7700_s1 + $0x48] sm:$0xf] }
0x107c   :  { %4202 = vmatmul.bf16.vlgmr.msrb.gmra.mxu3 %v5102_v52 }
0x107d   :  { %4219 = vmatpush.bf16.msrb.mxu1 %v4078_v14  ;;  %4244 = vmatpush.bf16.msrb.mxu2 %v4085_v34  ;;  %v5110_v14 = vor.u32 %v5331_v24, %v5109_v43 }
0x1080   :  { %v3985_v48 = vpop.permute.xlu0 %3984  ;;  %v3803_v56 = vpop.permute.xlu1 %3802  ;;  %v4042_v25 = vld [vmem:[#allocation10 + $0x200] sm:$0xff] }
0x1081   :  { %4220 = vmatpush.bf16.msrb.mxu1 %v4077_v2  ;;  %v3769_v42 = vpop.permute.xlu2 %3768  ;;  %3997 = vst.msk [vmem:[#allocation10 + $0x350] sm:$0xff] %vm3703_vm14, %v3985_v48  ;;  %v4058_v9 = vld [vmem:[#allocation10 + $0x300] sm:$0xff]  ;;  %v5114_v2 = vor.u32 %v5329_v1, %v5111_v60 }
0x1082   :  { %3781 = vst.msk [vmem:[#allocation10 + $0x110] sm:$0xff] %vm3703_vm14, %v3769_v42  ;;  %v4050_v6 = vld [vmem:[#allocation10 + $0x280] sm:$0xff]  ;;  %v3577_v47 = vpop.f32.mrf.mxu2 }
0x1083   :  { %3816 = vst.msk [vmem:[#allocation10 + $0x160] sm:$0xff] %vm3703_vm14, %v3803_v56  ;;  %v4084_v37 = vpack.c.bf16 %v4051_v0, %v4050_v6 }
0x1085   :  { %4221 = vmatpush.bf16.msrb.mxu1 %v4076_v27  ;;  %4245 = vmatpush.bf16.msrb.mxu2 %v4084_v37  ;;  %v5125_v27 = vld [vmem:[%s7700_s1 + $0xec] sm:$0xf]  ;;  %v5335_v37 = vld [vmem:[%s7700_s1 + $0x13c] sm:$0xf0] }
0x1088   :  { %v3977_v15 = vpop.permute.xlu0 %3976  ;;  %v3795_v63 = vpop.permute.xlu1 %3794  ;;  %v4063_v17 = vld [vmem:[#allocation10 + $0x350] sm:$0xff] }
0x1089   :  { %4246 = vmatpush.bf16.msrb.mxu2 %v4083_v8  ;;  %3993 = vst.msk [vmem:[#allocation10 + $0x310] sm:$0xff] %vm3703_vm14, %v3977_v15  ;;  %v4090_v18 = vpack.c.bf16 %v4063_v17, %v4062_v51  ;;  %v4027_v56 = vld [vmem:[#allocation10 + $0x110] sm:$0xff]  ;;  %v3514_v53 = vpop.permute.xlu2 %3513  ;;  %v5126_v8 = vor.u32 %v5335_v37, %v5125_v27 }
0x108a   :  { %3812 = vst.msk [vmem:[#allocation10 + $0x120] sm:$0xff] %vm3703_vm14, %v3795_v63  ;;  %v4032_v22 = vld [vmem:[#allocation10 + $0x160] sm:$0xff]  ;;  %v3579_v0 = vpop.f32.mrf.mxu2  ;;  %v3578_v51 = vadd.f32 %v3577_v47, %v3514_v53  ;;  %v5332_v63 = vld [vmem:[%s7700_s1 + $0xe8] sm:$0xf] }
0x108b   :  { %v4075_v50 = vpack.c.bf16 %v4033_v28, %v4032_v22  ;;  %4271 = vmatpush.bf16.msra.mxu3 %v4090_v18  ;;  %v5141_v28 = vld [vmem:[%s7700_s1 + $0x194] sm:$0xf] }
0x108c   :  { %4207 = vmatmul.bf16.gmra.mxu3 %v5118_v29  ;;  %v5119_v29 = vld [vmem:[%s7700_s1 + $0x138] sm:$0xf0] }
0x108d   :  { %4222 = vmatpush.bf16.msrb.mxu1 %v4075_v50  ;;  %4247 = vmatpush.bf16.msrb.mxu2 %v4082_v62  ;;  %v5122_v17 = vor.u32 %v5332_v63, %v5119_v29 }
0x108f   :  { %4272 = vmatpush.bf16.msra.mxu3 %v4089_v30  ;;  %v5142_v30 = vor.u32 %v5339_v16, %v5141_v28 }
0x1090   :  { %v3873_v33 = vpop.permute.xlu1 %3872  ;;  %v4059_v55 = vld [vmem:[#allocation10 + $0x310] sm:$0xff]  ;;  %v3506_v52 = vpop.permute.xlu0 %3505 }
0x1091   :  { %4223 = vmatpush.bf16.msrb.mxu1 %v4074_v31  ;;  %3887 = vst.msk [vmem:[#allocation10 + $0x210] sm:$0xff] %vm3703_vm14, %v3873_v33  ;;  %v4028_v44 = vld [vmem:[#allocation10 + $0x120] sm:$0xff]  ;;  %v4088_v58 = vpack.c.bf16 %v4059_v55, %v4058_v9  ;;  %v3573_v34 = vadd.f32 %v3572_v59, %v3506_v52  ;;  %v3522_v50 = vpop.permute.xlu2 %3521  ;;  %v5135_v9 = vld [vmem:[%s7700_s1 + $0x1e0] sm:$0xf0]  ;;  %v5146_v55 = vor.u32 %v5337_v7, %v5143_v3 }
0x1092   :  { %v4073_v13 = vpack.c.bf16 %v4029_v49, %v4028_v44  ;;  %v3582_v54 = vpop.f32.mrf.mxu2  ;;  %v5336_v33 = vld [vmem:[%s7700_s1 + $0x190] sm:$0xf] }
0x1093   :  { %4273 = vmatpush.bf16.msra.mxu3 %v4088_v58  ;;  %v3583_v45 = vadd.f32 %v3582_v54, %v3522_v50  ;;  %v5138_v59 = vor.u32 %v5336_v33, %v5135_v9 }
0x1095   :  { %4224 = vmatpush.bf16.msrb.mxu1 %v4073_v13 }
0x1098   :  { %v3877_v23 = vpop.permute.xlu1 %3876  ;;  %v4043_v41 = vld [vmem:[#allocation10 + $0x210] sm:$0xff]  ;;  %v3526_v62 = vpop.permute.xlu0 %3525 }
0x1099   :  { %3889 = vst.msk [vmem:[#allocation10 + $0x230] sm:$0xff] %vm3703_vm14, %v3877_v23  ;;  %v4080_v21 = vpack.c.bf16 %v4043_v41, %v4042_v25 }
0x109a   :  { %v3584_v22 = vpop.f32.mrf.mxu2  ;;  %v4125_v23 = vpop.permute.xlu2 %4124 }
0x109b   :  { %v3585_v31 = vadd.f32 %v3584_v22, %v3526_v62 }
0x109c   :  { %4212 = vmatmul.bf16.gmra.mxu3 %v5134_v36 }
0x109d   :  { %v3592_v44 = vpack.c.bf16 %v3585_v31, %v3583_v45 }
0x10a0   :  { %v3767_v57 = vpop.permute.xlu1 %3766  ;;  %v4045_v39 = vld [vmem:[#allocation10 + $0x230] sm:$0xff] }
0x10a1   :  { %3780 = vst.msk [vmem:[#allocation10 + $0x100] sm:$0xff] %vm3703_vm14, %v3767_v57  ;;  %v4081_v40 = vpack.c.bf16 %v4045_v39, %v4044_v61 }
0x10a2   :  { %v4100_v57 = vpop.permute.xlu2 %4099 }
0x10a3   :  { %4248 = vmatpush.bf16.msrb.mxu2 %v4081_v40 }
0x10a7   :  { %4249 = vmatpush.bf16.msrb.mxu2 %v4080_v21 }
0x10a8   :  { %v3510_v26 = vpop.permute.xlu1 %3509  ;;  %v4026_v48 = vld [vmem:[#allocation10 + $0x100] sm:$0xff] }
0x10a9   :  { %v3575_v5 = vadd.f32 %v3574_v35, %v3510_v26  ;;  %v4072_v42 = vpack.c.bf16 %v4027_v56, %v4026_v48 }
0x10aa   :  { %4250 = vmatmul.bf16.vlgmr.msrb.gmra.mxu2 %v5110_v14 }
0x10ab   :  { %v3590_v6 = vpack.c.bf16 %v3575_v5, %v3573_v34  ;;  %4225 = vmatpush.bf16.msrb.mxu1 %v4072_v42 }
0x10ac   :  { %5147 = vmatmul.msk.bf16.vlgmr.msra.gmra.mxu3 %vm4184_vm4, %v5114_v2 }
0x10ad   :  { %5096 = vmatmul.msk.bf16.gmra.mxu0 %vm2871_vm6, %v3590_v6  ;;  %v4302_v6 = vld [vmem:[%s7704_s5 + $0xc0] ss:$0 sm:$0xff] }
0x10ae   :  { %4226 = vmatmul.bf16.vlgmr.msrb.gmra.mxu1 %v5106_v19 }
0x10b0   :  { %v3518_v10 = vpop.permute.xlu1 %3517 }
0x10b1   :  { %v3580_v15 = vadd.f32 %v3579_v0, %v3518_v10 }
0x10b3   :  { %v3591_v18 = vpack.c.bf16 %v3580_v15, %v3578_v51 }
0x10b9   :  { %v4120_v20 = vpop.permute.xlu1 %4119 }
0x10ba   :  { %4255 = vmatmul.bf16.gmra.mxu2 %v5126_v8 }
0x10bc   :  { %5148 = vmatmul.msk.bf16.gmra.mxu3 %vm4184_vm4, %v5130_v32 }
0x10bd   :  { %5097 = vmatmul.msk.bf16.gmra.mxu0 %vm2871_vm6, %v3591_v18 }
0x10be   :  { %4231 = vmatmul.bf16.gmra.mxu1 %v5122_v17  ;;  %v4110_v2 = vpop.permute.xlu0 %4109 }
0x10c1   :  { %v4115_v35 = vpop.permute.xlu1 %4114 }
0x10c9   :  { %v4105_v25 = vpop.permute.xlu1 %4104 }
0x10ca   :  { %4260 = vmatmul.bf16.gmra.mxu2 %v5142_v30 }
0x10cc   :  { %5149 = vmatmul.msk.bf16.gmra.mxu3 %vm4184_vm4, %v5146_v55 }
0x10cd   :  { %5098 = vmatmul.msk.bf16.gmra.mxu0 %vm2871_vm6, %v3592_v44 }
0x10ce   :  { %4236 = vmatmul.bf16.gmra.mxu1 %v5138_v59 }
0x10ff   :  { %v4203_v49 = vpop.f32.mrf.mxu3 }
0x1100   :  { %v4204_v39 = vadd.f32 %v4203_v49, %v4100_v57 }
0x1107   :  { %v4205_v58 = vpop.f32.mrf.mxu3 }
0x1108   :  { %v4206_v21 = vadd.f32 %v4205_v58, %v4105_v25  ;;  %v5161_v25 = vld [vmem:[%s7700_s1 + $0x1a0] sm:$0xf] }
0x110f   :  { %v4208_v13 = vpop.f32.mrf.mxu3 }
0x1110   :  { %v4209_v5 = vadd.f32 %v4208_v13, %v4110_v2 }
0x1117   :  { %v4210_v38 = vpop.f32.mrf.mxu3 }
0x1118   :  { %v4211_v63 = vadd.f32 %v4210_v38, %v4115_v35 }
0x111f   :  { %v4213_v36 = vpop.f32.mrf.mxu3 }
0x1120   :  { %v4214_v62 = vadd.f32 %v4213_v36, %v4120_v20 }
0x1127   :  { %v4215_v61 = vpop.f32.mrf.mxu3 }
0x1128   :  { %v4216_v38 = vadd.f32 %v4215_v61, %v4125_v23  ;;  %v5157_v23 = vld [vmem:[%s7700_s1 + $0xf8] sm:$0xf] }
0x112a   :  { %v3651_v40 = vpop.f32.mrf.mxu0 }
0x112b   :  { %v4227_v41 = vpop.f32.mrf.mxu1 }
0x112c   :  { %v4228_v43 = vadd.f32 %v4227_v41, %v4204_v39 }
0x112d   :  { %v4251_v24 = vpop.f32.mrf.mxu2 }
0x112e   :  { %v4252_v52 = vadd.f32 %v4251_v24, %v4228_v43 }
0x112f   :  { %v4275_v47 = vpop.f32.mrf.mxu3 }
0x1130   :  { %v4276_v1 = vadd.f32 %v4275_v47, %v4252_v52  ;;  %v5342_v47 = vld [vmem:[%s7700_s1 + $0x1f0] sm:$0xf0] }
0x1131   :  { %v5162_v61 = vor.u32 %v5342_v47, %v5161_v25 }
0x1132   :  { %v3653_v60 = vpop.f32.mrf.mxu0  ;;  %v4290_v46 = vadd.f32 %v4276_v1, %v3651_v40 }
0x1133   :  { %v4229_v14 = vpop.f32.mrf.mxu1  ;;  %4375 = vmatpush.bf16.msra.mxu2 %v5162_v61 }
0x1134   :  { %v4230_v34 = vadd.f32 %v4229_v14, %v4206_v21  ;;  %v4296_v42 = vmax.f32 %v4290_v46, 0.0  ;;  %v5341_v21 = vld [vmem:[%s7700_s1 + $0x148] sm:$0xf0]  ;;  %v5340_v46 = vld [vmem:[%s7700_s1 + $0xa0] sm:$0xf0] }
0x1135   :  { %v4253_v4 = vpop.f32.mrf.mxu2 }
0x1136   :  { %v4254_v26 = vadd.f32 %v4253_v4, %v4230_v34  ;;  %v4303_v12 = vmul.f32 %v4302_v6, %v4296_v42  ;;  %v5153_v4 = vld [vmem:[%s7700_s1 + $0x50] sm:$0xf] }
0x1137   :  { %v4277_v48 = vpop.f32.mrf.mxu3  ;;  %v5154_v2 = vor.u32 %v5340_v46, %v5153_v4  ;;  %v4309_v42 = vld [vmem:[%s7703_s4 + $0x90] sm:$0x1] }
0x1138   :  { %v4278_v56 = vadd.f32 %v4277_v48, %v4254_v26 }
0x113a   :  { %v4291_v19 = vadd.f32 %v4278_v56, %v3653_v60  ;;  %v3656_v0 = vpop.f32.mrf.mxu0  ;;  %v5158_v60 = vor.u32 %v5341_v21, %v5157_v23 }
0x113b   :  { %v4232_v27 = vpop.f32.mrf.mxu1 }
0x113c   :  { %v4297_v37 = vmax.f32 %v4291_v19, 0.0  ;;  %v4233_v10 = vadd.f32 %v4232_v27, %v4209_v5  ;;  %4376 = vmatpush.bf16.msra.mxu2 %v5158_v60  ;;  %v5494_v27 = vld [vmem:[%s7705_s6] ss:$0 sm:$0xff] }
0x113d   :  { %v4256_v11 = vpop.f32.mrf.mxu2 }
0x113e   :  { %v4304_v53 = vmul.f32 %v4302_v6, %v4297_v37  ;;  %v4257_v8 = vadd.f32 %v4256_v11, %v4233_v10 }
0x113f   :  { %v4280_v51 = vpop.f32.mrf.mxu3 }
0x1140   :  { %v4310_v15 = vpack.c.bf16 %v4304_v53, %v4303_v12  ;;  %v4281_v29 = vadd.f32 %v4280_v51, %v4257_v8  ;;  %4377 = vmatpush.bf16.msra.mxu2 %v5154_v2 }
0x1142   :  { %v3658_v17 = vpop.f32.mrf.mxu0  ;;  %v4292_v22 = vadd.f32 %v4281_v29, %v3656_v0  ;;  %v4317_v5 = vsel %vm3703_vm14, %v4310_v15, 0 }
0x1143   :  { %v4234_v32 = vpop.f32.mrf.mxu1 }
0x1144   :  { %v4235_v54 = vadd.f32 %v4234_v32, %v4211_v63  ;;  %v4298_v7 = vmax.f32 %v4292_v22, 0.0 }
0x1145   :  { %v4258_v18 = vpop.f32.mrf.mxu2 }
0x1146   :  { %v4259_v28 = vadd.f32 %v4258_v18, %v4235_v54  ;;  %v4305_v9 = vmul.f32 %v4302_v6, %v4298_v7 }
0x1147   :  { %v4282_v16 = vpop.f32.mrf.mxu3 }
0x1148   :  { %v4283_v50 = vadd.f32 %v4282_v16, %v4259_v28 }
0x114a   :  { %v4293_v3 = vadd.f32 %v4283_v50, %v3658_v17  ;;  %v3661_v44 = vpop.f32.mrf.mxu0 }
0x114b   :  { %v4237_v30 = vpop.f32.mrf.mxu1 }
0x114c   :  { %v4299_v45 = vmax.f32 %v4293_v3, 0.0  ;;  %v4238_v31 = vadd.f32 %v4237_v30, %v4214_v62 }
0x114d   :  { %v4261_v33 = vpop.f32.mrf.mxu2 }
0x114e   :  { %v4306_v55 = vmul.f32 %v4302_v6, %v4299_v45  ;;  %v4262_v59 = vadd.f32 %v4261_v33, %v4238_v31 }
0x114f   :  { %v4285_v49 = vpop.f32.mrf.mxu3 }
0x1150   :  { %v4311_v58 = vpack.c.bf16 %v4306_v55, %v4305_v9  ;;  %v4286_v13 = vadd.f32 %v4285_v49, %v4262_v59 }
0x1152   :  { %v4294_v39 = vadd.f32 %v4286_v13, %v3661_v44  ;;  %v3663_v24 = vpop.f32.mrf.mxu0  ;;  %v4320_v56 = vsel %vm3703_vm14, %v4311_v58, 0 }
0x1153   :  { %v4239_v35 = vpop.f32.mrf.mxu1 }
0x1154   :  { %v4240_v57 = vadd.f32 %v4239_v35, %v4216_v38  ;;  %v4300_v43 = vmax.f32 %v4294_v39, 0.0 }
0x1155   :  { %v4263_v40 = vpop.f32.mrf.mxu2 }
0x1156   :  { %v4264_v41 = vadd.f32 %v4263_v40, %v4240_v57  ;;  %v4307_v14 = vmul.f32 %v4302_v6, %v4300_v43 }
0x1157   :  { %v4287_v20 = vpop.f32.mrf.mxu3 }
0x1158   :  { %v4288_v36 = vadd.f32 %v4287_v20, %v4264_v41 }
0x115a   :  { %v4295_v52 = vadd.f32 %v4288_v36, %v3663_v24 }
0x115c   :  { %v4301_v1 = vmax.f32 %v4295_v52, 0.0 }
0x115e   :  { %v4308_v34 = vmul.f32 %v4302_v6, %v4301_v1 }
0x1160   :  { %v4312_v26 = vpack.c.bf16 %v4308_v34, %v4307_v14 }
0x1162   :  { %v4323_v48 = vsel %vm3703_vm14, %v4312_v26, 0 }
0x1163   :  { %4330 = vmatpush.bf16.xpose.msra.mxu1 %v4323_v48 }
0x116b   :  { %4331 = vmatpush.bf16.xpose.msra.mxu1 %v4320_v56 }
0x1173   :  { %4332 = vmatpush.bf16.xpose.msra.mxu1 %v4317_v5 }
0x117a   :  { %5150 = vmatmul.msk.bf16.vlgmr.msra.gmra.mxu1 %vm3703_vm14, %v4309_v42 }
0x11f7   :  { %v4334_v19 = vpop.f32.mrf.mxu1 }
0x11f8   :  { %v4338_v6 = vpack.c.bf16 %v4334_v19, %v4334_v19 }
0x11fa   :  { %5163 = vmatmul.msk.bf16.vlgmr.msra.gmra.mxu2 %vm4184_vm4, %v4338_v6 }
0x11ff   :  { %v4336_v0 = vpop.f32.mrf.mxu1 }
0x127d   :  { %v4379_v37 = vpop.f32.mrf.mxu2 }
0x127e   :  { %v4380_v10 = vadd.f32 %v5494_v27, %v4379_v37 }
0x1280   :  { %4384 = vst.msk [vmem:[#allocation11] sm:$0x3] %vm4383_vm5, %v4380_v10 }
0x1281   :  { %4395 = dma.vmem_to_hbm [thread:$0]  %s4391_s25, 32, %s4393_s8, [#allocation12]  }
0x1285   :  { %v4381_v11 = vpop.f32.mrf.mxu2 }
0x1286   :  { %5521 = dma.done.wait [#allocation12], 32  }
0x1287   :  { %5522 = vsyncadd [#allocation12], 4294967264 }
0x1288   :  { %4400 = vsyncpa [#allocation12], 1 }

</bundles_post_ra>
